<compile_context>
chip_gen: v6e
topology: v6e:2x2x1
jax: 0.10.0
libtpu: 0.0.40
codegen_flags: <defaults>
</compile_context>

<pallas_src>
import functools

import jax
import jax.numpy as jnp
from jax import lax
from jax.experimental import pallas as pl
from jax.experimental.pallas import tpu as pltpu

# ----------------------------- config ---------------------------------------
# Scaled-down synthetic config (structure-consistent with the module):
VOCAB_SIZE = 65
VOCAB_PAD = 128          # lane-dense padding of the vocab dim for the lm_head
N_EMBED = 64
N_HEAD = 4
HEAD_SIZE = N_EMBED // N_HEAD
N_LAYER = 2
BLOCK_SIZE = 32          # max sequence length (position embedding table)
LN_EPS = 1e-5            # PyTorch nn.LayerNorm default

# One grid step = whole batch (best for single-TC v5e/v6e).  On v7x set to 2
# (requires B % 2 == 0) so the two TensorCores each take half the batch.
GRID_STEPS = 1


# ----------------------------- fused Pallas kernel ---------------------------
def _fused_forward_kernel(
    idx_ref, pos_ref, tok_ref,
    cvec_ref, wqkv_ref, wproj_ref, w1_ref, b1_ref, w2_ref,
    lnf_ref, lmw_ref, lmb_ref,
    o_ref,
    *, seq_len, n_seq,
):
    T = seq_len
    M = n_seq * T                       # batch folded into the M dimension
    C = N_EMBED
    H = N_HEAD
    hs = HEAD_SIZE
    L = N_LAYER
    VPAD = tok_ref.shape[0]

    # --- token + position embedding (one-hot matmul keeps lookup on the MXU) ---
    idxv = idx_ref[...]                                            # (M, 1) int32
    vocab_iota = lax.broadcasted_iota(jnp.int32, (M, VPAD), 1)
    onehot = (vocab_iota == idxv).astype(jnp.float32)              # (M, VPAD)
    x = jnp.dot(onehot, tok_ref[...], preferred_element_type=jnp.float32)  # (M, C)
    x = x + pos_ref[...]                                           # pos pre-tiled to (M, C)

    def layer_norm(z, g, b):
        mean = jnp.mean(z, axis=-1, keepdims=True)
        zc = z - mean
        var = jnp.mean(zc * zc, axis=-1, keepdims=True)
        return zc * lax.rsqrt(var + LN_EPS) * g + b

    # causal additive bias, built ONCE per grid step
    rows = lax.broadcasted_iota(jnp.int32, (T, T), 0)
    cols = lax.broadcasted_iota(jnp.int32, (T, T), 1)
    neg_bias = jnp.where(cols <= rows, 0.0, -1e30)                 # (T, T)

    # contract dim 1 of q with dim 1 of k  ==  q @ k.T without an XLU transpose
    contract_last = (((1,), (1,)), ((), ()))

    for l in range(L):                                             # static unroll
        cv = cvec_ref[l]                                           # (4, C)
        g1, be1 = cv[0:1, :], cv[1:2, :]                           # ln1 gamma / beta
        bproj, b2 = cv[2:3, :], cv[3:4, :]                         # proj / ffn-out biases
        wproj_l = wproj_ref[l]                                     # (C, C)

        # ---- self-attention branch: x = x + proj(heads(ln1(x))) ----
        h = layer_norm(x, g1, be1)                                 # (M, C)
        sa = None
        for hd in range(H):
            base = (l * H + hd) * 3
            wq = wqkv_ref[base + 0]                                # (C, hs), scale folded in
            wk = wqkv_ref[base + 1]
            wv = wqkv_ref[base + 2]
            q = jnp.dot(h, wq, preferred_element_type=jnp.float32)  # (M, hs)
            k = jnp.dot(h, wk, preferred_element_type=jnp.float32)
            v = jnp.dot(h, wv, preferred_element_type=jnp.float32)
            outs = []
            for b in range(n_seq):                                 # per-sequence TxT part
                r0 = b * T
                qb, kb, vb = q[r0:r0 + T], k[r0:r0 + T], v[r0:r0 + T]
                s = lax.dot_general(qb, kb, contract_last,
                                    preferred_element_type=jnp.float32)   # (T, T)
                s = s + neg_bias                                   # causal mask
                s = s - jnp.max(s, axis=-1, keepdims=True)
                e = jnp.exp(s)
                p = e * pl.reciprocal(jnp.sum(e, axis=-1, keepdims=True), approx=True)
                outs.append(jnp.dot(p, vb, preferred_element_type=jnp.float32))  # (T, hs)
            out_h = outs[0] if n_seq == 1 else jnp.concatenate(outs, axis=0)      # (M, hs)
            # per-head output projection, accumulated (no lane concat of heads)
            contrib = jnp.dot(out_h, wproj_l[hd * hs:(hd + 1) * hs, :],
                              preferred_element_type=jnp.float32)                 # (M, C)
            sa = contrib if sa is None else sa + contrib
        x = x + sa + bproj                                         # dropout = identity

        # ---- FFN branch: x = x + ffn(ln1(x))   (reference re-uses ln1; preserved) ----
        h2 = layer_norm(x, g1, be1)
        ff = jnp.dot(h2, w1_ref[l], preferred_element_type=jnp.float32) + b1_ref[l]
        ff = jnp.maximum(ff, 0.0)                                  # ReLU
        ff = jnp.dot(ff, w2_ref[l], preferred_element_type=jnp.float32) + b2
        x = x + ff                                                 # dropout = identity

    # ---- final LN + lm_head (lane-dense, padded vocab) ----
    x = layer_norm(x, lnf_ref[0:1, :], lnf_ref[1:2, :])
    logits = jnp.dot(x, lmw_ref[...], preferred_element_type=jnp.float32) + lmb_ref[...]
    o_ref[...] = logits                                            # (M, VPAD)


# ----------------------------- parameter prep --------------------------------
def init_params(key):
    """Raw per-module parameters (mirrors the PyTorch module structure)."""
    def nrm(k, shape, scale=0.02):
        return jax.random.normal(k, shape, dtype=jnp.float32) * scale

    keys = jax.random.split(key, 4 + N_LAYER)
    params = {
        "tok_emb": nrm(keys[0], (VOCAB_SIZE, N_EMBED), 1.0),
        "pos_emb": nrm(keys[1], (BLOCK_SIZE, N_EMBED), 1.0),
        "lnf_g": jnp.ones((N_EMBED,), jnp.float32),
        "lnf_b": jnp.zeros((N_EMBED,), jnp.float32),
        "lm_W": nrm(keys[2], (N_EMBED, VOCAB_SIZE)),
        "lm_b": jnp.zeros((VOCAB_SIZE,), jnp.float32),
        "blocks": [],
    }
    for i in range(N_LAYER):
        ks = jax.random.split(keys[4 + i], 8)
        params["blocks"].append({
            "wq": nrm(ks[0], (N_HEAD, N_EMBED, HEAD_SIZE)),
            "wk": nrm(ks[1], (N_HEAD, N_EMBED, HEAD_SIZE)),
            "wv": nrm(ks[2], (N_HEAD, N_EMBED, HEAD_SIZE)),
            "wproj": nrm(ks[3], (N_EMBED, N_EMBED)),
            "bproj": jnp.zeros((N_EMBED,), jnp.float32),
            "w1": nrm(ks[4], (N_EMBED, 4 * N_EMBED)),
            "b1": jnp.zeros((4 * N_EMBED,), jnp.float32),
            "w2": nrm(ks[5], (4 * N_EMBED, N_EMBED)),
            "b2": jnp.zeros((N_EMBED,), jnp.float32),
            "ln1_g": jnp.ones((N_EMBED,), jnp.float32),
            "ln1_b": jnp.zeros((N_EMBED,), jnp.float32),
            # ln2 exists in the module but is never used in its forward (bug preserved)
            "ln2_g": jnp.ones((N_EMBED,), jnp.float32),
            "ln2_b": jnp.zeros((N_EMBED,), jnp.float32),
        })
    return params


def prepare_fused_params(params):
    """One-time repack: keep Q/K/V per-head (stacked (L*H*3, C, hs), attention
    scale folded into Q), pack per-layer C-wide constants into one (L,4,C) blob,
    pad the vocab dim of embedding/lm_head to 128 lanes."""
    C = N_EMBED
    H = N_HEAD
    scale = float(C) ** -0.5          # reference scales by n_embed**-0.5 (preserved)

    wqkv, wproj, w1, b1, w2, cvec = [], [], [], [], [], []
    for lp in params["blocks"]:
        for hd in range(H):
            wqkv.append(lp["wq"][hd] * scale)     # (C, hs)
            wqkv.append(lp["wk"][hd])
            wqkv.append(lp["wv"][hd])
        wproj.append(lp["wproj"])
        w1.append(lp["w1"])
        b1.append(lp["b1"].reshape(1, 4 * C))
        w2.append(lp["w2"])
        # packed per-layer C-wide constants: [ln1_g, ln1_b, bproj, b2]
        cvec.append(jnp.stack([lp["ln1_g"], lp["ln1_b"], lp["bproj"], lp["b2"]], axis=0))

    tok_p = jnp.zeros((VOCAB_PAD, C), jnp.float32).at[:VOCAB_SIZE].set(params["tok_emb"])
    lmw_p = jnp.zeros((C, VOCAB_PAD), jnp.float32).at[:, :VOCAB_SIZE].set(params["lm_W"])
    lmb_p = jnp.zeros((1, VOCAB_PAD), jnp.float32).at[:, :VOCAB_SIZE].set(params["lm_b"])

    return {
        "tok_emb": tok_p,
        "pos_emb": params["pos_emb"],
        "cvec": jnp.stack(cvec),                  # (L, 4, C)
        "wqkv": jnp.stack(wqkv),                  # (L*H*3, C, hs)
        "wproj": jnp.stack(wproj),                # (L, C, C)
        "w1": jnp.stack(w1),                      # (L, C, 4C)
        "b1": jnp.stack(b1),                      # (L, 1, 4C)
        "w2": jnp.stack(w2),                      # (L, 4C, C)
        "lnf": jnp.stack([params["lnf_g"], params["lnf_b"]]),  # (2, C)
        "lm_W": lmw_p,                            # (C, VPAD)
        "lm_b": lmb_p,                            # (1, VPAD)
    }


# ----------------------------- forward wrapper --------------------------------
@jax.jit
def bigram_lm_forward(fused, idx):
    """Reproduces BigramLanguageModel.forward(idx, targets=None) -> logits."""
    B, T = idx.shape
    assert B % GRID_STEPS == 0, "GRID_STEPS must divide the batch size"
    n_seq = B // GRID_STEPS            # sequences per grid step
    Ms = n_seq * T                     # rows (M dim) per grid step
    C = N_EMBED

    idx2 = idx.reshape(B * T, 1).astype(jnp.int32)
    pos_tiled = jnp.tile(fused["pos_emb"][:T], (B, 1))             # (B*T, C)

    kernel = functools.partial(_fused_forward_kernel, seq_len=T, n_seq=n_seq)

    def const_spec(a):
        n = a.ndim
        return pl.BlockSpec(a.shape, lambda s, n=n: (0,) * n)      # resident weights

    const_args = (fused["tok_emb"], fused["cvec"], fused["wqkv"], fused["wproj"],
                  fused["w1"], fused["b1"], fused["w2"],
                  fused["lnf"], fused["lm_W"], fused["lm_b"])

    in_specs = [pl.BlockSpec((Ms, 1), lambda s: (s, 0)),           # idx per step
                pl.BlockSpec((Ms, C), lambda s: (s, 0))]           # tiled pos emb
    in_specs += [const_spec(a) for a in const_args]

    logits_pad = pl.pallas_call(
        kernel,
        out_shape=jax.ShapeDtypeStruct((B * T, VOCAB_PAD), jnp.float32),
        grid=(GRID_STEPS,),
        in_specs=in_specs,
        out_specs=pl.BlockSpec((Ms, VOCAB_PAD), lambda s: (s, 0)),
        compiler_params=pltpu.CompilerParams(
            dimension_semantics=("parallel",)),
    )(idx2, pos_tiled, *const_args)

    return logits_pad.reshape(B, T, VOCAB_PAD)[:, :, :VOCAB_SIZE]  # slice off pad lanes


# ----------------------------- main ------------------------------------------
if __name__ == "__main__":
    key = jax.random.PRNGKey(0)
    k_param, k_idx = jax.random.split(key)

    params = init_params(k_param)
    fused = prepare_fused_params(params)                           # one-time repack

    B, T = 2, 16
    idx = jax.random.randint(k_idx, (B, T), 0, VOCAB_SIZE, dtype=jnp.int32)

    logits = bigram_lm_forward(fused, idx)
    jax.block_until_ready(logits)

    assert logits.shape == (B, T, VOCAB_SIZE)
    assert logits.dtype == jnp.float32
    assert bool(jnp.all(jnp.isfinite(logits)))

    print("KERNEL_OK")
</pallas_src>

<mosaic_0001>
module attributes {stable_mosaic.version = 11 : i64} {
  func.func @_fused_forward_kernel(%arg0: i32, %arg1: memref<32x1xi32, #tpu.memory_space<vmem>>, %arg2: memref<32x64xf32, #tpu.memory_space<vmem>>, %arg3: memref<128x64xf32, #tpu.memory_space<vmem>>, %arg4: memref<2x4x64xf32, #tpu.memory_space<vmem>>, %arg5: memref<24x64x16xf32, #tpu.memory_space<vmem>>, %arg6: memref<2x64x64xf32, #tpu.memory_space<vmem>>, %arg7: memref<2x64x256xf32, #tpu.memory_space<vmem>>, %arg8: memref<2x1x256xf32, #tpu.memory_space<vmem>>, %arg9: memref<2x256x64xf32, #tpu.memory_space<vmem>>, %arg10: memref<2x64xf32, #tpu.memory_space<vmem>>, %arg11: memref<64x128xf32, #tpu.memory_space<vmem>>, %arg12: memref<1x128xf32, #tpu.memory_space<vmem>>, %arg13: memref<32x128xf32, #tpu.memory_space<vmem>>) attributes {dimension_semantics = [#tpu.dimension_semantics<parallel>], iteration_bounds = array<i64: 1>, scalar_prefetch = 0 : i64, scratch_operands = 0 : i64, tpu.core_type = #tpu.core_type<tc>, window_params = [{transform_indices = @transform_0, window_bounds = array<i64: 32, 1>}, {transform_indices = @transform_1, window_bounds = array<i64: 32, 64>}, {pipeline_mode = #tpu.pipeline_mode<synchronous>, transform_indices = @transform_2, window_bounds = array<i64: 128, 64>}, {pipeline_mode = #tpu.pipeline_mode<synchronous>, transform_indices = @transform_3, window_bounds = array<i64: 2, 4, 64>}, {pipeline_mode = #tpu.pipeline_mode<synchronous>, transform_indices = @transform_4, window_bounds = array<i64: 24, 64, 16>}, {pipeline_mode = #tpu.pipeline_mode<synchronous>, transform_indices = @transform_5, window_bounds = array<i64: 2, 64, 64>}, {pipeline_mode = #tpu.pipeline_mode<synchronous>, transform_indices = @transform_6, window_bounds = array<i64: 2, 64, 256>}, {pipeline_mode = #tpu.pipeline_mode<synchronous>, transform_indices = @transform_7, window_bounds = array<i64: 2, 1, 256>}, {pipeline_mode = #tpu.pipeline_mode<synchronous>, transform_indices = @transform_8, window_bounds = array<i64: 2, 256, 64>}, {pipeline_mode = #tpu.pipeline_mode<synchronous>, transform_indices = @transform_9, window_bounds = array<i64: 2, 64>}, {pipeline_mode = #tpu.pipeline_mode<synchronous>, transform_indices = @transform_10, window_bounds = array<i64: 64, 128>}, {pipeline_mode = #tpu.pipeline_mode<synchronous>, transform_indices = @transform_11, window_bounds = array<i64: 1, 128>}, {transform_indices = @transform_12, window_bounds = array<i64: 32, 128>}]} {
    %c0 = arith.constant 0 : index
    %c0_0 = arith.constant 0 : index
    %0 = vector.load %arg1[%c0, %c0_0] : memref<32x1xi32, #tpu.memory_space<vmem>>, vector<32x1xi32>
    %1 = tpu.iota {dimensions = array<i32: 1>} : vector<32x128xi32>
    %2 = vector.broadcast %0 : vector<32x1xi32> to vector<32x128xi32>
    %3 = arith.cmpi eq, %1, %2 : vector<32x128xi32>
    %4 = arith.extui %3 : vector<32x128xi1> to vector<32x128xi32>
    %5 = arith.sitofp %4 : vector<32x128xi32> to vector<32x128xf32>
    %c0_1 = arith.constant 0 : index
    %c0_2 = arith.constant 0 : index
    %6 = vector.load %arg3[%c0_1, %c0_2] : memref<128x64xf32, #tpu.memory_space<vmem>>, vector<128x64xf32>
    %cst = arith.constant dense<0.000000e+00> : vector<32x64xf32>
    %7 = tpu.matmul %5, %6, %cst {dimension_numbers = #tpu.dot_dimension_numbers<[1], [0], [0], [1], [0, 0, 1, 1], [], []>} : vector<32x128xf32>, vector<128x64xf32>, vector<32x64xf32> -> vector<32x64xf32>
    %c0_3 = arith.constant 0 : index
    %c0_4 = arith.constant 0 : index
    %8 = vector.load %arg2[%c0_3, %c0_4] : memref<32x64xf32, #tpu.memory_space<vmem>>, vector<32x64xf32>
    %9 = arith.addf %7, %8 : vector<32x64xf32>
    %10 = tpu.iota {dimensions = array<i32: 0>} : vector<16x16xi32>
    %11 = tpu.iota {dimensions = array<i32: 1>} : vector<16x16xi32>
    %12 = arith.cmpi sle, %11, %10 : vector<16x16xi32>
    %cst_5 = arith.constant 0.000000e+00 : f32
    %cst_6 = arith.constant -1.000000e+30 : f32
    %13 = vector.broadcast %cst_5 : f32 to vector<16x16xf32>
    %14 = vector.broadcast %cst_6 : f32 to vector<16x16xf32>
    %15 = arith.select %12, %13, %14 : vector<16x16xi1>, vector<16x16xf32>
    %c0_7 = arith.constant 0 : index
    %c0_8 = arith.constant 0 : index
    %c0_9 = arith.constant 0 : index
    %16 = vector.load %arg4[%c0_7, %c0_8, %c0_9] : memref<2x4x64xf32, #tpu.memory_space<vmem>>, vector<1x4x64xf32>
    %17 = vector.shape_cast %16 : vector<1x4x64xf32> to vector<4x64xf32>
    %18 = vector.extract_strided_slice %17 {offsets = [0, 0], sizes = [1, 64], strides = [1, 1]} : vector<4x64xf32> to vector<1x64xf32>
    %19 = vector.extract_strided_slice %17 {offsets = [1, 0], sizes = [1, 64], strides = [1, 1]} : vector<4x64xf32> to vector<1x64xf32>
    %20 = vector.extract_strided_slice %17 {offsets = [2, 0], sizes = [1, 64], strides = [1, 1]} : vector<4x64xf32> to vector<1x64xf32>
    %21 = vector.extract_strided_slice %17 {offsets = [3, 0], sizes = [1, 64], strides = [1, 1]} : vector<4x64xf32> to vector<1x64xf32>
    %c0_10 = arith.constant 0 : index
    %c0_11 = arith.constant 0 : index
    %c0_12 = arith.constant 0 : index
    %22 = vector.load %arg6[%c0_10, %c0_11, %c0_12] : memref<2x64x64xf32, #tpu.memory_space<vmem>>, vector<1x64x64xf32>
    %23 = vector.shape_cast %22 : vector<1x64x64xf32> to vector<64x64xf32>
    %cst_13 = arith.constant dense<0.000000e+00> : vector<32xf32>
    %24 = vector.multi_reduction <add>, %9, %cst_13 [1] : vector<32x64xf32> to vector<32xf32>
    %25 = vector.shape_cast %24 : vector<32xf32> to vector<32x1xf32>
    %cst_14 = arith.constant 6.400000e+01 : f32
    %26 = vector.broadcast %cst_14 : f32 to vector<32x1xf32>
    %27 = arith.divf %25, %26 : vector<32x1xf32>
    %28 = vector.broadcast %27 : vector<32x1xf32> to vector<32x64xf32>
    %29 = arith.subf %9, %28 : vector<32x64xf32>
    %30 = arith.mulf %29, %29 : vector<32x64xf32>
    %cst_15 = arith.constant dense<0.000000e+00> : vector<32xf32>
    %31 = vector.multi_reduction <add>, %30, %cst_15 [1] : vector<32x64xf32> to vector<32xf32>
    %32 = vector.shape_cast %31 : vector<32xf32> to vector<32x1xf32>
    %cst_16 = arith.constant 6.400000e+01 : f32
    %33 = vector.broadcast %cst_16 : f32 to vector<32x1xf32>
    %34 = arith.divf %32, %33 : vector<32x1xf32>
    %cst_17 = arith.constant 9.99999974E-6 : f32
    %35 = vector.broadcast %cst_17 : f32 to vector<32x1xf32>
    %36 = arith.addf %34, %35 : vector<32x1xf32>
    %37 = math.rsqrt %36 : vector<32x1xf32>
    %38 = vector.broadcast %37 : vector<32x1xf32> to vector<32x64xf32>
    %39 = arith.mulf %29, %38 : vector<32x64xf32>
    %40 = vector.broadcast %18 : vector<1x64xf32> to vector<32x64xf32>
    %41 = arith.mulf %39, %40 : vector<32x64xf32>
    %42 = vector.broadcast %19 : vector<1x64xf32> to vector<32x64xf32>
    %43 = arith.addf %41, %42 : vector<32x64xf32>
    %c0_18 = arith.constant 0 : index
    %c0_19 = arith.constant 0 : index
    %c0_20 = arith.constant 0 : index
    %44 = vector.load %arg5[%c0_18, %c0_19, %c0_20] : memref<24x64x16xf32, #tpu.memory_space<vmem>>, vector<1x64x16xf32>
    %45 = vector.shape_cast %44 : vector<1x64x16xf32> to vector<64x16xf32>
    %c1 = arith.constant 1 : index
    %c0_21 = arith.constant 0 : index
    %c0_22 = arith.constant 0 : index
    %46 = vector.load %arg5[%c1, %c0_21, %c0_22] : memref<24x64x16xf32, #tpu.memory_space<vmem>>, vector<1x64x16xf32>
    %47 = vector.shape_cast %46 : vector<1x64x16xf32> to vector<64x16xf32>
    %c2 = arith.constant 2 : index
    %c0_23 = arith.constant 0 : index
    %c0_24 = arith.constant 0 : index
    %48 = vector.load %arg5[%c2, %c0_23, %c0_24] : memref<24x64x16xf32, #tpu.memory_space<vmem>>, vector<1x64x16xf32>
    %49 = vector.shape_cast %48 : vector<1x64x16xf32> to vector<64x16xf32>
    %cst_25 = arith.constant dense<0.000000e+00> : vector<32x16xf32>
    %50 = tpu.matmul %43, %45, %cst_25 {dimension_numbers = #tpu.dot_dimension_numbers<[1], [0], [0], [1], [0, 0, 1, 1], [], []>} : vector<32x64xf32>, vector<64x16xf32>, vector<32x16xf32> -> vector<32x16xf32>
    %cst_26 = arith.constant dense<0.000000e+00> : vector<32x16xf32>
    %51 = tpu.matmul %43, %47, %cst_26 {dimension_numbers = #tpu.dot_dimension_numbers<[1], [0], [0], [1], [0, 0, 1, 1], [], []>} : vector<32x64xf32>, vector<64x16xf32>, vector<32x16xf32> -> vector<32x16xf32>
    %cst_27 = arith.constant dense<0.000000e+00> : vector<32x16xf32>
    %52 = tpu.matmul %43, %49, %cst_27 {dimension_numbers = #tpu.dot_dimension_numbers<[1], [0], [0], [1], [0, 0, 1, 1], [], []>} : vector<32x64xf32>, vector<64x16xf32>, vector<32x16xf32> -> vector<32x16xf32>
    %53 = vector.extract_strided_slice %50 {offsets = [0, 0], sizes = [16, 16], strides = [1, 1]} : vector<32x16xf32> to vector<16x16xf32>
    %54 = vector.extract_strided_slice %51 {offsets = [0, 0], sizes = [16, 16], strides = [1, 1]} : vector<32x16xf32> to vector<16x16xf32>
    %55 = vector.extract_strided_slice %52 {offsets = [0, 0], sizes = [16, 16], strides = [1, 1]} : vector<32x16xf32> to vector<16x16xf32>
    %cst_28 = arith.constant dense<0.000000e+00> : vector<16x16xf32>
    %56 = tpu.matmul %53, %54, %cst_28 {dimension_numbers = #tpu.dot_dimension_numbers<[1], [1], [0], [0], [0, 0, 1, 0], [], []>} : vector<16x16xf32>, vector<16x16xf32>, vector<16x16xf32> -> vector<16x16xf32>
    %57 = arith.addf %56, %15 : vector<16x16xf32>
    %cst_29 = arith.constant dense<0xFF800000> : vector<16xf32>
    %58 = vector.multi_reduction <maximumf>, %57, %cst_29 [1] : vector<16x16xf32> to vector<16xf32>
    %59 = vector.shape_cast %58 : vector<16xf32> to vector<16x1xf32>
    %60 = vector.broadcast %59 : vector<16x1xf32> to vector<16x16xf32>
    %61 = arith.subf %57, %60 : vector<16x16xf32>
    %62 = math.exp %61 : vector<16x16xf32>
    %cst_30 = arith.constant dense<0.000000e+00> : vector<16xf32>
    %63 = vector.multi_reduction <add>, %62, %cst_30 [1] : vector<16x16xf32> to vector<16xf32>
    %64 = vector.shape_cast %63 : vector<16xf32> to vector<16x1xf32>
    %65 = tpu.reciprocal %64 {approx = true} : vector<16x1xf32> -> vector<16x1xf32>
    %66 = vector.broadcast %65 : vector<16x1xf32> to vector<16x16xf32>
    %67 = arith.mulf %62, %66 : vector<16x16xf32>
    %cst_31 = arith.constant dense<0.000000e+00> : vector<16x16xf32>
    %68 = tpu.matmul %67, %55, %cst_31 {dimension_numbers = #tpu.dot_dimension_numbers<[1], [0], [0], [1], [0, 0, 1, 1], [], []>} : vector<16x16xf32>, vector<16x16xf32>, vector<16x16xf32> -> vector<16x16xf32>
    %69 = vector.extract_strided_slice %50 {offsets = [16, 0], sizes = [16, 16], strides = [1, 1]} : vector<32x16xf32> to vector<16x16xf32>
    %70 = vector.extract_strided_slice %51 {offsets = [16, 0], sizes = [16, 16], strides = [1, 1]} : vector<32x16xf32> to vector<16x16xf32>
    %71 = vector.extract_strided_slice %52 {offsets = [16, 0], sizes = [16, 16], strides = [1, 1]} : vector<32x16xf32> to vector<16x16xf32>
    %cst_32 = arith.constant dense<0.000000e+00> : vector<16x16xf32>
    %72 = tpu.matmul %69, %70, %cst_32 {dimension_numbers = #tpu.dot_dimension_numbers<[1], [1], [0], [0], [0, 0, 1, 0], [], []>} : vector<16x16xf32>, vector<16x16xf32>, vector<16x16xf32> -> vector<16x16xf32>
    %73 = arith.addf %72, %15 : vector<16x16xf32>
    %cst_33 = arith.constant dense<0xFF800000> : vector<16xf32>
    %74 = vector.multi_reduction <maximumf>, %73, %cst_33 [1] : vector<16x16xf32> to vector<16xf32>
    %75 = vector.shape_cast %74 : vector<16xf32> to vector<16x1xf32>
    %76 = vector.broadcast %75 : vector<16x1xf32> to vector<16x16xf32>
    %77 = arith.subf %73, %76 : vector<16x16xf32>
    %78 = math.exp %77 : vector<16x16xf32>
    %cst_34 = arith.constant dense<0.000000e+00> : vector<16xf32>
    %79 = vector.multi_reduction <add>, %78, %cst_34 [1] : vector<16x16xf32> to vector<16xf32>
    %80 = vector.shape_cast %79 : vector<16xf32> to vector<16x1xf32>
    %81 = tpu.reciprocal %80 {approx = true} : vector<16x1xf32> -> vector<16x1xf32>
    %82 = vector.broadcast %81 : vector<16x1xf32> to vector<16x16xf32>
    %83 = arith.mulf %78, %82 : vector<16x16xf32>
    %cst_35 = arith.constant dense<0.000000e+00> : vector<16x16xf32>
    %84 = tpu.matmul %83, %71, %cst_35 {dimension_numbers = #tpu.dot_dimension_numbers<[1], [0], [0], [1], [0, 0, 1, 1], [], []>} : vector<16x16xf32>, vector<16x16xf32>, vector<16x16xf32> -> vector<16x16xf32>
    %85 = tpu.concatenate %68, %84 in 0 : vector<16x16xf32>, vector<16x16xf32> -> vector<32x16xf32>
    %86 = vector.extract_strided_slice %23 {offsets = [0, 0], sizes = [16, 64], strides = [1, 1]} : vector<64x64xf32> to vector<16x64xf32>
    %cst_36 = arith.constant dense<0.000000e+00> : vector<32x64xf32>
    %87 = tpu.matmul %85, %86, %cst_36 {dimension_numbers = #tpu.dot_dimension_numbers<[1], [0], [0], [1], [0, 0, 1, 1], [], []>} : vector<32x16xf32>, vector<16x64xf32>, vector<32x64xf32> -> vector<32x64xf32>
    %c3 = arith.constant 3 : index
    %c0_37 = arith.constant 0 : index
    %c0_38 = arith.constant 0 : index
    %88 = vector.load %arg5[%c3, %c0_37, %c0_38] : memref<24x64x16xf32, #tpu.memory_space<vmem>>, vector<1x64x16xf32>
    %89 = vector.shape_cast %88 : vector<1x64x16xf32> to vector<64x16xf32>
    %c4 = arith.constant 4 : index
    %c0_39 = arith.constant 0 : index
    %c0_40 = arith.constant 0 : index
    %90 = vector.load %arg5[%c4, %c0_39, %c0_40] : memref<24x64x16xf32, #tpu.memory_space<vmem>>, vector<1x64x16xf32>
    %91 = vector.shape_cast %90 : vector<1x64x16xf32> to vector<64x16xf32>
    %c5 = arith.constant 5 : index
    %c0_41 = arith.constant 0 : index
    %c0_42 = arith.constant 0 : index
    %92 = vector.load %arg5[%c5, %c0_41, %c0_42] : memref<24x64x16xf32, #tpu.memory_space<vmem>>, vector<1x64x16xf32>
    %93 = vector.shape_cast %92 : vector<1x64x16xf32> to vector<64x16xf32>
    %cst_43 = arith.constant dense<0.000000e+00> : vector<32x16xf32>
    %94 = tpu.matmul %43, %89, %cst_43 {dimension_numbers = #tpu.dot_dimension_numbers<[1], [0], [0], [1], [0, 0, 1, 1], [], []>} : vector<32x64xf32>, vector<64x16xf32>, vector<32x16xf32> -> vector<32x16xf32>
    %cst_44 = arith.constant dense<0.000000e+00> : vector<32x16xf32>
    %95 = tpu.matmul %43, %91, %cst_44 {dimension_numbers = #tpu.dot_dimension_numbers<[1], [0], [0], [1], [0, 0, 1, 1], [], []>} : vector<32x64xf32>, vector<64x16xf32>, vector<32x16xf32> -> vector<32x16xf32>
    %cst_45 = arith.constant dense<0.000000e+00> : vector<32x16xf32>
    %96 = tpu.matmul %43, %93, %cst_45 {dimension_numbers = #tpu.dot_dimension_numbers<[1], [0], [0], [1], [0, 0, 1, 1], [], []>} : vector<32x64xf32>, vector<64x16xf32>, vector<32x16xf32> -> vector<32x16xf32>
    %97 = vector.extract_strided_slice %94 {offsets = [0, 0], sizes = [16, 16], strides = [1, 1]} : vector<32x16xf32> to vector<16x16xf32>
    %98 = vector.extract_strided_slice %95 {offsets = [0, 0], sizes = [16, 16], strides = [1, 1]} : vector<32x16xf32> to vector<16x16xf32>
    %99 = vector.extract_strided_slice %96 {offsets = [0, 0], sizes = [16, 16], strides = [1, 1]} : vector<32x16xf32> to vector<16x16xf32>
    %cst_46 = arith.constant dense<0.000000e+00> : vector<16x16xf32>
    %100 = tpu.matmul %97, %98, %cst_46 {dimension_numbers = #tpu.dot_dimension_numbers<[1], [1], [0], [0], [0, 0, 1, 0], [], []>} : vector<16x16xf32>, vector<16x16xf32>, vector<16x16xf32> -> vector<16x16xf32>
    %101 = arith.addf %100, %15 : vector<16x16xf32>
    %cst_47 = arith.constant dense<0xFF800000> : vector<16xf32>
    %102 = vector.multi_reduction <maximumf>, %101, %cst_47 [1] : vector<16x16xf32> to vector<16xf32>
    %103 = vector.shape_cast %102 : vector<16xf32> to vector<16x1xf32>
    %104 = vector.broadcast %103 : vector<16x1xf32> to vector<16x16xf32>
    %105 = arith.subf %101, %104 : vector<16x16xf32>
    %106 = math.exp %105 : vector<16x16xf32>
    %cst_48 = arith.constant dense<0.000000e+00> : vector<16xf32>
    %107 = vector.multi_reduction <add>, %106, %cst_48 [1] : vector<16x16xf32> to vector<16xf32>
    %108 = vector.shape_cast %107 : vector<16xf32> to vector<16x1xf32>
    %109 = tpu.reciprocal %108 {approx = true} : vector<16x1xf32> -> vector<16x1xf32>
    %110 = vector.broadcast %109 : vector<16x1xf32> to vector<16x16xf32>
    %111 = arith.mulf %106, %110 : vector<16x16xf32>
    %cst_49 = arith.constant dense<0.000000e+00> : vector<16x16xf32>
    %112 = tpu.matmul %111, %99, %cst_49 {dimension_numbers = #tpu.dot_dimension_numbers<[1], [0], [0], [1], [0, 0, 1, 1], [], []>} : vector<16x16xf32>, vector<16x16xf32>, vector<16x16xf32> -> vector<16x16xf32>
    %113 = vector.extract_strided_slice %94 {offsets = [16, 0], sizes = [16, 16], strides = [1, 1]} : vector<32x16xf32> to vector<16x16xf32>
    %114 = vector.extract_strided_slice %95 {offsets = [16, 0], sizes = [16, 16], strides = [1, 1]} : vector<32x16xf32> to vector<16x16xf32>
    %115 = vector.extract_strided_slice %96 {offsets = [16, 0], sizes = [16, 16], strides = [1, 1]} : vector<32x16xf32> to vector<16x16xf32>
    %cst_50 = arith.constant dense<0.000000e+00> : vector<16x16xf32>
    %116 = tpu.matmul %113, %114, %cst_50 {dimension_numbers = #tpu.dot_dimension_numbers<[1], [1], [0], [0], [0, 0, 1, 0], [], []>} : vector<16x16xf32>, vector<16x16xf32>, vector<16x16xf32> -> vector<16x16xf32>
    %117 = arith.addf %116, %15 : vector<16x16xf32>
    %cst_51 = arith.constant dense<0xFF800000> : vector<16xf32>
    %118 = vector.multi_reduction <maximumf>, %117, %cst_51 [1] : vector<16x16xf32> to vector<16xf32>
    %119 = vector.shape_cast %118 : vector<16xf32> to vector<16x1xf32>
    %120 = vector.broadcast %119 : vector<16x1xf32> to vector<16x16xf32>
    %121 = arith.subf %117, %120 : vector<16x16xf32>
    %122 = math.exp %121 : vector<16x16xf32>
    %cst_52 = arith.constant dense<0.000000e+00> : vector<16xf32>
    %123 = vector.multi_reduction <add>, %122, %cst_52 [1] : vector<16x16xf32> to vector<16xf32>
    %124 = vector.shape_cast %123 : vector<16xf32> to vector<16x1xf32>
    %125 = tpu.reciprocal %124 {approx = true} : vector<16x1xf32> -> vector<16x1xf32>
    %126 = vector.broadcast %125 : vector<16x1xf32> to vector<16x16xf32>
    %127 = arith.mulf %122, %126 : vector<16x16xf32>
    %cst_53 = arith.constant dense<0.000000e+00> : vector<16x16xf32>
    %128 = tpu.matmul %127, %115, %cst_53 {dimension_numbers = #tpu.dot_dimension_numbers<[1], [0], [0], [1], [0, 0, 1, 1], [], []>} : vector<16x16xf32>, vector<16x16xf32>, vector<16x16xf32> -> vector<16x16xf32>
    %129 = tpu.concatenate %112, %128 in 0 : vector<16x16xf32>, vector<16x16xf32> -> vector<32x16xf32>
    %130 = vector.extract_strided_slice %23 {offsets = [16, 0], sizes = [16, 64], strides = [1, 1]} : vector<64x64xf32> to vector<16x64xf32>
    %cst_54 = arith.constant dense<0.000000e+00> : vector<32x64xf32>
    %131 = tpu.matmul %129, %130, %cst_54 {dimension_numbers = #tpu.dot_dimension_numbers<[1], [0], [0], [1], [0, 0, 1, 1], [], []>} : vector<32x16xf32>, vector<16x64xf32>, vector<32x64xf32> -> vector<32x64xf32>
    %132 = arith.addf %87, %131 : vector<32x64xf32>
    %c6 = arith.constant 6 : index
    %c0_55 = arith.constant 0 : index
    %c0_56 = arith.constant 0 : index
    %133 = vector.load %arg5[%c6, %c0_55, %c0_56] : memref<24x64x16xf32, #tpu.memory_space<vmem>>, vector<1x64x16xf32>
    %134 = vector.shape_cast %133 : vector<1x64x16xf32> to vector<64x16xf32>
    %c7 = arith.constant 7 : index
    %c0_57 = arith.constant 0 : index
    %c0_58 = arith.constant 0 : index
    %135 = vector.load %arg5[%c7, %c0_57, %c0_58] : memref<24x64x16xf32, #tpu.memory_space<vmem>>, vector<1x64x16xf32>
    %136 = vector.shape_cast %135 : vector<1x64x16xf32> to vector<64x16xf32>
    %c8 = arith.constant 8 : index
    %c0_59 = arith.constant 0 : index
    %c0_60 = arith.constant 0 : index
    %137 = vector.load %arg5[%c8, %c0_59, %c0_60] : memref<24x64x16xf32, #tpu.memory_space<vmem>>, vector<1x64x16xf32>
    %138 = vector.shape_cast %137 : vector<1x64x16xf32> to vector<64x16xf32>
    %cst_61 = arith.constant dense<0.000000e+00> : vector<32x16xf32>
    %139 = tpu.matmul %43, %134, %cst_61 {dimension_numbers = #tpu.dot_dimension_numbers<[1], [0], [0], [1], [0, 0, 1, 1], [], []>} : vector<32x64xf32>, vector<64x16xf32>, vector<32x16xf32> -> vector<32x16xf32>
    %cst_62 = arith.constant dense<0.000000e+00> : vector<32x16xf32>
    %140 = tpu.matmul %43, %136, %cst_62 {dimension_numbers = #tpu.dot_dimension_numbers<[1], [0], [0], [1], [0, 0, 1, 1], [], []>} : vector<32x64xf32>, vector<64x16xf32>, vector<32x16xf32> -> vector<32x16xf32>
    %cst_63 = arith.constant dense<0.000000e+00> : vector<32x16xf32>
    %141 = tpu.matmul %43, %138, %cst_63 {dimension_numbers = #tpu.dot_dimension_numbers<[1], [0], [0], [1], [0, 0, 1, 1], [], []>} : vector<32x64xf32>, vector<64x16xf32>, vector<32x16xf32> -> vector<32x16xf32>
    %142 = vector.extract_strided_slice %139 {offsets = [0, 0], sizes = [16, 16], strides = [1, 1]} : vector<32x16xf32> to vector<16x16xf32>
    %143 = vector.extract_strided_slice %140 {offsets = [0, 0], sizes = [16, 16], strides = [1, 1]} : vector<32x16xf32> to vector<16x16xf32>
    %144 = vector.extract_strided_slice %141 {offsets = [0, 0], sizes = [16, 16], strides = [1, 1]} : vector<32x16xf32> to vector<16x16xf32>
    %cst_64 = arith.constant dense<0.000000e+00> : vector<16x16xf32>
    %145 = tpu.matmul %142, %143, %cst_64 {dimension_numbers = #tpu.dot_dimension_numbers<[1], [1], [0], [0], [0, 0, 1, 0], [], []>} : vector<16x16xf32>, vector<16x16xf32>, vector<16x16xf32> -> vector<16x16xf32>
    %146 = arith.addf %145, %15 : vector<16x16xf32>
    %cst_65 = arith.constant dense<0xFF800000> : vector<16xf32>
    %147 = vector.multi_reduction <maximumf>, %146, %cst_65 [1] : vector<16x16xf32> to vector<16xf32>
    %148 = vector.shape_cast %147 : vector<16xf32> to vector<16x1xf32>
    %149 = vector.broadcast %148 : vector<16x1xf32> to vector<16x16xf32>
    %150 = arith.subf %146, %149 : vector<16x16xf32>
    %151 = math.exp %150 : vector<16x16xf32>
    %cst_66 = arith.constant dense<0.000000e+00> : vector<16xf32>
    %152 = vector.multi_reduction <add>, %151, %cst_66 [1] : vector<16x16xf32> to vector<16xf32>
    %153 = vector.shape_cast %152 : vector<16xf32> to vector<16x1xf32>
    %154 = tpu.reciprocal %153 {approx = true} : vector<16x1xf32> -> vector<16x1xf32>
    %155 = vector.broadcast %154 : vector<16x1xf32> to vector<16x16xf32>
    %156 = arith.mulf %151, %155 : vector<16x16xf32>
    %cst_67 = arith.constant dense<0.000000e+00> : vector<16x16xf32>
    %157 = tpu.matmul %156, %144, %cst_67 {dimension_numbers = #tpu.dot_dimension_numbers<[1], [0], [0], [1], [0, 0, 1, 1], [], []>} : vector<16x16xf32>, vector<16x16xf32>, vector<16x16xf32> -> vector<16x16xf32>
    %158 = vector.extract_strided_slice %139 {offsets = [16, 0], sizes = [16, 16], strides = [1, 1]} : vector<32x16xf32> to vector<16x16xf32>
    %159 = vector.extract_strided_slice %140 {offsets = [16, 0], sizes = [16, 16], strides = [1, 1]} : vector<32x16xf32> to vector<16x16xf32>
    %160 = vector.extract_strided_slice %141 {offsets = [16, 0], sizes = [16, 16], strides = [1, 1]} : vector<32x16xf32> to vector<16x16xf32>
    %cst_68 = arith.constant dense<0.000000e+00> : vector<16x16xf32>
    %161 = tpu.matmul %158, %159, %cst_68 {dimension_numbers = #tpu.dot_dimension_numbers<[1], [1], [0], [0], [0, 0, 1, 0], [], []>} : vector<16x16xf32>, vector<16x16xf32>, vector<16x16xf32> -> vector<16x16xf32>
    %162 = arith.addf %161, %15 : vector<16x16xf32>
    %cst_69 = arith.constant dense<0xFF800000> : vector<16xf32>
    %163 = vector.multi_reduction <maximumf>, %162, %cst_69 [1] : vector<16x16xf32> to vector<16xf32>
    %164 = vector.shape_cast %163 : vector<16xf32> to vector<16x1xf32>
    %165 = vector.broadcast %164 : vector<16x1xf32> to vector<16x16xf32>
    %166 = arith.subf %162, %165 : vector<16x16xf32>
    %167 = math.exp %166 : vector<16x16xf32>
    %cst_70 = arith.constant dense<0.000000e+00> : vector<16xf32>
    %168 = vector.multi_reduction <add>, %167, %cst_70 [1] : vector<16x16xf32> to vector<16xf32>
    %169 = vector.shape_cast %168 : vector<16xf32> to vector<16x1xf32>
    %170 = tpu.reciprocal %169 {approx = true} : vector<16x1xf32> -> vector<16x1xf32>
    %171 = vector.broadcast %170 : vector<16x1xf32> to vector<16x16xf32>
    %172 = arith.mulf %167, %171 : vector<16x16xf32>
    %cst_71 = arith.constant dense<0.000000e+00> : vector<16x16xf32>
    %173 = tpu.matmul %172, %160, %cst_71 {dimension_numbers = #tpu.dot_dimension_numbers<[1], [0], [0], [1], [0, 0, 1, 1], [], []>} : vector<16x16xf32>, vector<16x16xf32>, vector<16x16xf32> -> vector<16x16xf32>
    %174 = tpu.concatenate %157, %173 in 0 : vector<16x16xf32>, vector<16x16xf32> -> vector<32x16xf32>
    %175 = vector.extract_strided_slice %23 {offsets = [32, 0], sizes = [16, 64], strides = [1, 1]} : vector<64x64xf32> to vector<16x64xf32>
    %cst_72 = arith.constant dense<0.000000e+00> : vector<32x64xf32>
    %176 = tpu.matmul %174, %175, %cst_72 {dimension_numbers = #tpu.dot_dimension_numbers<[1], [0], [0], [1], [0, 0, 1, 1], [], []>} : vector<32x16xf32>, vector<16x64xf32>, vector<32x64xf32> -> vector<32x64xf32>
    %177 = arith.addf %132, %176 : vector<32x64xf32>
    %c9 = arith.constant 9 : index
    %c0_73 = arith.constant 0 : index
    %c0_74 = arith.constant 0 : index
    %178 = vector.load %arg5[%c9, %c0_73, %c0_74] : memref<24x64x16xf32, #tpu.memory_space<vmem>>, vector<1x64x16xf32>
    %179 = vector.shape_cast %178 : vector<1x64x16xf32> to vector<64x16xf32>
    %c10 = arith.constant 10 : index
    %c0_75 = arith.constant 0 : index
    %c0_76 = arith.constant 0 : index
    %180 = vector.load %arg5[%c10, %c0_75, %c0_76] : memref<24x64x16xf32, #tpu.memory_space<vmem>>, vector<1x64x16xf32>
    %181 = vector.shape_cast %180 : vector<1x64x16xf32> to vector<64x16xf32>
    %c11 = arith.constant 11 : index
    %c0_77 = arith.constant 0 : index
    %c0_78 = arith.constant 0 : index
    %182 = vector.load %arg5[%c11, %c0_77, %c0_78] : memref<24x64x16xf32, #tpu.memory_space<vmem>>, vector<1x64x16xf32>
    %183 = vector.shape_cast %182 : vector<1x64x16xf32> to vector<64x16xf32>
    %cst_79 = arith.constant dense<0.000000e+00> : vector<32x16xf32>
    %184 = tpu.matmul %43, %179, %cst_79 {dimension_numbers = #tpu.dot_dimension_numbers<[1], [0], [0], [1], [0, 0, 1, 1], [], []>} : vector<32x64xf32>, vector<64x16xf32>, vector<32x16xf32> -> vector<32x16xf32>
    %cst_80 = arith.constant dense<0.000000e+00> : vector<32x16xf32>
    %185 = tpu.matmul %43, %181, %cst_80 {dimension_numbers = #tpu.dot_dimension_numbers<[1], [0], [0], [1], [0, 0, 1, 1], [], []>} : vector<32x64xf32>, vector<64x16xf32>, vector<32x16xf32> -> vector<32x16xf32>
    %cst_81 = arith.constant dense<0.000000e+00> : vector<32x16xf32>
    %186 = tpu.matmul %43, %183, %cst_81 {dimension_numbers = #tpu.dot_dimension_numbers<[1], [0], [0], [1], [0, 0, 1, 1], [], []>} : vector<32x64xf32>, vector<64x16xf32>, vector<32x16xf32> -> vector<32x16xf32>
    %187 = vector.extract_strided_slice %184 {offsets = [0, 0], sizes = [16, 16], strides = [1, 1]} : vector<32x16xf32> to vector<16x16xf32>
    %188 = vector.extract_strided_slice %185 {offsets = [0, 0], sizes = [16, 16], strides = [1, 1]} : vector<32x16xf32> to vector<16x16xf32>
    %189 = vector.extract_strided_slice %186 {offsets = [0, 0], sizes = [16, 16], strides = [1, 1]} : vector<32x16xf32> to vector<16x16xf32>
    %cst_82 = arith.constant dense<0.000000e+00> : vector<16x16xf32>
    %190 = tpu.matmul %187, %188, %cst_82 {dimension_numbers = #tpu.dot_dimension_numbers<[1], [1], [0], [0], [0, 0, 1, 0], [], []>} : vector<16x16xf32>, vector<16x16xf32>, vector<16x16xf32> -> vector<16x16xf32>
    %191 = arith.addf %190, %15 : vector<16x16xf32>
    %cst_83 = arith.constant dense<0xFF800000> : vector<16xf32>
    %192 = vector.multi_reduction <maximumf>, %191, %cst_83 [1] : vector<16x16xf32> to vector<16xf32>
    %193 = vector.shape_cast %192 : vector<16xf32> to vector<16x1xf32>
    %194 = vector.broadcast %193 : vector<16x1xf32> to vector<16x16xf32>
    %195 = arith.subf %191, %194 : vector<16x16xf32>
    %196 = math.exp %195 : vector<16x16xf32>
    %cst_84 = arith.constant dense<0.000000e+00> : vector<16xf32>
    %197 = vector.multi_reduction <add>, %196, %cst_84 [1] : vector<16x16xf32> to vector<16xf32>
    %198 = vector.shape_cast %197 : vector<16xf32> to vector<16x1xf32>
    %199 = tpu.reciprocal %198 {approx = true} : vector<16x1xf32> -> vector<16x1xf32>
    %200 = vector.broadcast %199 : vector<16x1xf32> to vector<16x16xf32>
    %201 = arith.mulf %196, %200 : vector<16x16xf32>
    %cst_85 = arith.constant dense<0.000000e+00> : vector<16x16xf32>
    %202 = tpu.matmul %201, %189, %cst_85 {dimension_numbers = #tpu.dot_dimension_numbers<[1], [0], [0], [1], [0, 0, 1, 1], [], []>} : vector<16x16xf32>, vector<16x16xf32>, vector<16x16xf32> -> vector<16x16xf32>
    %203 = vector.extract_strided_slice %184 {offsets = [16, 0], sizes = [16, 16], strides = [1, 1]} : vector<32x16xf32> to vector<16x16xf32>
    %204 = vector.extract_strided_slice %185 {offsets = [16, 0], sizes = [16, 16], strides = [1, 1]} : vector<32x16xf32> to vector<16x16xf32>
    %205 = vector.extract_strided_slice %186 {offsets = [16, 0], sizes = [16, 16], strides = [1, 1]} : vector<32x16xf32> to vector<16x16xf32>
    %cst_86 = arith.constant dense<0.000000e+00> : vector<16x16xf32>
    %206 = tpu.matmul %203, %204, %cst_86 {dimension_numbers = #tpu.dot_dimension_numbers<[1], [1], [0], [0], [0, 0, 1, 0], [], []>} : vector<16x16xf32>, vector<16x16xf32>, vector<16x16xf32> -> vector<16x16xf32>
    %207 = arith.addf %206, %15 : vector<16x16xf32>
    %cst_87 = arith.constant dense<0xFF800000> : vector<16xf32>
    %208 = vector.multi_reduction <maximumf>, %207, %cst_87 [1] : vector<16x16xf32> to vector<16xf32>
    %209 = vector.shape_cast %208 : vector<16xf32> to vector<16x1xf32>
    %210 = vector.broadcast %209 : vector<16x1xf32> to vector<16x16xf32>
    %211 = arith.subf %207, %210 : vector<16x16xf32>
    %212 = math.exp %211 : vector<16x16xf32>
    %cst_88 = arith.constant dense<0.000000e+00> : vector<16xf32>
    %213 = vector.multi_reduction <add>, %212, %cst_88 [1] : vector<16x16xf32> to vector<16xf32>
    %214 = vector.shape_cast %213 : vector<16xf32> to vector<16x1xf32>
    %215 = tpu.reciprocal %214 {approx = true} : vector<16x1xf32> -> vector<16x1xf32>
    %216 = vector.broadcast %215 : vector<16x1xf32> to vector<16x16xf32>
    %217 = arith.mulf %212, %216 : vector<16x16xf32>
    %cst_89 = arith.constant dense<0.000000e+00> : vector<16x16xf32>
    %218 = tpu.matmul %217, %205, %cst_89 {dimension_numbers = #tpu.dot_dimension_numbers<[1], [0], [0], [1], [0, 0, 1, 1], [], []>} : vector<16x16xf32>, vector<16x16xf32>, vector<16x16xf32> -> vector<16x16xf32>
    %219 = tpu.concatenate %202, %218 in 0 : vector<16x16xf32>, vector<16x16xf32> -> vector<32x16xf32>
    %220 = vector.extract_strided_slice %23 {offsets = [48, 0], sizes = [16, 64], strides = [1, 1]} : vector<64x64xf32> to vector<16x64xf32>
    %cst_90 = arith.constant dense<0.000000e+00> : vector<32x64xf32>
    %221 = tpu.matmul %219, %220, %cst_90 {dimension_numbers = #tpu.dot_dimension_numbers<[1], [0], [0], [1], [0, 0, 1, 1], [], []>} : vector<32x16xf32>, vector<16x64xf32>, vector<32x64xf32> -> vector<32x64xf32>
    %222 = arith.addf %177, %221 : vector<32x64xf32>
    %223 = arith.addf %9, %222 : vector<32x64xf32>
    %224 = vector.broadcast %20 : vector<1x64xf32> to vector<32x64xf32>
    %225 = arith.addf %223, %224 : vector<32x64xf32>
    %cst_91 = arith.constant dense<0.000000e+00> : vector<32xf32>
    %226 = vector.multi_reduction <add>, %225, %cst_91 [1] : vector<32x64xf32> to vector<32xf32>
    %227 = vector.shape_cast %226 : vector<32xf32> to vector<32x1xf32>
    %cst_92 = arith.constant 6.400000e+01 : f32
    %228 = vector.broadcast %cst_92 : f32 to vector<32x1xf32>
    %229 = arith.divf %227, %228 : vector<32x1xf32>
    %230 = vector.broadcast %229 : vector<32x1xf32> to vector<32x64xf32>
    %231 = arith.subf %225, %230 : vector<32x64xf32>
    %232 = arith.mulf %231, %231 : vector<32x64xf32>
    %cst_93 = arith.constant dense<0.000000e+00> : vector<32xf32>
    %233 = vector.multi_reduction <add>, %232, %cst_93 [1] : vector<32x64xf32> to vector<32xf32>
    %234 = vector.shape_cast %233 : vector<32xf32> to vector<32x1xf32>
    %cst_94 = arith.constant 6.400000e+01 : f32
    %235 = vector.broadcast %cst_94 : f32 to vector<32x1xf32>
    %236 = arith.divf %234, %235 : vector<32x1xf32>
    %cst_95 = arith.constant 9.99999974E-6 : f32
    %237 = vector.broadcast %cst_95 : f32 to vector<32x1xf32>
    %238 = arith.addf %236, %237 : vector<32x1xf32>
    %239 = math.rsqrt %238 : vector<32x1xf32>
    %240 = vector.broadcast %239 : vector<32x1xf32> to vector<32x64xf32>
    %241 = arith.mulf %231, %240 : vector<32x64xf32>
    %242 = vector.broadcast %18 : vector<1x64xf32> to vector<32x64xf32>
    %243 = arith.mulf %241, %242 : vector<32x64xf32>
    %244 = vector.broadcast %19 : vector<1x64xf32> to vector<32x64xf32>
    %245 = arith.addf %243, %244 : vector<32x64xf32>
    %c0_96 = arith.constant 0 : index
    %c0_97 = arith.constant 0 : index
    %c0_98 = arith.constant 0 : index
    %246 = vector.load %arg7[%c0_96, %c0_97, %c0_98] : memref<2x64x256xf32, #tpu.memory_space<vmem>>, vector<1x64x256xf32>
    %247 = vector.shape_cast %246 : vector<1x64x256xf32> to vector<64x256xf32>
    %cst_99 = arith.constant dense<0.000000e+00> : vector<32x256xf32>
    %248 = tpu.matmul %245, %247, %cst_99 {dimension_numbers = #tpu.dot_dimension_numbers<[1], [0], [0], [1], [0, 0, 1, 1], [], []>} : vector<32x64xf32>, vector<64x256xf32>, vector<32x256xf32> -> vector<32x256xf32>
    %c0_100 = arith.constant 0 : index
    %c0_101 = arith.constant 0 : index
    %c0_102 = arith.constant 0 : index
    %249 = vector.load %arg8[%c0_100, %c0_101, %c0_102] : memref<2x1x256xf32, #tpu.memory_space<vmem>>, vector<1x1x256xf32>
    %250 = vector.shape_cast %249 : vector<1x1x256xf32> to vector<1x256xf32>
    %251 = vector.broadcast %250 : vector<1x256xf32> to vector<32x256xf32>
    %252 = arith.addf %248, %251 : vector<32x256xf32>
    %cst_103 = arith.constant 0.000000e+00 : f32
    %253 = vector.broadcast %cst_103 : f32 to vector<32x256xf32>
    %254 = arith.maximumf %252, %253 : vector<32x256xf32>
    %c0_104 = arith.constant 0 : index
    %c0_105 = arith.constant 0 : index
    %c0_106 = arith.constant 0 : index
    %255 = vector.load %arg9[%c0_104, %c0_105, %c0_106] : memref<2x256x64xf32, #tpu.memory_space<vmem>>, vector<1x256x64xf32>
    %256 = vector.shape_cast %255 : vector<1x256x64xf32> to vector<256x64xf32>
    %cst_107 = arith.constant dense<0.000000e+00> : vector<32x64xf32>
    %257 = tpu.matmul %254, %256, %cst_107 {dimension_numbers = #tpu.dot_dimension_numbers<[1], [0], [0], [1], [0, 0, 1, 1], [], []>} : vector<32x256xf32>, vector<256x64xf32>, vector<32x64xf32> -> vector<32x64xf32>
    %258 = vector.broadcast %21 : vector<1x64xf32> to vector<32x64xf32>
    %259 = arith.addf %257, %258 : vector<32x64xf32>
    %260 = arith.addf %225, %259 : vector<32x64xf32>
    %c1_108 = arith.constant 1 : index
    %c0_109 = arith.constant 0 : index
    %c0_110 = arith.constant 0 : index
    %261 = vector.load %arg4[%c1_108, %c0_109, %c0_110] : memref<2x4x64xf32, #tpu.memory_space<vmem>>, vector<1x4x64xf32>
    %262 = vector.shape_cast %261 : vector<1x4x64xf32> to vector<4x64xf32>
    %263 = vector.extract_strided_slice %262 {offsets = [0, 0], sizes = [1, 64], strides = [1, 1]} : vector<4x64xf32> to vector<1x64xf32>
    %264 = vector.extract_strided_slice %262 {offsets = [1, 0], sizes = [1, 64], strides = [1, 1]} : vector<4x64xf32> to vector<1x64xf32>
    %265 = vector.extract_strided_slice %262 {offsets = [2, 0], sizes = [1, 64], strides = [1, 1]} : vector<4x64xf32> to vector<1x64xf32>
    %266 = vector.extract_strided_slice %262 {offsets = [3, 0], sizes = [1, 64], strides = [1, 1]} : vector<4x64xf32> to vector<1x64xf32>
    %c1_111 = arith.constant 1 : index
    %c0_112 = arith.constant 0 : index
    %c0_113 = arith.constant 0 : index
    %267 = vector.load %arg6[%c1_111, %c0_112, %c0_113] : memref<2x64x64xf32, #tpu.memory_space<vmem>>, vector<1x64x64xf32>
    %268 = vector.shape_cast %267 : vector<1x64x64xf32> to vector<64x64xf32>
    %cst_114 = arith.constant dense<0.000000e+00> : vector<32xf32>
    %269 = vector.multi_reduction <add>, %260, %cst_114 [1] : vector<32x64xf32> to vector<32xf32>
    %270 = vector.shape_cast %269 : vector<32xf32> to vector<32x1xf32>
    %cst_115 = arith.constant 6.400000e+01 : f32
    %271 = vector.broadcast %cst_115 : f32 to vector<32x1xf32>
    %272 = arith.divf %270, %271 : vector<32x1xf32>
    %273 = vector.broadcast %272 : vector<32x1xf32> to vector<32x64xf32>
    %274 = arith.subf %260, %273 : vector<32x64xf32>
    %275 = arith.mulf %274, %274 : vector<32x64xf32>
    %cst_116 = arith.constant dense<0.000000e+00> : vector<32xf32>
    %276 = vector.multi_reduction <add>, %275, %cst_116 [1] : vector<32x64xf32> to vector<32xf32>
    %277 = vector.shape_cast %276 : vector<32xf32> to vector<32x1xf32>
    %cst_117 = arith.constant 6.400000e+01 : f32
    %278 = vector.broadcast %cst_117 : f32 to vector<32x1xf32>
    %279 = arith.divf %277, %278 : vector<32x1xf32>
    %cst_118 = arith.constant 9.99999974E-6 : f32
    %280 = vector.broadcast %cst_118 : f32 to vector<32x1xf32>
    %281 = arith.addf %279, %280 : vector<32x1xf32>
    %282 = math.rsqrt %281 : vector<32x1xf32>
    %283 = vector.broadcast %282 : vector<32x1xf32> to vector<32x64xf32>
    %284 = arith.mulf %274, %283 : vector<32x64xf32>
    %285 = vector.broadcast %263 : vector<1x64xf32> to vector<32x64xf32>
    %286 = arith.mulf %284, %285 : vector<32x64xf32>
    %287 = vector.broadcast %264 : vector<1x64xf32> to vector<32x64xf32>
    %288 = arith.addf %286, %287 : vector<32x64xf32>
    %c12 = arith.constant 12 : index
    %c0_119 = arith.constant 0 : index
    %c0_120 = arith.constant 0 : index
    %289 = vector.load %arg5[%c12, %c0_119, %c0_120] : memref<24x64x16xf32, #tpu.memory_space<vmem>>, vector<1x64x16xf32>
    %290 = vector.shape_cast %289 : vector<1x64x16xf32> to vector<64x16xf32>
    %c13 = arith.constant 13 : index
    %c0_121 = arith.constant 0 : index
    %c0_122 = arith.constant 0 : index
    %291 = vector.load %arg5[%c13, %c0_121, %c0_122] : memref<24x64x16xf32, #tpu.memory_space<vmem>>, vector<1x64x16xf32>
    %292 = vector.shape_cast %291 : vector<1x64x16xf32> to vector<64x16xf32>
    %c14 = arith.constant 14 : index
    %c0_123 = arith.constant 0 : index
    %c0_124 = arith.constant 0 : index
    %293 = vector.load %arg5[%c14, %c0_123, %c0_124] : memref<24x64x16xf32, #tpu.memory_space<vmem>>, vector<1x64x16xf32>
    %294 = vector.shape_cast %293 : vector<1x64x16xf32> to vector<64x16xf32>
    %cst_125 = arith.constant dense<0.000000e+00> : vector<32x16xf32>
    %295 = tpu.matmul %288, %290, %cst_125 {dimension_numbers = #tpu.dot_dimension_numbers<[1], [0], [0], [1], [0, 0, 1, 1], [], []>} : vector<32x64xf32>, vector<64x16xf32>, vector<32x16xf32> -> vector<32x16xf32>
    %cst_126 = arith.constant dense<0.000000e+00> : vector<32x16xf32>
    %296 = tpu.matmul %288, %292, %cst_126 {dimension_numbers = #tpu.dot_dimension_numbers<[1], [0], [0], [1], [0, 0, 1, 1], [], []>} : vector<32x64xf32>, vector<64x16xf32>, vector<32x16xf32> -> vector<32x16xf32>
    %cst_127 = arith.constant dense<0.000000e+00> : vector<32x16xf32>
    %297 = tpu.matmul %288, %294, %cst_127 {dimension_numbers = #tpu.dot_dimension_numbers<[1], [0], [0], [1], [0, 0, 1, 1], [], []>} : vector<32x64xf32>, vector<64x16xf32>, vector<32x16xf32> -> vector<32x16xf32>
    %298 = vector.extract_strided_slice %295 {offsets = [0, 0], sizes = [16, 16], strides = [1, 1]} : vector<32x16xf32> to vector<16x16xf32>
    %299 = vector.extract_strided_slice %296 {offsets = [0, 0], sizes = [16, 16], strides = [1, 1]} : vector<32x16xf32> to vector<16x16xf32>
    %300 = vector.extract_strided_slice %297 {offsets = [0, 0], sizes = [16, 16], strides = [1, 1]} : vector<32x16xf32> to vector<16x16xf32>
    %cst_128 = arith.constant dense<0.000000e+00> : vector<16x16xf32>
    %301 = tpu.matmul %298, %299, %cst_128 {dimension_numbers = #tpu.dot_dimension_numbers<[1], [1], [0], [0], [0, 0, 1, 0], [], []>} : vector<16x16xf32>, vector<16x16xf32>, vector<16x16xf32> -> vector<16x16xf32>
    %302 = arith.addf %301, %15 : vector<16x16xf32>
    %cst_129 = arith.constant dense<0xFF800000> : vector<16xf32>
    %303 = vector.multi_reduction <maximumf>, %302, %cst_129 [1] : vector<16x16xf32> to vector<16xf32>
    %304 = vector.shape_cast %303 : vector<16xf32> to vector<16x1xf32>
    %305 = vector.broadcast %304 : vector<16x1xf32> to vector<16x16xf32>
    %306 = arith.subf %302, %305 : vector<16x16xf32>
    %307 = math.exp %306 : vector<16x16xf32>
    %cst_130 = arith.constant dense<0.000000e+00> : vector<16xf32>
    %308 = vector.multi_reduction <add>, %307, %cst_130 [1] : vector<16x16xf32> to vector<16xf32>
    %309 = vector.shape_cast %308 : vector<16xf32> to vector<16x1xf32>
    %310 = tpu.reciprocal %309 {approx = true} : vector<16x1xf32> -> vector<16x1xf32>
    %311 = vector.broadcast %310 : vector<16x1xf32> to vector<16x16xf32>
    %312 = arith.mulf %307, %311 : vector<16x16xf32>
    %cst_131 = arith.constant dense<0.000000e+00> : vector<16x16xf32>
    %313 = tpu.matmul %312, %300, %cst_131 {dimension_numbers = #tpu.dot_dimension_numbers<[1], [0], [0], [1], [0, 0, 1, 1], [], []>} : vector<16x16xf32>, vector<16x16xf32>, vector<16x16xf32> -> vector<16x16xf32>
    %314 = vector.extract_strided_slice %295 {offsets = [16, 0], sizes = [16, 16], strides = [1, 1]} : vector<32x16xf32> to vector<16x16xf32>
    %315 = vector.extract_strided_slice %296 {offsets = [16, 0], sizes = [16, 16], strides = [1, 1]} : vector<32x16xf32> to vector<16x16xf32>
    %316 = vector.extract_strided_slice %297 {offsets = [16, 0], sizes = [16, 16], strides = [1, 1]} : vector<32x16xf32> to vector<16x16xf32>
    %cst_132 = arith.constant dense<0.000000e+00> : vector<16x16xf32>
    %317 = tpu.matmul %314, %315, %cst_132 {dimension_numbers = #tpu.dot_dimension_numbers<[1], [1], [0], [0], [0, 0, 1, 0], [], []>} : vector<16x16xf32>, vector<16x16xf32>, vector<16x16xf32> -> vector<16x16xf32>
    %318 = arith.addf %317, %15 : vector<16x16xf32>
    %cst_133 = arith.constant dense<0xFF800000> : vector<16xf32>
    %319 = vector.multi_reduction <maximumf>, %318, %cst_133 [1] : vector<16x16xf32> to vector<16xf32>
    %320 = vector.shape_cast %319 : vector<16xf32> to vector<16x1xf32>
    %321 = vector.broadcast %320 : vector<16x1xf32> to vector<16x16xf32>
    %322 = arith.subf %318, %321 : vector<16x16xf32>
    %323 = math.exp %322 : vector<16x16xf32>
    %cst_134 = arith.constant dense<0.000000e+00> : vector<16xf32>
    %324 = vector.multi_reduction <add>, %323, %cst_134 [1] : vector<16x16xf32> to vector<16xf32>
    %325 = vector.shape_cast %324 : vector<16xf32> to vector<16x1xf32>
    %326 = tpu.reciprocal %325 {approx = true} : vector<16x1xf32> -> vector<16x1xf32>
    %327 = vector.broadcast %326 : vector<16x1xf32> to vector<16x16xf32>
    %328 = arith.mulf %323, %327 : vector<16x16xf32>
    %cst_135 = arith.constant dense<0.000000e+00> : vector<16x16xf32>
    %329 = tpu.matmul %328, %316, %cst_135 {dimension_numbers = #tpu.dot_dimension_numbers<[1], [0], [0], [1], [0, 0, 1, 1], [], []>} : vector<16x16xf32>, vector<16x16xf32>, vector<16x16xf32> -> vector<16x16xf32>
    %330 = tpu.concatenate %313, %329 in 0 : vector<16x16xf32>, vector<16x16xf32> -> vector<32x16xf32>
    %331 = vector.extract_strided_slice %268 {offsets = [0, 0], sizes = [16, 64], strides = [1, 1]} : vector<64x64xf32> to vector<16x64xf32>
    %cst_136 = arith.constant dense<0.000000e+00> : vector<32x64xf32>
    %332 = tpu.matmul %330, %331, %cst_136 {dimension_numbers = #tpu.dot_dimension_numbers<[1], [0], [0], [1], [0, 0, 1, 1], [], []>} : vector<32x16xf32>, vector<16x64xf32>, vector<32x64xf32> -> vector<32x64xf32>
    %c15 = arith.constant 15 : index
    %c0_137 = arith.constant 0 : index
    %c0_138 = arith.constant 0 : index
    %333 = vector.load %arg5[%c15, %c0_137, %c0_138] : memref<24x64x16xf32, #tpu.memory_space<vmem>>, vector<1x64x16xf32>
    %334 = vector.shape_cast %333 : vector<1x64x16xf32> to vector<64x16xf32>
    %c16 = arith.constant 16 : index
    %c0_139 = arith.constant 0 : index
    %c0_140 = arith.constant 0 : index
    %335 = vector.load %arg5[%c16, %c0_139, %c0_140] : memref<24x64x16xf32, #tpu.memory_space<vmem>>, vector<1x64x16xf32>
    %336 = vector.shape_cast %335 : vector<1x64x16xf32> to vector<64x16xf32>
    %c17 = arith.constant 17 : index
    %c0_141 = arith.constant 0 : index
    %c0_142 = arith.constant 0 : index
    %337 = vector.load %arg5[%c17, %c0_141, %c0_142] : memref<24x64x16xf32, #tpu.memory_space<vmem>>, vector<1x64x16xf32>
    %338 = vector.shape_cast %337 : vector<1x64x16xf32> to vector<64x16xf32>
    %cst_143 = arith.constant dense<0.000000e+00> : vector<32x16xf32>
    %339 = tpu.matmul %288, %334, %cst_143 {dimension_numbers = #tpu.dot_dimension_numbers<[1], [0], [0], [1], [0, 0, 1, 1], [], []>} : vector<32x64xf32>, vector<64x16xf32>, vector<32x16xf32> -> vector<32x16xf32>
    %cst_144 = arith.constant dense<0.000000e+00> : vector<32x16xf32>
    %340 = tpu.matmul %288, %336, %cst_144 {dimension_numbers = #tpu.dot_dimension_numbers<[1], [0], [0], [1], [0, 0, 1, 1], [], []>} : vector<32x64xf32>, vector<64x16xf32>, vector<32x16xf32> -> vector<32x16xf32>
    %cst_145 = arith.constant dense<0.000000e+00> : vector<32x16xf32>
    %341 = tpu.matmul %288, %338, %cst_145 {dimension_numbers = #tpu.dot_dimension_numbers<[1], [0], [0], [1], [0, 0, 1, 1], [], []>} : vector<32x64xf32>, vector<64x16xf32>, vector<32x16xf32> -> vector<32x16xf32>
    %342 = vector.extract_strided_slice %339 {offsets = [0, 0], sizes = [16, 16], strides = [1, 1]} : vector<32x16xf32> to vector<16x16xf32>
    %343 = vector.extract_strided_slice %340 {offsets = [0, 0], sizes = [16, 16], strides = [1, 1]} : vector<32x16xf32> to vector<16x16xf32>
    %344 = vector.extract_strided_slice %341 {offsets = [0, 0], sizes = [16, 16], strides = [1, 1]} : vector<32x16xf32> to vector<16x16xf32>
    %cst_146 = arith.constant dense<0.000000e+00> : vector<16x16xf32>
    %345 = tpu.matmul %342, %343, %cst_146 {dimension_numbers = #tpu.dot_dimension_numbers<[1], [1], [0], [0], [0, 0, 1, 0], [], []>} : vector<16x16xf32>, vector<16x16xf32>, vector<16x16xf32> -> vector<16x16xf32>
    %346 = arith.addf %345, %15 : vector<16x16xf32>
    %cst_147 = arith.constant dense<0xFF800000> : vector<16xf32>
    %347 = vector.multi_reduction <maximumf>, %346, %cst_147 [1] : vector<16x16xf32> to vector<16xf32>
    %348 = vector.shape_cast %347 : vector<16xf32> to vector<16x1xf32>
    %349 = vector.broadcast %348 : vector<16x1xf32> to vector<16x16xf32>
    %350 = arith.subf %346, %349 : vector<16x16xf32>
    %351 = math.exp %350 : vector<16x16xf32>
    %cst_148 = arith.constant dense<0.000000e+00> : vector<16xf32>
    %352 = vector.multi_reduction <add>, %351, %cst_148 [1] : vector<16x16xf32> to vector<16xf32>
    %353 = vector.shape_cast %352 : vector<16xf32> to vector<16x1xf32>
    %354 = tpu.reciprocal %353 {approx = true} : vector<16x1xf32> -> vector<16x1xf32>
    %355 = vector.broadcast %354 : vector<16x1xf32> to vector<16x16xf32>
    %356 = arith.mulf %351, %355 : vector<16x16xf32>
    %cst_149 = arith.constant dense<0.000000e+00> : vector<16x16xf32>
    %357 = tpu.matmul %356, %344, %cst_149 {dimension_numbers = #tpu.dot_dimension_numbers<[1], [0], [0], [1], [0, 0, 1, 1], [], []>} : vector<16x16xf32>, vector<16x16xf32>, vector<16x16xf32> -> vector<16x16xf32>
    %358 = vector.extract_strided_slice %339 {offsets = [16, 0], sizes = [16, 16], strides = [1, 1]} : vector<32x16xf32> to vector<16x16xf32>
    %359 = vector.extract_strided_slice %340 {offsets = [16, 0], sizes = [16, 16], strides = [1, 1]} : vector<32x16xf32> to vector<16x16xf32>
    %360 = vector.extract_strided_slice %341 {offsets = [16, 0], sizes = [16, 16], strides = [1, 1]} : vector<32x16xf32> to vector<16x16xf32>
    %cst_150 = arith.constant dense<0.000000e+00> : vector<16x16xf32>
    %361 = tpu.matmul %358, %359, %cst_150 {dimension_numbers = #tpu.dot_dimension_numbers<[1], [1], [0], [0], [0, 0, 1, 0], [], []>} : vector<16x16xf32>, vector<16x16xf32>, vector<16x16xf32> -> vector<16x16xf32>
    %362 = arith.addf %361, %15 : vector<16x16xf32>
    %cst_151 = arith.constant dense<0xFF800000> : vector<16xf32>
    %363 = vector.multi_reduction <maximumf>, %362, %cst_151 [1] : vector<16x16xf32> to vector<16xf32>
    %364 = vector.shape_cast %363 : vector<16xf32> to vector<16x1xf32>
    %365 = vector.broadcast %364 : vector<16x1xf32> to vector<16x16xf32>
    %366 = arith.subf %362, %365 : vector<16x16xf32>
    %367 = math.exp %366 : vector<16x16xf32>
    %cst_152 = arith.constant dense<0.000000e+00> : vector<16xf32>
    %368 = vector.multi_reduction <add>, %367, %cst_152 [1] : vector<16x16xf32> to vector<16xf32>
    %369 = vector.shape_cast %368 : vector<16xf32> to vector<16x1xf32>
    %370 = tpu.reciprocal %369 {approx = true} : vector<16x1xf32> -> vector<16x1xf32>
    %371 = vector.broadcast %370 : vector<16x1xf32> to vector<16x16xf32>
    %372 = arith.mulf %367, %371 : vector<16x16xf32>
    %cst_153 = arith.constant dense<0.000000e+00> : vector<16x16xf32>
    %373 = tpu.matmul %372, %360, %cst_153 {dimension_numbers = #tpu.dot_dimension_numbers<[1], [0], [0], [1], [0, 0, 1, 1], [], []>} : vector<16x16xf32>, vector<16x16xf32>, vector<16x16xf32> -> vector<16x16xf32>
    %374 = tpu.concatenate %357, %373 in 0 : vector<16x16xf32>, vector<16x16xf32> -> vector<32x16xf32>
    %375 = vector.extract_strided_slice %268 {offsets = [16, 0], sizes = [16, 64], strides = [1, 1]} : vector<64x64xf32> to vector<16x64xf32>
    %cst_154 = arith.constant dense<0.000000e+00> : vector<32x64xf32>
    %376 = tpu.matmul %374, %375, %cst_154 {dimension_numbers = #tpu.dot_dimension_numbers<[1], [0], [0], [1], [0, 0, 1, 1], [], []>} : vector<32x16xf32>, vector<16x64xf32>, vector<32x64xf32> -> vector<32x64xf32>
    %377 = arith.addf %332, %376 : vector<32x64xf32>
    %c18 = arith.constant 18 : index
    %c0_155 = arith.constant 0 : index
    %c0_156 = arith.constant 0 : index
    %378 = vector.load %arg5[%c18, %c0_155, %c0_156] : memref<24x64x16xf32, #tpu.memory_space<vmem>>, vector<1x64x16xf32>
    %379 = vector.shape_cast %378 : vector<1x64x16xf32> to vector<64x16xf32>
    %c19 = arith.constant 19 : index
    %c0_157 = arith.constant 0 : index
    %c0_158 = arith.constant 0 : index
    %380 = vector.load %arg5[%c19, %c0_157, %c0_158] : memref<24x64x16xf32, #tpu.memory_space<vmem>>, vector<1x64x16xf32>
    %381 = vector.shape_cast %380 : vector<1x64x16xf32> to vector<64x16xf32>
    %c20 = arith.constant 20 : index
    %c0_159 = arith.constant 0 : index
    %c0_160 = arith.constant 0 : index
    %382 = vector.load %arg5[%c20, %c0_159, %c0_160] : memref<24x64x16xf32, #tpu.memory_space<vmem>>, vector<1x64x16xf32>
    %383 = vector.shape_cast %382 : vector<1x64x16xf32> to vector<64x16xf32>
    %cst_161 = arith.constant dense<0.000000e+00> : vector<32x16xf32>
    %384 = tpu.matmul %288, %379, %cst_161 {dimension_numbers = #tpu.dot_dimension_numbers<[1], [0], [0], [1], [0, 0, 1, 1], [], []>} : vector<32x64xf32>, vector<64x16xf32>, vector<32x16xf32> -> vector<32x16xf32>
    %cst_162 = arith.constant dense<0.000000e+00> : vector<32x16xf32>
    %385 = tpu.matmul %288, %381, %cst_162 {dimension_numbers = #tpu.dot_dimension_numbers<[1], [0], [0], [1], [0, 0, 1, 1], [], []>} : vector<32x64xf32>, vector<64x16xf32>, vector<32x16xf32> -> vector<32x16xf32>
    %cst_163 = arith.constant dense<0.000000e+00> : vector<32x16xf32>
    %386 = tpu.matmul %288, %383, %cst_163 {dimension_numbers = #tpu.dot_dimension_numbers<[1], [0], [0], [1], [0, 0, 1, 1], [], []>} : vector<32x64xf32>, vector<64x16xf32>, vector<32x16xf32> -> vector<32x16xf32>
    %387 = vector.extract_strided_slice %384 {offsets = [0, 0], sizes = [16, 16], strides = [1, 1]} : vector<32x16xf32> to vector<16x16xf32>
    %388 = vector.extract_strided_slice %385 {offsets = [0, 0], sizes = [16, 16], strides = [1, 1]} : vector<32x16xf32> to vector<16x16xf32>
    %389 = vector.extract_strided_slice %386 {offsets = [0, 0], sizes = [16, 16], strides = [1, 1]} : vector<32x16xf32> to vector<16x16xf32>
    %cst_164 = arith.constant dense<0.000000e+00> : vector<16x16xf32>
    %390 = tpu.matmul %387, %388, %cst_164 {dimension_numbers = #tpu.dot_dimension_numbers<[1], [1], [0], [0], [0, 0, 1, 0], [], []>} : vector<16x16xf32>, vector<16x16xf32>, vector<16x16xf32> -> vector<16x16xf32>
    %391 = arith.addf %390, %15 : vector<16x16xf32>
    %cst_165 = arith.constant dense<0xFF800000> : vector<16xf32>
    %392 = vector.multi_reduction <maximumf>, %391, %cst_165 [1] : vector<16x16xf32> to vector<16xf32>
    %393 = vector.shape_cast %392 : vector<16xf32> to vector<16x1xf32>
    %394 = vector.broadcast %393 : vector<16x1xf32> to vector<16x16xf32>
    %395 = arith.subf %391, %394 : vector<16x16xf32>
    %396 = math.exp %395 : vector<16x16xf32>
    %cst_166 = arith.constant dense<0.000000e+00> : vector<16xf32>
    %397 = vector.multi_reduction <add>, %396, %cst_166 [1] : vector<16x16xf32> to vector<16xf32>
    %398 = vector.shape_cast %397 : vector<16xf32> to vector<16x1xf32>
    %399 = tpu.reciprocal %398 {approx = true} : vector<16x1xf32> -> vector<16x1xf32>
    %400 = vector.broadcast %399 : vector<16x1xf32> to vector<16x16xf32>
    %401 = arith.mulf %396, %400 : vector<16x16xf32>
    %cst_167 = arith.constant dense<0.000000e+00> : vector<16x16xf32>
    %402 = tpu.matmul %401, %389, %cst_167 {dimension_numbers = #tpu.dot_dimension_numbers<[1], [0], [0], [1], [0, 0, 1, 1], [], []>} : vector<16x16xf32>, vector<16x16xf32>, vector<16x16xf32> -> vector<16x16xf32>
    %403 = vector.extract_strided_slice %384 {offsets = [16, 0], sizes = [16, 16], strides = [1, 1]} : vector<32x16xf32> to vector<16x16xf32>
    %404 = vector.extract_strided_slice %385 {offsets = [16, 0], sizes = [16, 16], strides = [1, 1]} : vector<32x16xf32> to vector<16x16xf32>
    %405 = vector.extract_strided_slice %386 {offsets = [16, 0], sizes = [16, 16], strides = [1, 1]} : vector<32x16xf32> to vector<16x16xf32>
    %cst_168 = arith.constant dense<0.000000e+00> : vector<16x16xf32>
    %406 = tpu.matmul %403, %404, %cst_168 {dimension_numbers = #tpu.dot_dimension_numbers<[1], [1], [0], [0], [0, 0, 1, 0], [], []>} : vector<16x16xf32>, vector<16x16xf32>, vector<16x16xf32> -> vector<16x16xf32>
    %407 = arith.addf %406, %15 : vector<16x16xf32>
    %cst_169 = arith.constant dense<0xFF800000> : vector<16xf32>
    %408 = vector.multi_reduction <maximumf>, %407, %cst_169 [1] : vector<16x16xf32> to vector<16xf32>
    %409 = vector.shape_cast %408 : vector<16xf32> to vector<16x1xf32>
    %410 = vector.broadcast %409 : vector<16x1xf32> to vector<16x16xf32>
    %411 = arith.subf %407, %410 : vector<16x16xf32>
    %412 = math.exp %411 : vector<16x16xf32>
    %cst_170 = arith.constant dense<0.000000e+00> : vector<16xf32>
    %413 = vector.multi_reduction <add>, %412, %cst_170 [1] : vector<16x16xf32> to vector<16xf32>
    %414 = vector.shape_cast %413 : vector<16xf32> to vector<16x1xf32>
    %415 = tpu.reciprocal %414 {approx = true} : vector<16x1xf32> -> vector<16x1xf32>
    %416 = vector.broadcast %415 : vector<16x1xf32> to vector<16x16xf32>
    %417 = arith.mulf %412, %416 : vector<16x16xf32>
    %cst_171 = arith.constant dense<0.000000e+00> : vector<16x16xf32>
    %418 = tpu.matmul %417, %405, %cst_171 {dimension_numbers = #tpu.dot_dimension_numbers<[1], [0], [0], [1], [0, 0, 1, 1], [], []>} : vector<16x16xf32>, vector<16x16xf32>, vector<16x16xf32> -> vector<16x16xf32>
    %419 = tpu.concatenate %402, %418 in 0 : vector<16x16xf32>, vector<16x16xf32> -> vector<32x16xf32>
    %420 = vector.extract_strided_slice %268 {offsets = [32, 0], sizes = [16, 64], strides = [1, 1]} : vector<64x64xf32> to vector<16x64xf32>
    %cst_172 = arith.constant dense<0.000000e+00> : vector<32x64xf32>
    %421 = tpu.matmul %419, %420, %cst_172 {dimension_numbers = #tpu.dot_dimension_numbers<[1], [0], [0], [1], [0, 0, 1, 1], [], []>} : vector<32x16xf32>, vector<16x64xf32>, vector<32x64xf32> -> vector<32x64xf32>
    %422 = arith.addf %377, %421 : vector<32x64xf32>
    %c21 = arith.constant 21 : index
    %c0_173 = arith.constant 0 : index
    %c0_174 = arith.constant 0 : index
    %423 = vector.load %arg5[%c21, %c0_173, %c0_174] : memref<24x64x16xf32, #tpu.memory_space<vmem>>, vector<1x64x16xf32>
    %424 = vector.shape_cast %423 : vector<1x64x16xf32> to vector<64x16xf32>
    %c22 = arith.constant 22 : index
    %c0_175 = arith.constant 0 : index
    %c0_176 = arith.constant 0 : index
    %425 = vector.load %arg5[%c22, %c0_175, %c0_176] : memref<24x64x16xf32, #tpu.memory_space<vmem>>, vector<1x64x16xf32>
    %426 = vector.shape_cast %425 : vector<1x64x16xf32> to vector<64x16xf32>
    %c23 = arith.constant 23 : index
    %c0_177 = arith.constant 0 : index
    %c0_178 = arith.constant 0 : index
    %427 = vector.load %arg5[%c23, %c0_177, %c0_178] : memref<24x64x16xf32, #tpu.memory_space<vmem>>, vector<1x64x16xf32>
    %428 = vector.shape_cast %427 : vector<1x64x16xf32> to vector<64x16xf32>
    %cst_179 = arith.constant dense<0.000000e+00> : vector<32x16xf32>
    %429 = tpu.matmul %288, %424, %cst_179 {dimension_numbers = #tpu.dot_dimension_numbers<[1], [0], [0], [1], [0, 0, 1, 1], [], []>} : vector<32x64xf32>, vector<64x16xf32>, vector<32x16xf32> -> vector<32x16xf32>
    %cst_180 = arith.constant dense<0.000000e+00> : vector<32x16xf32>
    %430 = tpu.matmul %288, %426, %cst_180 {dimension_numbers = #tpu.dot_dimension_numbers<[1], [0], [0], [1], [0, 0, 1, 1], [], []>} : vector<32x64xf32>, vector<64x16xf32>, vector<32x16xf32> -> vector<32x16xf32>
    %cst_181 = arith.constant dense<0.000000e+00> : vector<32x16xf32>
    %431 = tpu.matmul %288, %428, %cst_181 {dimension_numbers = #tpu.dot_dimension_numbers<[1], [0], [0], [1], [0, 0, 1, 1], [], []>} : vector<32x64xf32>, vector<64x16xf32>, vector<32x16xf32> -> vector<32x16xf32>
    %432 = vector.extract_strided_slice %429 {offsets = [0, 0], sizes = [16, 16], strides = [1, 1]} : vector<32x16xf32> to vector<16x16xf32>
    %433 = vector.extract_strided_slice %430 {offsets = [0, 0], sizes = [16, 16], strides = [1, 1]} : vector<32x16xf32> to vector<16x16xf32>
    %434 = vector.extract_strided_slice %431 {offsets = [0, 0], sizes = [16, 16], strides = [1, 1]} : vector<32x16xf32> to vector<16x16xf32>
    %cst_182 = arith.constant dense<0.000000e+00> : vector<16x16xf32>
    %435 = tpu.matmul %432, %433, %cst_182 {dimension_numbers = #tpu.dot_dimension_numbers<[1], [1], [0], [0], [0, 0, 1, 0], [], []>} : vector<16x16xf32>, vector<16x16xf32>, vector<16x16xf32> -> vector<16x16xf32>
    %436 = arith.addf %435, %15 : vector<16x16xf32>
    %cst_183 = arith.constant dense<0xFF800000> : vector<16xf32>
    %437 = vector.multi_reduction <maximumf>, %436, %cst_183 [1] : vector<16x16xf32> to vector<16xf32>
    %438 = vector.shape_cast %437 : vector<16xf32> to vector<16x1xf32>
    %439 = vector.broadcast %438 : vector<16x1xf32> to vector<16x16xf32>
    %440 = arith.subf %436, %439 : vector<16x16xf32>
    %441 = math.exp %440 : vector<16x16xf32>
    %cst_184 = arith.constant dense<0.000000e+00> : vector<16xf32>
    %442 = vector.multi_reduction <add>, %441, %cst_184 [1] : vector<16x16xf32> to vector<16xf32>
    %443 = vector.shape_cast %442 : vector<16xf32> to vector<16x1xf32>
    %444 = tpu.reciprocal %443 {approx = true} : vector<16x1xf32> -> vector<16x1xf32>
    %445 = vector.broadcast %444 : vector<16x1xf32> to vector<16x16xf32>
    %446 = arith.mulf %441, %445 : vector<16x16xf32>
    %cst_185 = arith.constant dense<0.000000e+00> : vector<16x16xf32>
    %447 = tpu.matmul %446, %434, %cst_185 {dimension_numbers = #tpu.dot_dimension_numbers<[1], [0], [0], [1], [0, 0, 1, 1], [], []>} : vector<16x16xf32>, vector<16x16xf32>, vector<16x16xf32> -> vector<16x16xf32>
    %448 = vector.extract_strided_slice %429 {offsets = [16, 0], sizes = [16, 16], strides = [1, 1]} : vector<32x16xf32> to vector<16x16xf32>
    %449 = vector.extract_strided_slice %430 {offsets = [16, 0], sizes = [16, 16], strides = [1, 1]} : vector<32x16xf32> to vector<16x16xf32>
    %450 = vector.extract_strided_slice %431 {offsets = [16, 0], sizes = [16, 16], strides = [1, 1]} : vector<32x16xf32> to vector<16x16xf32>
    %cst_186 = arith.constant dense<0.000000e+00> : vector<16x16xf32>
    %451 = tpu.matmul %448, %449, %cst_186 {dimension_numbers = #tpu.dot_dimension_numbers<[1], [1], [0], [0], [0, 0, 1, 0], [], []>} : vector<16x16xf32>, vector<16x16xf32>, vector<16x16xf32> -> vector<16x16xf32>
    %452 = arith.addf %451, %15 : vector<16x16xf32>
    %cst_187 = arith.constant dense<0xFF800000> : vector<16xf32>
    %453 = vector.multi_reduction <maximumf>, %452, %cst_187 [1] : vector<16x16xf32> to vector<16xf32>
    %454 = vector.shape_cast %453 : vector<16xf32> to vector<16x1xf32>
    %455 = vector.broadcast %454 : vector<16x1xf32> to vector<16x16xf32>
    %456 = arith.subf %452, %455 : vector<16x16xf32>
    %457 = math.exp %456 : vector<16x16xf32>
    %cst_188 = arith.constant dense<0.000000e+00> : vector<16xf32>
    %458 = vector.multi_reduction <add>, %457, %cst_188 [1] : vector<16x16xf32> to vector<16xf32>
    %459 = vector.shape_cast %458 : vector<16xf32> to vector<16x1xf32>
    %460 = tpu.reciprocal %459 {approx = true} : vector<16x1xf32> -> vector<16x1xf32>
    %461 = vector.broadcast %460 : vector<16x1xf32> to vector<16x16xf32>
    %462 = arith.mulf %457, %461 : vector<16x16xf32>
    %cst_189 = arith.constant dense<0.000000e+00> : vector<16x16xf32>
    %463 = tpu.matmul %462, %450, %cst_189 {dimension_numbers = #tpu.dot_dimension_numbers<[1], [0], [0], [1], [0, 0, 1, 1], [], []>} : vector<16x16xf32>, vector<16x16xf32>, vector<16x16xf32> -> vector<16x16xf32>
    %464 = tpu.concatenate %447, %463 in 0 : vector<16x16xf32>, vector<16x16xf32> -> vector<32x16xf32>
    %465 = vector.extract_strided_slice %268 {offsets = [48, 0], sizes = [16, 64], strides = [1, 1]} : vector<64x64xf32> to vector<16x64xf32>
    %cst_190 = arith.constant dense<0.000000e+00> : vector<32x64xf32>
    %466 = tpu.matmul %464, %465, %cst_190 {dimension_numbers = #tpu.dot_dimension_numbers<[1], [0], [0], [1], [0, 0, 1, 1], [], []>} : vector<32x16xf32>, vector<16x64xf32>, vector<32x64xf32> -> vector<32x64xf32>
    %467 = arith.addf %422, %466 : vector<32x64xf32>
    %468 = arith.addf %260, %467 : vector<32x64xf32>
    %469 = vector.broadcast %265 : vector<1x64xf32> to vector<32x64xf32>
    %470 = arith.addf %468, %469 : vector<32x64xf32>
    %cst_191 = arith.constant dense<0.000000e+00> : vector<32xf32>
    %471 = vector.multi_reduction <add>, %470, %cst_191 [1] : vector<32x64xf32> to vector<32xf32>
    %472 = vector.shape_cast %471 : vector<32xf32> to vector<32x1xf32>
    %cst_192 = arith.constant 6.400000e+01 : f32
    %473 = vector.broadcast %cst_192 : f32 to vector<32x1xf32>
    %474 = arith.divf %472, %473 : vector<32x1xf32>
    %475 = vector.broadcast %474 : vector<32x1xf32> to vector<32x64xf32>
    %476 = arith.subf %470, %475 : vector<32x64xf32>
    %477 = arith.mulf %476, %476 : vector<32x64xf32>
    %cst_193 = arith.constant dense<0.000000e+00> : vector<32xf32>
    %478 = vector.multi_reduction <add>, %477, %cst_193 [1] : vector<32x64xf32> to vector<32xf32>
    %479 = vector.shape_cast %478 : vector<32xf32> to vector<32x1xf32>
    %cst_194 = arith.constant 6.400000e+01 : f32
    %480 = vector.broadcast %cst_194 : f32 to vector<32x1xf32>
    %481 = arith.divf %479, %480 : vector<32x1xf32>
    %cst_195 = arith.constant 9.99999974E-6 : f32
    %482 = vector.broadcast %cst_195 : f32 to vector<32x1xf32>
    %483 = arith.addf %481, %482 : vector<32x1xf32>
    %484 = math.rsqrt %483 : vector<32x1xf32>
    %485 = vector.broadcast %484 : vector<32x1xf32> to vector<32x64xf32>
    %486 = arith.mulf %476, %485 : vector<32x64xf32>
    %487 = vector.broadcast %263 : vector<1x64xf32> to vector<32x64xf32>
    %488 = arith.mulf %486, %487 : vector<32x64xf32>
    %489 = vector.broadcast %264 : vector<1x64xf32> to vector<32x64xf32>
    %490 = arith.addf %488, %489 : vector<32x64xf32>
    %c1_196 = arith.constant 1 : index
    %c0_197 = arith.constant 0 : index
    %c0_198 = arith.constant 0 : index
    %491 = vector.load %arg7[%c1_196, %c0_197, %c0_198] : memref<2x64x256xf32, #tpu.memory_space<vmem>>, vector<1x64x256xf32>
    %492 = vector.shape_cast %491 : vector<1x64x256xf32> to vector<64x256xf32>
    %cst_199 = arith.constant dense<0.000000e+00> : vector<32x256xf32>
    %493 = tpu.matmul %490, %492, %cst_199 {dimension_numbers = #tpu.dot_dimension_numbers<[1], [0], [0], [1], [0, 0, 1, 1], [], []>} : vector<32x64xf32>, vector<64x256xf32>, vector<32x256xf32> -> vector<32x256xf32>
    %c1_200 = arith.constant 1 : index
    %c0_201 = arith.constant 0 : index
    %c0_202 = arith.constant 0 : index
    %494 = vector.load %arg8[%c1_200, %c0_201, %c0_202] : memref<2x1x256xf32, #tpu.memory_space<vmem>>, vector<1x1x256xf32>
    %495 = vector.shape_cast %494 : vector<1x1x256xf32> to vector<1x256xf32>
    %496 = vector.broadcast %495 : vector<1x256xf32> to vector<32x256xf32>
    %497 = arith.addf %493, %496 : vector<32x256xf32>
    %cst_203 = arith.constant 0.000000e+00 : f32
    %498 = vector.broadcast %cst_203 : f32 to vector<32x256xf32>
    %499 = arith.maximumf %497, %498 : vector<32x256xf32>
    %c1_204 = arith.constant 1 : index
    %c0_205 = arith.constant 0 : index
    %c0_206 = arith.constant 0 : index
    %500 = vector.load %arg9[%c1_204, %c0_205, %c0_206] : memref<2x256x64xf32, #tpu.memory_space<vmem>>, vector<1x256x64xf32>
    %501 = vector.shape_cast %500 : vector<1x256x64xf32> to vector<256x64xf32>
    %cst_207 = arith.constant dense<0.000000e+00> : vector<32x64xf32>
    %502 = tpu.matmul %499, %501, %cst_207 {dimension_numbers = #tpu.dot_dimension_numbers<[1], [0], [0], [1], [0, 0, 1, 1], [], []>} : vector<32x256xf32>, vector<256x64xf32>, vector<32x64xf32> -> vector<32x64xf32>
    %503 = vector.broadcast %266 : vector<1x64xf32> to vector<32x64xf32>
    %504 = arith.addf %502, %503 : vector<32x64xf32>
    %505 = arith.addf %470, %504 : vector<32x64xf32>
    %c0_208 = arith.constant 0 : index
    %c0_209 = arith.constant 0 : index
    %506 = vector.load %arg10[%c0_208, %c0_209] : memref<2x64xf32, #tpu.memory_space<vmem>>, vector<1x64xf32>
    %c1_210 = arith.constant 1 : index
    %c0_211 = arith.constant 0 : index
    %507 = vector.load %arg10[%c1_210, %c0_211] : memref<2x64xf32, #tpu.memory_space<vmem>>, vector<1x64xf32>
    %cst_212 = arith.constant dense<0.000000e+00> : vector<32xf32>
    %508 = vector.multi_reduction <add>, %505, %cst_212 [1] : vector<32x64xf32> to vector<32xf32>
    %509 = vector.shape_cast %508 : vector<32xf32> to vector<32x1xf32>
    %cst_213 = arith.constant 6.400000e+01 : f32
    %510 = vector.broadcast %cst_213 : f32 to vector<32x1xf32>
    %511 = arith.divf %509, %510 : vector<32x1xf32>
    %512 = vector.broadcast %511 : vector<32x1xf32> to vector<32x64xf32>
    %513 = arith.subf %505, %512 : vector<32x64xf32>
    %514 = arith.mulf %513, %513 : vector<32x64xf32>
    %cst_214 = arith.constant dense<0.000000e+00> : vector<32xf32>
    %515 = vector.multi_reduction <add>, %514, %cst_214 [1] : vector<32x64xf32> to vector<32xf32>
    %516 = vector.shape_cast %515 : vector<32xf32> to vector<32x1xf32>
    %cst_215 = arith.constant 6.400000e+01 : f32
    %517 = vector.broadcast %cst_215 : f32 to vector<32x1xf32>
    %518 = arith.divf %516, %517 : vector<32x1xf32>
    %cst_216 = arith.constant 9.99999974E-6 : f32
    %519 = vector.broadcast %cst_216 : f32 to vector<32x1xf32>
    %520 = arith.addf %518, %519 : vector<32x1xf32>
    %521 = math.rsqrt %520 : vector<32x1xf32>
    %522 = vector.broadcast %521 : vector<32x1xf32> to vector<32x64xf32>
    %523 = arith.mulf %513, %522 : vector<32x64xf32>
    %524 = vector.broadcast %506 : vector<1x64xf32> to vector<32x64xf32>
    %525 = arith.mulf %523, %524 : vector<32x64xf32>
    %526 = vector.broadcast %507 : vector<1x64xf32> to vector<32x64xf32>
    %527 = arith.addf %525, %526 : vector<32x64xf32>
    %c0_217 = arith.constant 0 : index
    %c0_218 = arith.constant 0 : index
    %528 = vector.load %arg11[%c0_217, %c0_218] : memref<64x128xf32, #tpu.memory_space<vmem>>, vector<64x128xf32>
    %cst_219 = arith.constant dense<0.000000e+00> : vector<32x128xf32>
    %529 = tpu.matmul %527, %528, %cst_219 {dimension_numbers = #tpu.dot_dimension_numbers<[1], [0], [0], [1], [0, 0, 1, 1], [], []>} : vector<32x64xf32>, vector<64x128xf32>, vector<32x128xf32> -> vector<32x128xf32>
    %c0_220 = arith.constant 0 : index
    %c0_221 = arith.constant 0 : index
    %530 = vector.load %arg12[%c0_220, %c0_221] : memref<1x128xf32, #tpu.memory_space<vmem>>, vector<1x128xf32>
    %531 = vector.broadcast %530 : vector<1x128xf32> to vector<32x128xf32>
    %532 = arith.addf %529, %531 : vector<32x128xf32>
    %c0_222 = arith.constant 0 : index
    %c0_223 = arith.constant 0 : index
    %533 = vector.load %arg13[%c0_222, %c0_223] : memref<32x128xf32, #tpu.memory_space<vmem>>, vector<32x128xf32>
    tpu.vector_store %arg13[%c0_222, %c0_223], %532 {strides = array<i32>} : memref<32x128xf32, #tpu.memory_space<vmem>>, vector<32x128xf32>,
    return
  }
  func.func @transform_0(%arg0: i32) -> (i32, i32) {
    %c0_i32 = arith.constant 0 : i32
    %c0_i32_0 = arith.constant 0 : i32
    return %arg0, %c0_i32 : i32, i32
  }
  func.func @transform_1(%arg0: i32) -> (i32, i32) {
    %c0_i32 = arith.constant 0 : i32
    %c0_i32_0 = arith.constant 0 : i32
    return %arg0, %c0_i32 : i32, i32
  }
  func.func @transform_2(%arg0: i32) -> (i32, i32) {
    %c0_i32 = arith.constant 0 : i32
    %c0_i32_0 = arith.constant 0 : i32
    %c0_i32_1 = arith.constant 0 : i32
    return %c0_i32, %c0_i32_0 : i32, i32
  }
  func.func @transform_3(%arg0: i32) -> (i32, i32, i32) {
    %c0_i32 = arith.constant 0 : i32
    %c0_i32_0 = arith.constant 0 : i32
    %c0_i32_1 = arith.constant 0 : i32
    %c0_i32_2 = arith.constant 0 : i32
    return %c0_i32, %c0_i32_0, %c0_i32_1 : i32, i32, i32
  }
  func.func @transform_4(%arg0: i32) -> (i32, i32, i32) {
    %c0_i32 = arith.constant 0 : i32
    %c0_i32_0 = arith.constant 0 : i32
    %c0_i32_1 = arith.constant 0 : i32
    %c0_i32_2 = arith.constant 0 : i32
    return %c0_i32, %c0_i32_0, %c0_i32_1 : i32, i32, i32
  }
  func.func @transform_5(%arg0: i32) -> (i32, i32, i32) {
    %c0_i32 = arith.constant 0 : i32
    %c0_i32_0 = arith.constant 0 : i32
    %c0_i32_1 = arith.constant 0 : i32
    %c0_i32_2 = arith.constant 0 : i32
    return %c0_i32, %c0_i32_0, %c0_i32_1 : i32, i32, i32
  }
  func.func @transform_6(%arg0: i32) -> (i32, i32, i32) {
    %c0_i32 = arith.constant 0 : i32
    %c0_i32_0 = arith.constant 0 : i32
    %c0_i32_1 = arith.constant 0 : i32
    %c0_i32_2 = arith.constant 0 : i32
    return %c0_i32, %c0_i32_0, %c0_i32_1 : i32, i32, i32
  }
  func.func @transform_7(%arg0: i32) -> (i32, i32, i32) {
    %c0_i32 = arith.constant 0 : i32
    %c0_i32_0 = arith.constant 0 : i32
    %c0_i32_1 = arith.constant 0 : i32
    %c0_i32_2 = arith.constant 0 : i32
    return %c0_i32, %c0_i32_0, %c0_i32_1 : i32, i32, i32
  }
  func.func @transform_8(%arg0: i32) -> (i32, i32, i32) {
    %c0_i32 = arith.constant 0 : i32
    %c0_i32_0 = arith.constant 0 : i32
    %c0_i32_1 = arith.constant 0 : i32
    %c0_i32_2 = arith.constant 0 : i32
    return %c0_i32, %c0_i32_0, %c0_i32_1 : i32, i32, i32
  }
  func.func @transform_9(%arg0: i32) -> (i32, i32) {
    %c0_i32 = arith.constant 0 : i32
    %c0_i32_0 = arith.constant 0 : i32
    %c0_i32_1 = arith.constant 0 : i32
    return %c0_i32, %c0_i32_0 : i32, i32
  }
  func.func @transform_10(%arg0: i32) -> (i32, i32) {
    %c0_i32 = arith.constant 0 : i32
    %c0_i32_0 = arith.constant 0 : i32
    %c0_i32_1 = arith.constant 0 : i32
    return %c0_i32, %c0_i32_0 : i32, i32
  }
  func.func @transform_11(%arg0: i32) -> (i32, i32) {
    %c0_i32 = arith.constant 0 : i32
    %c0_i32_0 = arith.constant 0 : i32
    %c0_i32_1 = arith.constant 0 : i32
    return %c0_i32, %c0_i32_0 : i32, i32
  }
  func.func @transform_12(%arg0: i32) -> (i32, i32) {
    %c0_i32 = arith.constant 0 : i32
    %c0_i32_0 = arith.constant 0 : i32
    return %arg0, %c0_i32 : i32, i32
  }
}

</mosaic_0001>

<bundles_post_ra>
// kernel: bigram_lm_forward.1
= control target key start
LH: loop header
LB: loop body
LE: loop exit
PB: predicated region body
PF: predicated region fallthrough
CT: control target
= control target key end

     0   :  { %v9493_v2 = vmov 0   ;;  %s11512_s0 = inlined_call_operand.vmem [shape: s32[32,1], index: 0, kind: input, shape index: {}]   ;;  %s11513_s1 = inlined_call_operand.vmem [shape: f32[32,64], index: 1, kind: input, shape index: {}]   ;;  %s11514_s2 = inlined_call_operand.vmem [shape: f32[128,64], index: 2, kind: input, shape index: {}]   ;;  %s11515_s3 = inlined_call_operand.vmem [shape: f32[2,4,64], index: 3, kind: input, shape index: {}]   ;;  %s11516_s4 = inlined_call_operand.vmem [shape: f32[24,64,16], index: 4, kind: input, shape index: {}]   ;;  %s11517_s5 = inlined_call_operand.vmem [shape: f32[2,64,64], index: 5, kind: input, shape index: {}]   ;;  %s11518_s6 = inlined_call_operand.vmem [shape: f32[2,64,256], index: 6, kind: input, shape index: {}]   ;;  %s11519_s7 = inlined_call_operand.vmem [shape: f32[2,1,256], index: 7, kind: input, shape index: {}]   ;;  %s11520_s8 = inlined_call_operand.vmem [shape: f32[2,256,64], index: 8, kind: input, shape index: {}]   ;;  %s11521_s9 = inlined_call_operand.vmem [shape: f32[2,64], index: 9, kind: input, shape index: {}]   ;;  %s11522_s10 = inlined_call_operand.vmem [shape: f32[64,128], index: 10, kind: input, shape index: {}]   ;;  %s11523_s11 = inlined_call_operand.vmem [shape: f32[1,128], index: 11, kind: input, shape index: {}]   ;;  %s11524_s12 = inlined_call_operand.hbm [shape: f32[32,128], index: 12, kind: output, shape index: {}]  }
   0x1   :  { %v42_v0 = vld [vmem:[%s11512_s0] sm:$0xff]  ;;  %v44_v1 = vld [vmem:[%s11512_s0 + $0x10] sm:$0xff]  ;;  %9299 = vset.pattern.permute.xlu0 %v9493_v2  ;;  %9300 = vset.pattern.permute.xlu1 %v9493_v2  ;;  %v87_v3 = vld [vmem:[%s11514_s2 + $0x78] sm:$0xff] }
   0x2   :  { %49 = vperm.xlu0 %9299, %v42_v0   ;;  %55 = vperm.xlu1 %9300, %v44_v1   ;;  %v86_v4 = vld [vmem:[%s11514_s2 + $0x70] sm:$0xff]  ;;  %v43_v5 = vld [vmem:[%s11512_s0 + $0x8] sm:$0xff]  ;;  %v45_v6 = vld [vmem:[%s11512_s0 + $0x18] sm:$0xff] }
   0x3   :  { %8400 = vmatprep.subr.mxu0 %v87_v3  ;;  %v85_v7 = vld [vmem:[%s11514_s2 + $0x68] sm:$0xff]  ;;  %v84_v8 = vld [vmem:[%s11514_s2 + $0x60] sm:$0xff] }
   0x4   :  { %8401 = vmatpush3.msra.mxu0 %v87_v3 }
   0x5   :  { %8402 = vmatprep.subr.mxu0 %v86_v4 }
   0x6   :  { %52 = vperm.xlu0 %9299, %v43_v5   ;;  %58 = vperm.xlu1 %9300, %v45_v6  }
   0x7   :  { %8403 = vmatpush3.msra.mxu0 %v86_v4 }
   0x8   :  { %17 = vsyncpa [#allocation3], 0  ;;  %8404 = vmatprep.subr.mxu0 %v85_v7  ;;  %v83_v9 = vld [vmem:[%s11514_s2 + $0x58] sm:$0xff]  ;;  %v82_v10 = vld [vmem:[%s11514_s2 + $0x50] sm:$0xff]  ;;  %v46_v21 = vlaneseq  ;;  %v9494_v25 = vmov 1.0   ;;  %vm193_vm4 = vcmask 523264  }
   0x9   :  { %8405 = vmatpush3.msra.mxu0 %v85_v7  ;;  %v81_v11 = vld [vmem:[%s11514_s2 + $0x48] sm:$0xff]  ;;  %v80_v12 = vld [vmem:[%s11514_s2 + $0x40] sm:$0xff]  ;;  %v79_v13 = vld [vmem:[%s11514_s2 + $0x38] sm:$0xff]  ;;  %vm556_vm5 = vcmask 130048   ;;  %s9497_s0 = smov [#allocation2]  }
   0xa   :  { %8406 = vmatprep.subr.mxu0 %v84_v8  ;;  %v78_v14 = vld [vmem:[%s11514_s2 + $0x30] sm:$0xff]  ;;  %v77_v15 = vld [vmem:[%s11514_s2 + $0x28] sm:$0xff]  ;;  %v76_v16 = vld [vmem:[%s11514_s2 + $0x20] sm:$0xff]  ;;  %v9626_v22 = vand.u32 127, %v46_v21  ;;  %s7316_s21 = sshll.u32 %s9497_s0, 4  ;;  %s7317_s21 = int_to_ptr.vmem [resolvable:$true] %s7316_s21 }
   0xb   :  { %8407 = vmatpush3.msra.mxu0 %v84_v8  ;;  %v75_v17 = vld [vmem:[%s11514_s2 + $0x18] sm:$0xff]  ;;  %v74_v18 = vld [vmem:[%s11514_s2 + $0x10] sm:$0xff]  ;;  %v73_v19 = vld [vmem:[%s11514_s2 + $0x8] sm:$0xff]  ;;  %p9476_p1 = scmp.lt.s32.totalorder %s7317_s21, %s7317_s21 }
   0xc   :  { %8408 = vmatprep.subr.mxu0 %v83_v9  ;;  %v72_v20 = vld [vmem:[%s11514_s2] sm:$0xff]  ;;  %v89_v28 = vld [vmem:[%s11513_s1 + $0x8] sm:$0xff]  ;;  %v90_v36 = vld [vmem:[%s11513_s1 + $0x10] sm:$0xff] }
   0xd   :  { %8409 = vmatpush3.msra.mxu0 %v83_v9  ;;  %v88_v30 = vld [vmem:[%s11513_s1] sm:$0xff]  ;;  %v91_v38 = vld [vmem:[%s11513_s1 + $0x18] sm:$0xff]  ;;  %v269_v2 = vld [vmem:[%s11516_s4 + $0x30] sm:$0xff] }
   0xe   :  { %8410 = vmatprep.subr.mxu0 %v82_v10  ;;  %v270_v0 = vld [vmem:[%s11516_s4 + $0x38] sm:$0xff]  ;;  %v7349_v3 = vld [vmem:[%s11516_s4 + $0xb0] sm:$0xff]  ;;  %v268_v4 = vld [vmem:[%s11516_s4 + $0x28] sm:$0xff] }
   0xf   :  { %8411 = vmatpush3.msra.mxu0 %v82_v10  ;;  %8438 = vmatprep.subr.mxu1 %v270_v0  ;;  %v7350_v1 = vld [vmem:[%s11516_s4 + $0xb8] sm:$0xff]  ;;  %v7348_v5 = vld [vmem:[%s11516_s4 + $0xa8] sm:$0xff]  ;;  %v267_v6 = vld [vmem:[%s11516_s4 + $0x20] sm:$0xff] }
  0x10   :  { %8412 = vmatprep.subr.mxu0 %v81_v11  ;;  %8439 = vmatpush3.msra.mxu1 %v270_v0  ;;  %v7347_v7 = vld [vmem:[%s11516_s4 + $0xa0] sm:$0xff]  ;;  %v266_v8 = vld [vmem:[%s11516_s4 + $0x18] sm:$0xff]  ;;  %v265_v10 = vld [vmem:[%s11516_s4 + $0x10] sm:$0xff] }
  0x11   :  { %8413 = vmatpush3.msra.mxu0 %v81_v11  ;;  %8440 = vmatprep.subr.mxu1 %v269_v2  ;;  %v7346_v9 = vld [vmem:[%s11516_s4 + $0x98] sm:$0xff]  ;;  %v7345_v11 = vld [vmem:[%s11516_s4 + $0x90] sm:$0xff] }
  0x12   :  { %8414 = vmatprep.subr.mxu0 %v80_v12  ;;  %8441 = vmatpush3.msra.mxu1 %v269_v2 }
  0x13   :  { %8415 = vmatpush3.msra.mxu0 %v80_v12  ;;  %8442 = vmatprep.subr.mxu1 %v268_v4  ;;  %v264_v12 = vld [vmem:[%s11516_s4 + $0x8] sm:$0xff] }
  0x14   :  { %8416 = vmatprep.subr.mxu0 %v79_v13  ;;  %8443 = vmatpush3.msra.mxu1 %v268_v4 }
  0x15   :  { %8417 = vmatpush3.msra.mxu0 %v79_v13  ;;  %8444 = vmatprep.subr.mxu1 %v267_v6  ;;  %v7344_v13 = vld [vmem:[%s11516_s4 + $0x88] sm:$0xff] }
  0x16   :  { %8418 = vmatprep.subr.mxu0 %v78_v14  ;;  %8445 = vmatpush3.msra.mxu1 %v267_v6 }
  0x17   :  { %8419 = vmatpush3.msra.mxu0 %v78_v14  ;;  %8446 = vmatprep.subr.mxu1 %v266_v8  ;;  %v263_v14 = vld [vmem:[%s11516_s4] sm:$0xff] }
  0x18   :  { %8420 = vmatprep.subr.mxu0 %v77_v15  ;;  %8447 = vmatpush3.msra.mxu1 %v266_v8 }
  0x19   :  { %8421 = vmatpush3.msra.mxu0 %v77_v15  ;;  %8448 = vmatprep.subr.mxu1 %v265_v10  ;;  %v7343_v15 = vld [vmem:[%s11516_s4 + $0x80] sm:$0xff] }
  0x1a   :  { %8422 = vmatprep.subr.mxu0 %v76_v16  ;;  %8449 = vmatpush3.msra.mxu1 %v265_v10 }
  0x1b   :  { %8423 = vmatpush3.msra.mxu0 %v76_v16  ;;  %8450 = vmatprep.subr.mxu1 %v264_v12  ;;  %v7342_v16 = vld [vmem:[%s11516_s4 + $0x78] sm:$0xff] }
  0x1c   :  { %8424 = vmatprep.subr.mxu0 %v75_v17  ;;  %8451 = vmatpush3.msra.mxu1 %v264_v12 }
  0x1d   :  { %8425 = vmatpush3.msra.mxu0 %v75_v17  ;;  %8452 = vmatprep.subr.mxu1 %v263_v14 }
  0x1e   :  { %8426 = vmatprep.subr.mxu0 %v74_v18  ;;  %8453 = vmatpush3.msra.mxu1 %v263_v14 }
  0x1f   :  { %8427 = vmatpush3.msra.mxu0 %v74_v18  ;;  %8460 = vmatprep.subr.mxu1 %v7342_v16 }
  0x20   :  { %8428 = vmatprep.subr.mxu0 %v73_v19 }
  0x21   :  { %8429 = vmatpush3.msra.mxu0 %v73_v19 }
  0x22   :  { %8430 = vmatprep.subr.mxu0 %v72_v20 }
  0x23   :  { %8431 = vmatpush3.msra.mxu0 %v72_v20 }
  0x24   :  { %8482 = vmatprep.subr.mxu0 %v7350_v1 }
  0x7d   :  { %v50_v23 = vpop.permute.xlu0 %49  ;;  %v56_v24 = vpop.permute.xlu1 %55 }
  0x7e   :  { %vm60_vm0 = vcmp.eq.s32.totalorder %v9626_v22, %v50_v23  ;;  %vm62_vm1 = vcmp.eq.s32.totalorder %v9626_v22, %v56_v24 }
  0x7f   :  { %8432 = vmatprep.mubr.msk.f32.mxu0 %vm60_vm0, %v9494_v25 }
  0x81   :  { %v53_v26 = vpop.permute.xlu0 %52  ;;  %v59_v27 = vpop.permute.xlu1 %58 }
  0x82   :  { %vm61_vm2 = vcmp.eq.s32.totalorder %v9626_v22, %v53_v26  ;;  %vm63_vm3 = vcmp.eq.s32.totalorder %v9626_v22, %v59_v27 }
  0x83   :  { %8433 = vmatmul.mubr.msk.f32.vlgmr.msra.gmra.mxu0 %vm61_vm2, %v9494_v25 }
  0x84   :  { %8435 = vmatprep.mubr.msk.f32.mxu0 %vm62_vm1, %v9494_v25  ;;  %8483 = vmatpush3.msra.mxu0 %v7350_v1 }
  0x85   :  { %8484 = vmatprep.subr.mxu0 %v7349_v3 }
  0x86   :  { %8485 = vmatpush3.msra.mxu0 %v7349_v3 }
  0x87   :  { %8436 = vmatmul.mubr.msk.f32.gmra.mxu0 %vm63_vm3, %v9494_v25  ;;  %8486 = vmatprep.subr.mxu0 %v7348_v5 }
  0x88   :  { %8487 = vmatpush3.msra.mxu0 %v7348_v5 }
  0x89   :  { %8488 = vmatprep.subr.mxu0 %v7347_v7 }
  0x8a   :  { %8489 = vmatpush3.msra.mxu0 %v7347_v7 }
  0x8b   :  { %8490 = vmatprep.subr.mxu0 %v7346_v9 }
  0x8c   :  { %8491 = vmatpush3.msra.mxu0 %v7346_v9 }
  0x8d   :  { %8492 = vmatprep.subr.mxu0 %v7345_v11 }
  0x8e   :  { %8493 = vmatpush3.msra.mxu0 %v7345_v11  ;;  %v9495_v11 = vmov -1e+30  }
  0x8f   :  { %8494 = vmatprep.subr.mxu0 %v7344_v13 }
  0x90   :  { %8495 = vmatpush3.msra.mxu0 %v7344_v13 }
  0x91   :  { %8496 = vmatprep.subr.mxu0 %v7343_v15 }
  0x92   :  { %8497 = vmatpush3.msra.mxu0 %v7343_v15 }
 0x143   :  { %v8434_v29 = vpop.f32.mrf.mxu0 }
 0x144   :  { %v9638_v31 = vadd.f32 %v8434_v29, %v89_v28  ;;  %v9736_v28 = vshrl.u32 %v46_v21, 7 }
 0x145   :  { %v158_v32 = vpop.f32.mrf.mxu0 }
 0x146   :  { %v9640_v33 = vadd.f32 %v158_v32, %v88_v30  ;;  %v197_v34 = vsel %vm193_vm4, %v9638_v31, 0.0  ;;  %v179_v10 = vadd.s32 8, %v9736_v28  ;;  %vm180_vm7 = vcmp.le.s32.totalorder %v9626_v22, %v9736_v28 }
 0x147   :  { %198 = vadd.xlane.f32.xlu1 %v197_v34  ;;  %v8437_v35 = vpop.f32.mrf.mxu0  ;;  %v9739_v34 = vsub.s32 0, %v9736_v28  ;;  %v9833_v13 = vsel %vm180_vm7, 0.0, %v9495_v11 }
 0x148   :  { %v194_v37 = vsel %vm193_vm4, %v9640_v33, 0.0  ;;  %v9654_v41 = vadd.f32 %v8437_v35, %v91_v38  ;;  %v184_v35 = vld [vmem:[%s11515_s3] sm:$0xf]  ;;  %v9748_v38 = vsub.s32 1, %v9736_v28  ;;  %vm181_vm6 = vcmp.le.s32.totalorder %v9626_v22, %v179_v10 }
 0x149   :  { %v168_v39 = vpop.f32.mrf.mxu0  ;;  %195 = vadd.xlane.f32.xlu0 %v194_v37  ;;  %v9745_v37 = vrot.slane %v184_v35, %v9739_v34  ;;  %v9831_v12 = vsel %vm181_vm6, 0.0, %v9495_v11 }
 0x14a   :  { %v9652_v40 = vadd.f32 %v168_v39, %v90_v36  ;;  %v203_v43 = vsel %vm193_vm4, %v9654_v41, 0.0 }
 0x14c   :  { %v200_v42 = vsel %vm193_vm4, %v9652_v40, 0.0 }
 0x14d   :  { %201 = vadd.xlane.f32.xlu0 %v200_v42 }
 0x151   :  { %204 = vadd.xlane.f32.xlu0 %v203_v43  ;;  %v9753_v43 = vrot.slane %v184_v35, %v9748_v38 }
 0x1d0   :  { %v199_v44 = vpop.xlane.xlu1 %198 }
 0x1d1   :  { %v208_v45 = vmul.f32 0.015625, %v199_v44 }
 0x1d2   :  { %v196_v46 = vpop.xlane.xlu0 %195 }
 0x1d3   :  { %v9661_v47 = vsub.f32 %v9638_v31, %v208_v45  ;;  %v207_v48 = vmul.f32 0.015625, %v196_v46 }
 0x1d5   :  { %v9664_v49 = vsub.f32 %v9640_v33, %v207_v48  ;;  %v216_v50 = vmul.f32 %v9661_v47, %v9661_v47 }
 0x1d6   :  { %v202_v51 = vpop.xlane.xlu0 %201 }
 0x1d7   :  { %v209_v52 = vmul.f32 0.015625, %v202_v51  ;;  %v222_v53 = vsel %vm193_vm4, %v216_v50, 0.0  ;;  %v215_v54 = vmul.f32 %v9664_v49, %v9664_v49 }
 0x1d8   :  { %223 = vadd.xlane.f32.xlu0 %v222_v53 }
 0x1d9   :  { %v9672_v55 = vsub.f32 %v9652_v40, %v209_v52  ;;  %v219_v56 = vsel %vm193_vm4, %v215_v54, 0.0 }
 0x1da   :  { %220 = vadd.xlane.f32.xlu1 %v219_v56  ;;  %v205_v57 = vpop.xlane.xlu0 %204 }
 0x1db   :  { %v210_v58 = vmul.f32 0.015625, %v205_v57  ;;  %v217_v59 = vmul.f32 %v9672_v55, %v9672_v55  ;;  %v7339_v57 = vld [vmem:[%s11516_s4 + $0x60] sm:$0xff] }
 0x1dd   :  { %v9678_v60 = vsub.f32 %v9654_v41, %v210_v58  ;;  %v225_v61 = vsel %vm193_vm4, %v217_v59, 0.0  ;;  %v7338_v59 = vld [vmem:[%s11516_s4 + $0x58] sm:$0xff] }
 0x1de   :  { %226 = vadd.xlane.f32.xlu1 %v225_v61  ;;  %v7336_v61 = vld [vmem:[%s11516_s4 + $0x48] sm:$0xff] }
 0x1df   :  { %v218_v62 = vmul.f32 %v9678_v60, %v9678_v60 }
 0x1e1   :  { %v228_v63 = vsel %vm193_vm4, %v218_v62, 0.0  ;;  %v7335_v62 = vld [vmem:[%s11516_s4 + $0x40] sm:$0xff] }
 0x1e2   :  { %229 = vadd.xlane.f32.xlu0 %v228_v63 }
 0x261   :  { %v224_v17 = vpop.xlane.xlu0 %223 }
 0x262   :  { %v232_v18 = vmul.f32 0.015625, %v224_v17 }
 0x263   :  { %v221_v19 = vpop.xlane.xlu1 %220 }
 0x264   :  { %v236_v20 = vadd.f32 1e-05, %v232_v18  ;;  %v231_v23 = vmul.f32 0.015625, %v221_v19 }
 0x266   :  { %9301 = vrsqrt.f32 %v236_v20  ;;  %v235_v24 = vadd.f32 1e-05, %v231_v23 }
 0x267   :  { %v227_v25 = vpop.xlane.xlu1 %226 }
 0x268   :  { %9303 = vrsqrt.f32 %v235_v24  ;;  %v233_v26 = vmul.f32 0.015625, %v227_v25 }
 0x26a   :  { %v237_v27 = vadd.f32 1e-05, %v233_v26 }
 0x26b   :  { %v230_v29 = vpop.xlane.xlu0 %229 }
 0x26c   :  { %9305 = vrsqrt.f32 %v237_v27  ;;  %v234_v30 = vmul.f32 0.015625, %v230_v29 }
 0x26e   :  { %v238_v32 = vadd.f32 1e-05, %v234_v30 }
 0x270   :  { %9307 = vrsqrt.f32 %v238_v32 }
 0x273   :  { %v9302_v36 = vpop.eup %9301 }
 0x274   :  { %v244_v21 = vmul.f32 %v9302_v36, %v9661_v47 }
 0x275   :  { %v9304_v39 = vpop.eup %9303 }
 0x276   :  { %v243_v42 = vmul.f32 %v9304_v39, %v9664_v49  ;;  %v252_v44 = vmul.f32 %v9745_v37, %v244_v21  ;;  %v7341_v49 = vld [vmem:[%s11516_s4 + $0x70] sm:$0xff] }
 0x278   :  { %v251_v45 = vmul.f32 %v9745_v37, %v243_v42  ;;  %v9762_v51 = vadd.f32 %v9753_v43, %v252_v44 }
 0x279   :  { %v9306_v46 = vpop.eup %9305 }
 0x27a   :  { %v9758_v48 = vadd.f32 %v9753_v43, %v251_v45  ;;  %v245_v50 = vmul.f32 %v9306_v46, %v9672_v55  ;;  %v7340_v55 = vld [vmem:[%s11516_s4 + $0x68] sm:$0xff]  ;;  %v7382_v46 = vld [vmem:[%s11516_s4 + $0xf8] sm:$0xff] }
 0x27c   :  { %v253_v47 = vmul.f32 %v9745_v37, %v245_v50  ;;  %8454 = vmatprep.mubr.msk.f32.mxu1 %vm193_vm4, %v9758_v48  ;;  %8498 = vmatprep.mubr.msk.f32.mxu0 %vm193_vm4, %v9758_v48  ;;  %v7381_v50 = vld [vmem:[%s11516_s4 + $0xf0] sm:$0xff] }
 0x27d   :  { %v9308_v52 = vpop.eup %9307  ;;  %8455 = vmatmul.mubr.msk.f32.vlgmr.msra.gmra.mxu1 %vm193_vm4, %v9762_v51  ;;  %8499 = vmatmul.mubr.msk.f32.vlgmr.msra.gmra.mxu0 %vm193_vm4, %v9762_v51 }
 0x27e   :  { %v9777_v53 = vadd.f32 %v9753_v43, %v253_v47  ;;  %v246_v54 = vmul.f32 %v9308_v52, %v9678_v60  ;;  %8461 = vmatpush3.msra.mxu1 %v7342_v16  ;;  %v7337_v60 = vld [vmem:[%s11516_s4 + $0x50] sm:$0xff]  ;;  %v7380_v47 = vld [vmem:[%s11516_s4 + $0xe8] sm:$0xff]  ;;  %v7378_v52 = vld [vmem:[%s11516_s4 + $0xd8] sm:$0xff] }
 0x27f   :  { %8462 = vmatprep.subr.mxu1 %v7341_v49 }
 0x280   :  { %v254_v56 = vmul.f32 %v9745_v37, %v246_v54  ;;  %8463 = vmatpush3.msra.mxu1 %v7341_v49  ;;  %8457 = vmatprep.mubr.msk.f32.mxu1 %vm193_vm4, %v9777_v53  ;;  %v7379_v49 = vld [vmem:[%s11516_s4 + $0xe0] sm:$0xff]  ;;  %v7377_v54 = vld [vmem:[%s11516_s4 + $0xd0] sm:$0xff] }
 0x281   :  { %8464 = vmatprep.subr.mxu1 %v7340_v55  ;;  %8501 = vmatprep.mubr.msk.f32.mxu0 %vm193_vm4, %v9777_v53 }
 0x282   :  { %v9792_v58 = vadd.f32 %v9753_v43, %v254_v56  ;;  %8465 = vmatpush3.msra.mxu1 %v7340_v55  ;;  %v7376_v55 = vld [vmem:[%s11516_s4 + $0xc8] sm:$0xff]  ;;  %v7375_v56 = vld [vmem:[%s11516_s4 + $0xc0] sm:$0xff] }
 0x283   :  { %8466 = vmatprep.subr.mxu1 %v7339_v57 }
 0x284   :  { %8467 = vmatpush3.msra.mxu1 %v7339_v57  ;;  %8502 = vmatmul.mubr.msk.f32.gmra.mxu0 %vm193_vm4, %v9792_v58  ;;  %v7398_v57 = vld [vmem:[%s11516_s4 + $0x178] sm:$0xff] }
 0x285   :  { %8458 = vmatmul.mubr.msk.f32.gmra.mxu1 %vm193_vm4, %v9792_v58  ;;  %8468 = vmatprep.subr.mxu1 %v7338_v59 }
 0x286   :  { %8469 = vmatpush3.msra.mxu1 %v7338_v59  ;;  %8476 = vmatprep.mubr.msk.f32.mxu1 %vm193_vm4, %v9758_v48  ;;  %v7397_v59 = vld [vmem:[%s11516_s4 + $0x170] sm:$0xff] }
 0x287   :  { %8470 = vmatprep.subr.mxu1 %v7337_v60 }
 0x288   :  { %8471 = vmatpush3.msra.mxu1 %v7337_v60  ;;  %v7396_v60 = vld [vmem:[%s11516_s4 + $0x168] sm:$0xff] }
 0x289   :  { %8472 = vmatprep.subr.mxu1 %v7336_v61 }
 0x28a   :  { %8473 = vmatpush3.msra.mxu1 %v7336_v61  ;;  %v7395_v61 = vld [vmem:[%s11516_s4 + $0x160] sm:$0xff] }
 0x28b   :  { %8474 = vmatprep.subr.mxu1 %v7335_v62 }
 0x28c   :  { %8475 = vmatpush3.msra.mxu1 %v7335_v62  ;;  %v7394_v62 = vld [vmem:[%s11516_s4 + $0x158] sm:$0xff] }
 0x28d   :  { %8477 = vmatmul.mubr.msk.f32.vlgmr.msra.gmra.mxu1 %vm193_vm4, %v9762_v51 }
 0x28e   :  { %8479 = vmatprep.mubr.msk.f32.mxu1 %vm193_vm4, %v9777_v53 }
 0x291   :  { %8480 = vmatmul.mubr.msk.f32.gmra.mxu1 %vm193_vm4, %v9792_v58 }
 0x33d   :  { %v8456_v63 = vpop.f32.mrf.mxu1  ;;  %v8500_v0 = vpop.f32.mrf.mxu0 }
 0x33e   :  { %8511 = vmatprep.subr.mxu1 %v8500_v0 }
 0x33f   :  { %v367_v1 = vpop.f32.mrf.mxu1  ;;  %v537_v2 = vpop.f32.mrf.mxu0  ;;  %8512 = vmatpush3.msra.mxu1 %v8500_v0  ;;  %v7392_v0 = vld [vmem:[%s11516_s4 + $0x148] sm:$0xff] }
 0x340   :  { %8508 = vmatprep.mubr.msk.f32.mxu0 %vm556_vm5, %v367_v1  ;;  %8513 = vmatprep.subr.mxu1 %v537_v2  ;;  %v7391_v1 = vld [vmem:[%s11516_s4 + $0x140] sm:$0xff] }
 0x341   :  { %8514 = vmatpush3.msra.mxu1 %v537_v2 }
 0x344   :  { %v8503_v8 = vpop.f32.mrf.mxu0 }
 0x345   :  { %v9819_v3 = vpop.f32.mrf.mxu1 }
 0x346   :  { %v547_v9 = vpop.f32.mrf.mxu0 }
 0x347   :  { %v377_v4 = vpop.f32.mrf.mxu1 }
 0x34d   :  { %v8478_v5 = vpop.f32.mrf.mxu1 }
 0x34e   :  { %8504 = vmatprep.subr.msk.mxu0 %vm556_vm5, %v8478_v5 }
 0x34f   :  { %v452_v6 = vpop.f32.mrf.mxu1  ;;  %8505 = vmatpush3.xpose.msk.msra.mxu0 %vm556_vm5, %v8478_v5 }
 0x350   :  { %8506 = vmatprep.subr.msk.mxu0 %vm556_vm5, %v452_v6 }
 0x351   :  { %v8481_v7 = vpop.f32.mrf.mxu1 }
 0x352   :  { %8518 = vmatprep.subr.msk.mxu1 %vm556_vm5, %v8481_v7 }
 0x353   :  { %8507 = vmatpush3.xpose.msk.msra.mxu0 %vm556_vm5, %v452_v6  ;;  %v462_v45 = vpop.f32.mrf.mxu1 }
 0x354   :  { %8525 = vmatprep.subr.mxu0 %v8503_v8 }
 0x356   :  { %8509 = vmatmul.mubr.msk.f32.vlgmr.msra.gmra.mxu0 %vm556_vm5, %v8456_v63  ;;  %v7393_v63 = vld [vmem:[%s11516_s4 + $0x150] sm:$0xff] }
 0x357   :  { %8526 = vmatpush3.msra.mxu0 %v8503_v8 }
 0x358   :  { %8527 = vmatprep.subr.mxu0 %v547_v9 }
 0x359   :  { %8528 = vmatpush3.msra.mxu0 %v547_v9 }
 0x416   :  { %v8510_v14 = vpop.f32.mrf.mxu0 }
 0x417   :  { %v641_v15 = vadd.f32 %v8510_v14, %v9831_v12 }
 0x418   :  { %v635_v16 = vpop.f32.mrf.mxu0 }
 0x419   :  { %v636_v17 = vadd.f32 %v635_v16, %v9833_v13  ;;  %v647_v18 = vsel %vm556_vm5, %v641_v15, -inf }
 0x41a   :  { %648 = vmax.xlane.f32.xlu0 %v647_v18 }
 0x41b   :  { %v644_v19 = vsel %vm556_vm5, %v636_v17, -inf }
 0x41c   :  { %645 = vmax.xlane.f32.xlu1 %v644_v19 }
 0x4a3   :  { %v649_v20 = vpop.xlane.xlu0 %648 }
 0x4a4   :  { %v651_v23 = vsub.f32 %v641_v15, %v649_v20 }
 0x4a5   :  { %v646_v22 = vpop.xlane.xlu1 %645 }
 0x4a6   :  { %v654_v24 = vmul.f32 1.442695, %v651_v23  ;;  %v650_v25 = vsub.f32 %v636_v17, %v646_v22 }
 0x4a8   :  { %9309 = vpow2.f32 %v654_v24  ;;  %v652_v26 = vmul.f32 1.442695, %v650_v25 }
 0x4aa   :  { %9311 = vpow2.f32 %v652_v26 }
 0x4b5   :  { %v9310_v27 = vpop.eup %9309 }
 0x4b6   :  { %v659_v29 = vsel %vm556_vm5, %v9310_v27, 0.0 }
 0x4b7   :  { %v9312_v30 = vpop.eup %9311  ;;  %660 = vadd.xlane.f32.xlu0 %v659_v29 }
 0x4b8   :  { %v656_v32 = vsel %vm556_vm5, %v9312_v30, 0.0 }
 0x4b9   :  { %657 = vadd.xlane.f32.xlu1 %v656_v32 }
 0x540   :  { %v661_v35 = vpop.xlane.xlu0 %660 }
 0x541   :  { %9313 = vrcp.f32 %v661_v35  ;;  %v7390_v35 = vld [vmem:[%s11516_s4 + $0x138] sm:$0xff] }
 0x542   :  { %v658_v36 = vpop.xlane.xlu1 %657  ;;  %8554 = vmatprep.subr.mxu0 %v7390_v35 }
 0x543   :  { %9315 = vrcp.f32 %v658_v36 }
 0x54e   :  { %v9314_v21 = vpop.eup %9313 }
 0x54f   :  { %v665_v44 = vmul.f32 %v9314_v21, %v9310_v27 }
 0x550   :  { %v9316_v39 = vpop.eup %9315 }
 0x551   :  { %v664_v42 = vmul.f32 %v9316_v39, %v9312_v30 }
 0x553   :  { %8515 = vmatprep.mubr.msk.f32.mxu1 %vm556_vm5, %v664_v42 }
 0x554   :  { %8516 = vmatmul.mubr.msk.f32.vlgmr.msra.gmra.mxu1 %vm556_vm5, %v665_v44 }
 0x555   :  { %8519 = vmatpush3.xpose.msk.msra.mxu1 %vm556_vm5, %v8481_v7  ;;  %8522 = vmatprep.mubr.msk.f32.mxu1 %vm556_vm5, %v377_v4 }
 0x556   :  { %8520 = vmatprep.subr.msk.mxu1 %vm556_vm5, %v462_v45 }
 0x559   :  { %8521 = vmatpush3.xpose.msk.msra.mxu1 %vm556_vm5, %v462_v45 }
 0x55a   :  { %8532 = vmatprep.subr.mxu1 %v7382_v46 }
 0x55c   :  { %8523 = vmatmul.mubr.msk.f32.vlgmr.msra.gmra.mxu1 %vm556_vm5, %v9819_v3 }
 0x55d   :  { %8533 = vmatpush3.msra.mxu1 %v7382_v46  ;;  %8548 = vmatprep.mubr.msk.f32.mxu1 %vm193_vm4, %v9758_v48  ;;  %v7389_v46 = vld [vmem:[%s11516_s4 + $0x130] sm:$0xff] }
 0x55e   :  { %8534 = vmatprep.subr.mxu1 %v7381_v50 }
 0x55f   :  { %8535 = vmatpush3.msra.mxu1 %v7381_v50  ;;  %v7388_v50 = vld [vmem:[%s11516_s4 + $0x128] sm:$0xff] }
 0x560   :  { %8536 = vmatprep.subr.mxu1 %v7380_v47 }
 0x561   :  { %8537 = vmatpush3.msra.mxu1 %v7380_v47  ;;  %v7387_v47 = vld [vmem:[%s11516_s4 + $0x120] sm:$0xff] }
 0x562   :  { %8538 = vmatprep.subr.mxu1 %v7379_v49 }
 0x563   :  { %8539 = vmatpush3.msra.mxu1 %v7379_v49  ;;  %v7386_v49 = vld [vmem:[%s11516_s4 + $0x118] sm:$0xff] }
 0x564   :  { %8540 = vmatprep.subr.mxu1 %v7378_v52 }
 0x565   :  { %8541 = vmatpush3.msra.mxu1 %v7378_v52  ;;  %v7385_v52 = vld [vmem:[%s11516_s4 + $0x110] sm:$0xff] }
 0x566   :  { %8542 = vmatprep.subr.mxu1 %v7377_v54 }
 0x567   :  { %8543 = vmatpush3.msra.mxu1 %v7377_v54  ;;  %v7384_v54 = vld [vmem:[%s11516_s4 + $0x108] sm:$0xff] }
 0x568   :  { %8544 = vmatprep.subr.mxu1 %v7376_v55 }
 0x569   :  { %8545 = vmatpush3.msra.mxu1 %v7376_v55  ;;  %v7383_v55 = vld [vmem:[%s11516_s4 + $0x100] sm:$0xff] }
 0x56a   :  { %8546 = vmatprep.subr.mxu1 %v7375_v56 }
 0x56b   :  { %8547 = vmatpush3.msra.mxu1 %v7375_v56 }
 0x56c   :  { %8549 = vmatmul.mubr.msk.f32.vlgmr.msra.gmra.mxu1 %vm193_vm4, %v9762_v51  ;;  %8576 = vmatprep.subr.mxu1 %v7398_v57 }
 0x56d   :  { %8551 = vmatprep.mubr.msk.f32.mxu1 %vm193_vm4, %v9777_v53  ;;  %8577 = vmatpush3.msra.mxu1 %v7398_v57 }
 0x56e   :  { %8578 = vmatprep.subr.mxu1 %v7397_v59 }
 0x56f   :  { %8579 = vmatpush3.msra.mxu1 %v7397_v59 }
 0x570   :  { %8552 = vmatmul.mubr.msk.f32.gmra.mxu1 %vm193_vm4, %v9792_v58  ;;  %8580 = vmatprep.subr.mxu1 %v7396_v60 }
 0x571   :  { %8581 = vmatpush3.msra.mxu1 %v7396_v60  ;;  %8592 = vmatprep.mubr.msk.f32.mxu1 %vm193_vm4, %v9758_v48 }
 0x572   :  { %8582 = vmatprep.subr.mxu1 %v7395_v61 }
 0x573   :  { %8583 = vmatpush3.msra.mxu1 %v7395_v61 }
 0x574   :  { %8584 = vmatprep.subr.mxu1 %v7394_v62 }
 0x575   :  { %8585 = vmatpush3.msra.mxu1 %v7394_v62 }
 0x576   :  { %8586 = vmatprep.subr.mxu1 %v7393_v63 }
 0x577   :  { %8587 = vmatpush3.msra.mxu1 %v7393_v63 }
 0x578   :  { %8588 = vmatprep.subr.mxu1 %v7392_v0 }
 0x579   :  { %8589 = vmatpush3.msra.mxu1 %v7392_v0 }
 0x57a   :  { %8590 = vmatprep.subr.mxu1 %v7391_v1 }
 0x57b   :  { %8591 = vmatpush3.msra.mxu1 %v7391_v1 }
 0x57c   :  { %8593 = vmatmul.mubr.msk.f32.vlgmr.msra.gmra.mxu1 %vm193_vm4, %v9762_v51 }
 0x57d   :  { %8595 = vmatprep.mubr.msk.f32.mxu1 %vm193_vm4, %v9777_v53 }
 0x580   :  { %8596 = vmatmul.mubr.msk.f32.gmra.mxu1 %vm193_vm4, %v9792_v58 }
 0x614   :  { %v9913_v2 = vpop.f32.mrf.mxu1 }
 0x616   :  { %v9915_v3 = vpop.f32.mrf.mxu1 }
 0x61c   :  { %v8524_v4 = vpop.f32.mrf.mxu1 }
 0x61d   :  { %v831_v5 = vadd.f32 %v8524_v4, %v9831_v12 }
 0x61e   :  { %v825_v6 = vpop.f32.mrf.mxu1 }
 0x61f   :  { %v826_v7 = vadd.f32 %v825_v6, %v9833_v13  ;;  %v837_v8 = vsel %vm556_vm5, %v831_v5, -inf }
 0x620   :  { %838 = vmax.xlane.f32.xlu0 %v837_v8 }
 0x621   :  { %v834_v9 = vsel %vm556_vm5, %v826_v7, -inf }
 0x622   :  { %835 = vmax.xlane.f32.xlu1 %v834_v9 }
 0x62c   :  { %v9921_v10 = vpop.f32.mrf.mxu1 }
 0x62e   :  { %v9923_v11 = vpop.f32.mrf.mxu1 }
 0x630   :  { %v9925_v14 = vpop.f32.mrf.mxu1 }
 0x632   :  { %v9927_v15 = vpop.f32.mrf.mxu1 }
 0x63c   :  { %v9929_v16 = vpop.f32.mrf.mxu1 }
 0x63e   :  { %v9931_v17 = vpop.f32.mrf.mxu1 }
 0x640   :  { %v8597_v18 = vpop.f32.mrf.mxu1 }
 0x641   :  { %8619 = vmatprep.subr.mxu1 %v8597_v18 }
 0x642   :  { %v1210_v19 = vpop.f32.mrf.mxu1  ;;  %8620 = vmatpush3.msra.mxu1 %v8597_v18 }
 0x643   :  { %8621 = vmatprep.subr.mxu1 %v1210_v19 }
 0x644   :  { %8622 = vmatpush3.msra.mxu1 %v1210_v19 }
 0x6a9   :  { %v839_v20 = vpop.xlane.xlu0 %838 }
 0x6aa   :  { %v841_v23 = vsub.f32 %v831_v5, %v839_v20 }
 0x6ab   :  { %v836_v22 = vpop.xlane.xlu1 %835 }
 0x6ac   :  { %v844_v24 = vmul.f32 1.442695, %v841_v23  ;;  %v840_v25 = vsub.f32 %v826_v7, %v836_v22 }
 0x6ae   :  { %9317 = vpow2.f32 %v844_v24  ;;  %v842_v26 = vmul.f32 1.442695, %v840_v25 }
 0x6b0   :  { %9319 = vpow2.f32 %v842_v26 }
 0x6bb   :  { %v9318_v27 = vpop.eup %9317 }
 0x6bc   :  { %v849_v29 = vsel %vm556_vm5, %v9318_v27, 0.0 }
 0x6bd   :  { %v9320_v30 = vpop.eup %9319  ;;  %850 = vadd.xlane.f32.xlu0 %v849_v29  ;;  %v188_v29 = vld [vmem:[%s11517_s5 + $0x18] sm:$0xff] }
 0x6be   :  { %v846_v32 = vsel %vm556_vm5, %v9320_v30, 0.0 }
 0x6bf   :  { %847 = vadd.xlane.f32.xlu1 %v846_v32 }
 0x746   :  { %v851_v36 = vpop.xlane.xlu0 %850 }
 0x747   :  { %9321 = vrcp.f32 %v851_v36 }
 0x748   :  { %v848_v21 = vpop.xlane.xlu1 %847 }
 0x749   :  { %9323 = vrcp.f32 %v848_v21 }
 0x754   :  { %v9322_v39 = vpop.eup %9321 }
 0x755   :  { %v855_v45 = vmul.f32 %v9322_v39, %v9318_v27 }
 0x756   :  { %v9324_v42 = vpop.eup %9323 }
 0x757   :  { %v854_v44 = vmul.f32 %v9324_v42, %v9320_v30  ;;  %v187_v30 = vld [vmem:[%s11517_s5 + $0x10] sm:$0xff] }
 0x759   :  { %8529 = vmatprep.mubr.msk.f32.mxu0 %vm556_vm5, %v854_v44 }
 0x75a   :  { %8530 = vmatmul.mubr.msk.f32.vlgmr.msra.gmra.mxu0 %vm556_vm5, %v855_v45 }
 0x75b   :  { %8555 = vmatpush3.msra.mxu0 %v7390_v35  ;;  %8570 = vmatprep.mubr.msk.f32.mxu0 %vm193_vm4, %v9758_v48 }
 0x75c   :  { %8556 = vmatprep.subr.mxu0 %v7389_v46 }
 0x75d   :  { %8557 = vmatpush3.msra.mxu0 %v7389_v46 }
 0x75e   :  { %8558 = vmatprep.subr.mxu0 %v7388_v50 }
 0x75f   :  { %8559 = vmatpush3.msra.mxu0 %v7388_v50 }
 0x760   :  { %8560 = vmatprep.subr.mxu0 %v7387_v47 }
 0x761   :  { %8561 = vmatpush3.msra.mxu0 %v7387_v47 }
 0x762   :  { %8562 = vmatprep.subr.mxu0 %v7386_v49 }
 0x763   :  { %8563 = vmatpush3.msra.mxu0 %v7386_v49 }
 0x764   :  { %8564 = vmatprep.subr.mxu0 %v7385_v52 }
 0x765   :  { %8565 = vmatpush3.msra.mxu0 %v7385_v52 }
 0x766   :  { %8566 = vmatprep.subr.mxu0 %v7384_v54 }
 0x767   :  { %8567 = vmatpush3.msra.mxu0 %v7384_v54 }
 0x768   :  { %8568 = vmatprep.subr.mxu0 %v7383_v55 }
 0x769   :  { %8569 = vmatpush3.msra.mxu0 %v7383_v55 }
 0x76a   :  { %8571 = vmatmul.mubr.msk.f32.vlgmr.msra.gmra.mxu0 %vm193_vm4, %v9762_v51 }
 0x76b   :  { %8573 = vmatprep.mubr.msk.f32.mxu0 %vm193_vm4, %v9777_v53 }
 0x76e   :  { %8574 = vmatmul.mubr.msk.f32.gmra.mxu0 %vm193_vm4, %v9792_v58 }
 0x76f   :  { %8602 = vmatprep.mubr.msk.f32.mxu0 %vm556_vm5, %v9923_v11 }
 0x81a   :  { %v9971_v56 = vpop.f32.mrf.mxu0 }
 0x81c   :  { %v9973_v57 = vpop.f32.mrf.mxu0 }
 0x82a   :  { %v8572_v59 = vpop.f32.mrf.mxu0 }
 0x82b   :  { %8598 = vmatprep.subr.msk.mxu0 %vm556_vm5, %v8572_v59 }
 0x82c   :  { %v1115_v60 = vpop.f32.mrf.mxu0  ;;  %8599 = vmatpush3.xpose.msk.msra.mxu0 %vm556_vm5, %v8572_v59 }
 0x82d   :  { %8600 = vmatprep.subr.msk.mxu0 %vm556_vm5, %v1115_v60 }
 0x82e   :  { %v8575_v61 = vpop.f32.mrf.mxu0 }
 0x830   :  { %8601 = vmatpush3.xpose.msk.msra.mxu0 %vm556_vm5, %v1115_v60  ;;  %v1125_v62 = vpop.f32.mrf.mxu0  ;;  %v186_v60 = vld [vmem:[%s11517_s5 + $0x8] sm:$0xff] }
 0x831   :  { %8605 = vmatprep.subr.mxu0 %v9929_v16  ;;  %8636 = vmatprep.subr.mxu1 %v186_v60 }
 0x833   :  { %8603 = vmatmul.mubr.msk.f32.vlgmr.msra.gmra.mxu0 %vm556_vm5, %v9921_v10 }
 0x834   :  { %8606 = vmatpush3.msra.mxu0 %v9929_v16 }
 0x835   :  { %8607 = vmatprep.subr.mxu0 %v9931_v17 }
 0x836   :  { %8608 = vmatpush3.msra.mxu0 %v9931_v17 }
 0x837   :  { %8612 = vmatprep.subr.msk.mxu0 %vm556_vm5, %v8575_v61 }
 0x8f3   :  { %v8604_v63 = vpop.f32.mrf.mxu0 }
 0x8f4   :  { %v1303_v0 = vadd.f32 %v8604_v63, %v9831_v12  ;;  %v7436_v63 = vld [vmem:[%s11516_s4 + $0x1a8] sm:$0xff] }
 0x8f5   :  { %v1297_v1 = vpop.f32.mrf.mxu0 }
 0x8f6   :  { %v1298_v4 = vadd.f32 %v1297_v1, %v9833_v13  ;;  %v1309_v5 = vsel %vm556_vm5, %v1303_v0, -inf  ;;  %v7434_v1 = vld [vmem:[%s11516_s4 + $0x198] sm:$0xff] }
 0x8f7   :  { %1310 = vmax.xlane.f32.xlu0 %v1309_v5 }
 0x8f8   :  { %v1306_v6 = vsel %vm556_vm5, %v1298_v4, -inf }
 0x8f9   :  { %1307 = vmax.xlane.f32.xlu1 %v1306_v6 }
 0x980   :  { %v1311_v7 = vpop.xlane.xlu0 %1310 }
 0x981   :  { %v1313_v8 = vsub.f32 %v1303_v0, %v1311_v7  ;;  %v7435_v0 = vld [vmem:[%s11516_s4 + $0x1a0] sm:$0xff] }
 0x982   :  { %v1308_v9 = vpop.xlane.xlu1 %1307 }
 0x983   :  { %v1316_v10 = vmul.f32 1.442695, %v1313_v8  ;;  %v1312_v11 = vsub.f32 %v1298_v4, %v1308_v9 }
 0x985   :  { %9325 = vpow2.f32 %v1316_v10  ;;  %v1314_v16 = vmul.f32 1.442695, %v1312_v11  ;;  %v185_v10 = vld [vmem:[%s11517_s5] sm:$0xff]  ;;  %v7446_v11 = vld [vmem:[%s11516_s4 + $0x1f8] sm:$0xff] }
 0x987   :  { %9327 = vpow2.f32 %v1314_v16  ;;  %v7445_v16 = vld [vmem:[%s11516_s4 + $0x1f0] sm:$0xff] }
 0x992   :  { %v9326_v17 = vpop.eup %9325 }
 0x993   :  { %v1321_v18 = vsel %vm556_vm5, %v9326_v17, 0.0 }
 0x994   :  { %v9328_v19 = vpop.eup %9327  ;;  %1322 = vadd.xlane.f32.xlu0 %v1321_v18  ;;  %v7439_v18 = vld [vmem:[%s11516_s4 + $0x1c0] sm:$0xff] }
 0x995   :  { %v1318_v20 = vsel %vm556_vm5, %v9328_v19, 0.0 }
 0x996   :  { %1319 = vadd.xlane.f32.xlu1 %v1318_v20  ;;  %v7432_v20 = vld [vmem:[%s11516_s4 + $0x188] sm:$0xff] }
 0xa1d   :  { %v1323_v23 = vpop.xlane.xlu0 %1322 }
 0xa1e   :  { %9329 = vrcp.f32 %v1323_v23  ;;  %v7431_v23 = vld [vmem:[%s11516_s4 + $0x180] sm:$0xff] }
 0xa1f   :  { %v1320_v22 = vpop.xlane.xlu1 %1319 }
 0xa20   :  { %9331 = vrcp.f32 %v1320_v22  ;;  %v7454_v22 = vld [vmem:[%s11516_s4 + $0x238] sm:$0xff] }
 0xa2b   :  { %v9330_v24 = vpop.eup %9329 }
 0xa2c   :  { %v1327_v27 = vmul.f32 %v9330_v24, %v9326_v17  ;;  %v7443_v17 = vld [vmem:[%s11516_s4 + $0x1e0] sm:$0xff] }
 0xa2d   :  { %v9332_v25 = vpop.eup %9331 }
 0xa2e   :  { %v1326_v26 = vmul.f32 %v9332_v25, %v9328_v19  ;;  %v7433_v19 = vld [vmem:[%s11516_s4 + $0x190] sm:$0xff] }
 0xa30   :  { %8609 = vmatprep.mubr.msk.f32.mxu0 %vm556_vm5, %v1326_v26 }
 0xa31   :  { %8610 = vmatmul.mubr.msk.f32.vlgmr.msra.gmra.mxu0 %vm556_vm5, %v1327_v27  ;;  %v7453_v27 = vld [vmem:[%s11516_s4 + $0x230] sm:$0xff] }
 0xa32   :  { %8613 = vmatpush3.xpose.msk.msra.mxu0 %vm556_vm5, %v8575_v61  ;;  %8616 = vmatprep.mubr.msk.f32.mxu0 %vm556_vm5, %v9927_v15  ;;  %v7438_v61 = vld [vmem:[%s11516_s4 + $0x1b8] sm:$0xff] }
 0xa33   :  { %8614 = vmatprep.subr.msk.mxu0 %vm556_vm5, %v1125_v62 }
 0xa36   :  { %8615 = vmatpush3.xpose.msk.msra.mxu0 %vm556_vm5, %v1125_v62  ;;  %v7437_v62 = vld [vmem:[%s11516_s4 + $0x1b0] sm:$0xff] }
 0xa37   :  { %8626 = vmatprep.subr.mxu0 %v188_v29 }
 0xa39   :  { %8617 = vmatmul.mubr.msk.f32.vlgmr.msra.gmra.mxu0 %vm556_vm5, %v9925_v14 }
 0xa3a   :  { %8627 = vmatpush3.msra.mxu0 %v188_v29  ;;  %v7452_v29 = vld [vmem:[%s11516_s4 + $0x228] sm:$0xff] }
 0xa3b   :  { %8628 = vmatprep.subr.mxu0 %v187_v30 }
 0xa3c   :  { %8629 = vmatpush3.msra.mxu0 %v187_v30 }
 0xa3d   :  { %8646 = vmatprep.subr.mxu0 %v7438_v61 }
 0xaf1   :  { %v8611_v15 = vpop.f32.mrf.mxu0 }
 0xaf3   :  { %v1400_v32 = vpop.f32.mrf.mxu0 }
 0xaf4   :  { %8630 = vmatprep.mubr.msk.f32.mxu0 %vm556_vm5, %v1400_v32  ;;  %v7450_v32 = vld [vmem:[%s11516_s4 + $0x218] sm:$0xff] }
 0xaf5   :  { %8631 = vmatmul.mubr.msk.f32.vlgmr.msra.gmra.mxu0 %vm556_vm5, %v8611_v15  ;;  %v7451_v15 = vld [vmem:[%s11516_s4 + $0x220] sm:$0xff] }
 0xaf6   :  { %8647 = vmatpush3.msra.mxu0 %v7438_v61 }
 0xaf7   :  { %8648 = vmatprep.subr.mxu0 %v7437_v62 }
 0xaf8   :  { %8649 = vmatpush3.msra.mxu0 %v7437_v62 }
 0xaf9   :  { %v8618_v35 = vpop.f32.mrf.mxu0  ;;  %8650 = vmatprep.subr.mxu0 %v7436_v63 }
 0xafa   :  { %v1493_v14 = vadd.f32 %v8618_v35, %v9831_v12  ;;  %8651 = vmatpush3.msra.mxu0 %v7436_v63 }
 0xafb   :  { %v1487_v36 = vpop.f32.mrf.mxu0  ;;  %8652 = vmatprep.subr.mxu0 %v7435_v0 }
 0xafc   :  { %v1488_v21 = vadd.f32 %v1487_v36, %v9833_v13  ;;  %v1499_v39 = vsel %vm556_vm5, %v1493_v14, -inf  ;;  %8653 = vmatpush3.msra.mxu0 %v7435_v0  ;;  %v7448_v36 = vld [vmem:[%s11516_s4 + $0x208] sm:$0xff] }
 0xafd   :  { %1500 = vmax.xlane.f32.xlu0 %v1499_v39  ;;  %8654 = vmatprep.subr.mxu0 %v7434_v1  ;;  %v7447_v39 = vld [vmem:[%s11516_s4 + $0x200] sm:$0xff] }
 0xafe   :  { %v1496_v42 = vsel %vm556_vm5, %v1488_v21, -inf  ;;  %8655 = vmatpush3.msra.mxu0 %v7434_v1 }
 0xaff   :  { %1497 = vmax.xlane.f32.xlu1 %v1496_v42  ;;  %8656 = vmatprep.subr.mxu0 %v7433_v19 }
 0xb00   :  { %8657 = vmatpush3.msra.mxu0 %v7433_v19 }
 0xb01   :  { %8658 = vmatprep.subr.mxu0 %v7432_v20 }
 0xb02   :  { %8659 = vmatpush3.msra.mxu0 %v7432_v20 }
 0xb03   :  { %8660 = vmatprep.subr.mxu0 %v7431_v23 }
 0xb04   :  { %8661 = vmatpush3.msra.mxu0 %v7431_v23 }
 0xb05   :  { %8690 = vmatprep.subr.mxu0 %v7454_v22 }
 0xb86   :  { %v1501_v44 = vpop.xlane.xlu0 %1500 }
 0xb87   :  { %v1503_v45 = vsub.f32 %v1493_v14, %v1501_v44  ;;  %v7449_v14 = vld [vmem:[%s11516_s4 + $0x210] sm:$0xff] }
 0xb88   :  { %v1498_v46 = vpop.xlane.xlu1 %1497 }
 0xb89   :  { %v1506_v50 = vmul.f32 1.442695, %v1503_v45  ;;  %v1502_v47 = vsub.f32 %v1488_v21, %v1498_v46 }
 0xb8b   :  { %9333 = vpow2.f32 %v1506_v50  ;;  %v1504_v49 = vmul.f32 1.442695, %v1502_v47 }
 0xb8d   :  { %9335 = vpow2.f32 %v1504_v49 }
 0xb98   :  { %v9334_v52 = vpop.eup %9333 }
 0xb99   :  { %v1511_v54 = vsel %vm556_vm5, %v9334_v52, 0.0 }
 0xb9a   :  { %v9336_v55 = vpop.eup %9335  ;;  %1512 = vadd.xlane.f32.xlu0 %v1511_v54 }
 0xb9b   :  { %v1508_v59 = vsel %vm556_vm5, %v9336_v55, 0.0 }
 0xb9c   :  { %1509 = vadd.xlane.f32.xlu1 %v1508_v59 }
 0xbb5   :  { %v10141_v45 = vpop.f32.mrf.mxu0 }
 0xbb7   :  { %v10143_v46 = vpop.f32.mrf.mxu0 }
 0xc23   :  { %v1513_v4 = vpop.xlane.xlu0 %1512 }
 0xc24   :  { %9337 = vrcp.f32 %v1513_v4 }
 0xc25   :  { %v1510_v5 = vpop.xlane.xlu1 %1509 }
 0xc26   :  { %9339 = vrcp.f32 %v1510_v5 }
 0xc31   :  { %v9338_v6 = vpop.eup %9337 }
 0xc32   :  { %v1517_v9 = vmul.f32 %v9338_v6, %v9334_v52 }
 0xc33   :  { %v9340_v7 = vpop.eup %9339 }
 0xc34   :  { %v1516_v8 = vmul.f32 %v9340_v7, %v9336_v55 }
 0xc36   :  { %8623 = vmatprep.mubr.msk.f32.mxu1 %vm556_vm5, %v1516_v8 }
 0xc37   :  { %8624 = vmatmul.mubr.msk.f32.vlgmr.msra.gmra.mxu1 %vm556_vm5, %v1517_v9 }
 0xc38   :  { %8637 = vmatpush3.msra.mxu1 %v186_v60  ;;  %8640 = vmatprep.mubr.msk.f32.mxu1 %vm556_vm5, %v9915_v3  ;;  %v7444_v3 = vld [vmem:[%s11516_s4 + $0x1e8] sm:$0xff] }
 0xc39   :  { %8638 = vmatprep.subr.mxu1 %v185_v10 }
 0xc3a   :  { %8639 = vmatpush3.msra.mxu1 %v185_v10 }
 0xc3b   :  { %8668 = vmatprep.subr.mxu1 %v7446_v11  ;;  %8641 = vmatmul.mubr.msk.f32.vlgmr.msra.gmra.mxu1 %vm556_vm5, %v9913_v2  ;;  %v7442_v2 = vld [vmem:[%s11516_s4 + $0x1d8] sm:$0xff] }
 0xc3c   :  { %8669 = vmatpush3.msra.mxu1 %v7446_v11  ;;  %8643 = vmatprep.mubr.msk.f32.mxu1 %vm556_vm5, %v9973_v57  ;;  %v7441_v57 = vld [vmem:[%s11516_s4 + $0x1d0] sm:$0xff] }
 0xc3d   :  { %8670 = vmatprep.subr.mxu1 %v7445_v16 }
 0xc3e   :  { %8671 = vmatpush3.msra.mxu1 %v7445_v16 }
 0xc3f   :  { %8672 = vmatprep.subr.mxu1 %v7444_v3  ;;  %8644 = vmatmul.mubr.msk.f32.gmra.mxu1 %vm556_vm5, %v9971_v56  ;;  %v7440_v56 = vld [vmem:[%s11516_s4 + $0x1c8] sm:$0xff] }
 0xc40   :  { %8673 = vmatpush3.msra.mxu1 %v7444_v3  ;;  %8684 = vmatprep.mubr.msk.f32.mxu1 %vm193_vm4, %v9758_v48 }
 0xc41   :  { %8674 = vmatprep.subr.mxu1 %v7443_v17 }
 0xc42   :  { %8675 = vmatpush3.msra.mxu1 %v7443_v17 }
 0xc43   :  { %8676 = vmatprep.subr.mxu1 %v7442_v2 }
 0xc44   :  { %8677 = vmatpush3.msra.mxu1 %v7442_v2 }
 0xc45   :  { %8678 = vmatprep.subr.mxu1 %v7441_v57 }
 0xc46   :  { %8679 = vmatpush3.msra.mxu1 %v7441_v57 }
 0xc47   :  { %8680 = vmatprep.subr.mxu1 %v7440_v56 }
 0xc48   :  { %8681 = vmatpush3.msra.mxu1 %v7440_v56 }
 0xc49   :  { %8682 = vmatprep.subr.mxu1 %v7439_v18 }
 0xc4a   :  { %8683 = vmatpush3.msra.mxu1 %v7439_v18 }
 0xc4b   :  { %8685 = vmatmul.mubr.msk.f32.vlgmr.msra.gmra.mxu1 %vm193_vm4, %v9762_v51 }
 0xc4c   :  { %8687 = vmatprep.mubr.msk.f32.mxu1 %vm193_vm4, %v9777_v53 }
 0xc4f   :  { %8688 = vmatmul.mubr.msk.f32.gmra.mxu1 %vm193_vm4, %v9792_v58 }
 0xcf7   :  { %v8625_v24 = vpop.f32.mrf.mxu1 }
 0xcf9   :  { %v1590_v25 = vpop.f32.mrf.mxu1 }
 0xcfa   :  { %8633 = vmatprep.mubr.msk.f32.mxu0 %vm556_vm5, %v1590_v25 }
 0xcfb   :  { %8634 = vmatmul.mubr.msk.f32.gmra.mxu0 %vm556_vm5, %v8625_v24  ;;  %v10094_v26 = vpop.f32.mrf.mxu1 }
 0xcfc   :  { %8662 = vmatprep.mubr.msk.f32.mxu0 %vm193_vm4, %v9758_v48 }
 0xcfd   :  { %v10106_v30 = vpop.f32.mrf.mxu1 }
 0xcff   :  { %8663 = vmatmul.mubr.msk.f32.vlgmr.msra.gmra.mxu0 %vm193_vm4, %v9762_v51  ;;  %v10118_v35 = vpop.f32.mrf.mxu1 }
 0xd00   :  { %8691 = vmatpush3.msra.mxu0 %v7454_v22  ;;  %8665 = vmatprep.mubr.msk.f32.mxu0 %vm193_vm4, %v9777_v53 }
 0xd01   :  { %8692 = vmatprep.subr.mxu0 %v7453_v27  ;;  %v10126_v21 = vpop.f32.mrf.mxu1 }
 0xd02   :  { %8693 = vmatpush3.msra.mxu0 %v7453_v27  ;;  %v190_v27 = vld [vmem:[%s11517_s5 + $0x28] sm:$0xff] }
 0xd03   :  { %8694 = vmatprep.subr.mxu0 %v7452_v29  ;;  %8666 = vmatmul.mubr.msk.f32.gmra.mxu0 %vm193_vm4, %v9792_v58 }
 0xd04   :  { %8695 = vmatpush3.msra.mxu0 %v7452_v29  ;;  %8706 = vmatprep.mubr.msk.f32.mxu0 %vm193_vm4, %v9758_v48  ;;  %v189_v29 = vld [vmem:[%s11517_s5 + $0x20] sm:$0xff] }
 0xd05   :  { %8696 = vmatprep.subr.mxu0 %v7451_v15 }
 0xd06   :  { %8697 = vmatpush3.msra.mxu0 %v7451_v15 }
 0xd07   :  { %8698 = vmatprep.subr.mxu0 %v7450_v32 }
 0xd08   :  { %8699 = vmatpush3.msra.mxu0 %v7450_v32 }
 0xd09   :  { %8700 = vmatprep.subr.mxu0 %v7449_v14 }
 0xd0a   :  { %8701 = vmatpush3.msra.mxu0 %v7449_v14 }
 0xd0b   :  { %v8686_v42 = vpop.f32.mrf.mxu1  ;;  %8702 = vmatprep.subr.mxu0 %v7448_v36 }
 0xd0c   :  { %8703 = vmatpush3.msra.mxu0 %v7448_v36  ;;  %8712 = vmatprep.subr.msk.mxu1 %vm556_vm5, %v8686_v42 }
 0xd0d   :  { %v1971_v44 = vpop.f32.mrf.mxu1  ;;  %8704 = vmatprep.subr.mxu0 %v7447_v39  ;;  %8713 = vmatpush3.xpose.msk.msra.mxu1 %vm556_vm5, %v8686_v42 }
 0xd0e   :  { %8705 = vmatpush3.msra.mxu0 %v7447_v39  ;;  %8714 = vmatprep.subr.msk.mxu1 %vm556_vm5, %v1971_v44 }
 0xd0f   :  { %8707 = vmatmul.mubr.msk.f32.vlgmr.msra.gmra.mxu0 %vm193_vm4, %v9762_v51  ;;  %v8689_v61 = vpop.f32.mrf.mxu1 }
 0xd10   :  { %8709 = vmatprep.mubr.msk.f32.mxu0 %vm193_vm4, %v9777_v53 }
 0xd11   :  { %8715 = vmatpush3.xpose.msk.msra.mxu1 %vm556_vm5, %v1971_v44  ;;  %v1981_v0 = vpop.f32.mrf.mxu1 }
 0xd13   :  { %8710 = vmatmul.mubr.msk.f32.gmra.mxu0 %vm193_vm4, %v9792_v58 }
 0xdbb   :  { %v10145_v50 = vpop.f32.mrf.mxu0 }
 0xdbd   :  { %v10147_v47 = vpop.f32.mrf.mxu0 }
 0xdbf   :  { %v8664_v49 = vpop.f32.mrf.mxu0 }
 0xdc1   :  { %v1886_v52 = vpop.f32.mrf.mxu0 }
 0xdc2   :  { %8716 = vmatprep.mubr.msk.f32.mxu1 %vm556_vm5, %v1886_v52 }
 0xdc3   :  { %8717 = vmatmul.mubr.msk.f32.vlgmr.msra.gmra.mxu1 %vm556_vm5, %v8664_v49  ;;  %v8667_v54 = vpop.f32.mrf.mxu0 }
 0xdc5   :  { %v1896_v55 = vpop.f32.mrf.mxu0 }
 0xdcf   :  { %v8708_v59 = vpop.f32.mrf.mxu0 }
 0xdd0   :  { %8719 = vmatprep.subr.mxu1 %v8708_v59 }
 0xdd1   :  { %v2056_v60 = vpop.f32.mrf.mxu0  ;;  %8720 = vmatpush3.msra.mxu1 %v8708_v59 }
 0xdd2   :  { %8721 = vmatprep.subr.mxu1 %v2056_v60 }
 0xdd3   :  { %v8711_v62 = vpop.f32.mrf.mxu0  ;;  %8722 = vmatpush3.msra.mxu1 %v2056_v60 }
 0xdd4   :  { %8726 = vmatprep.subr.msk.mxu1 %vm556_vm5, %v8689_v61  ;;  %8733 = vmatprep.subr.mxu0 %v8711_v62 }
 0xdd5   :  { %v2066_v63 = vpop.f32.mrf.mxu0  ;;  %8734 = vmatpush3.msra.mxu0 %v8711_v62 }
 0xdd6   :  { %8735 = vmatprep.subr.mxu0 %v2066_v63 }
 0xdd7   :  { %8736 = vmatpush3.msra.mxu0 %v2066_v63 }
 0xe83   :  { %v8718_v1 = vpop.f32.mrf.mxu1 }
 0xe84   :  { %v2159_v4 = vadd.f32 %v8718_v1, %v9831_v12 }
 0xe85   :  { %v2153_v5 = vpop.f32.mrf.mxu1 }
 0xe86   :  { %v2154_v6 = vadd.f32 %v2153_v5, %v9833_v13  ;;  %v2165_v7 = vsel %vm556_vm5, %v2159_v4, -inf }
 0xe87   :  { %2166 = vmax.xlane.f32.xlu0 %v2165_v7 }
 0xe88   :  { %v2162_v8 = vsel %vm556_vm5, %v2154_v6, -inf }
 0xe89   :  { %2163 = vmax.xlane.f32.xlu1 %v2162_v8  ;;  %v7498_v8 = vld [vmem:[%s11516_s4 + $0x2b8] sm:$0xff] }
 0xf10   :  { %v2167_v9 = vpop.xlane.xlu0 %2166 }
 0xf11   :  { %v2169_v10 = vsub.f32 %v2159_v4, %v2167_v9  ;;  %v1780_v4 = vadd.f32 %v10094_v26, %v10141_v45  ;;  %v7497_v9 = vld [vmem:[%s11516_s4 + $0x2b0] sm:$0xff]  ;;  %v7496_v26 = vld [vmem:[%s11516_s4 + $0x2a8] sm:$0xff]  ;;  %v7495_v45 = vld [vmem:[%s11516_s4 + $0x2a0] sm:$0xff] }
 0xf12   :  { %v2164_v11 = vpop.xlane.xlu1 %2163 }
 0xf13   :  { %v2172_v16 = vmul.f32 1.442695, %v2169_v10  ;;  %v2168_v3 = vsub.f32 %v2154_v6, %v2164_v11  ;;  %v7490_v6 = vld [vmem:[%s11516_s4 + $0x278] sm:$0xff] }
 0xf14   :  { %8750 = vmatprep.subr.mxu0 %v7490_v6 }
 0xf15   :  { %9341 = vpow2.f32 %v2172_v16  ;;  %v2170_v17 = vmul.f32 1.442695, %v2168_v3 }
 0xf17   :  { %9343 = vpow2.f32 %v2170_v17 }
 0xf22   :  { %v9342_v2 = vpop.eup %9341 }
 0xf23   :  { %v2177_v57 = vsel %vm556_vm5, %v9342_v2, 0.0 }
 0xf24   :  { %v9344_v56 = vpop.eup %9343  ;;  %2178 = vadd.xlane.f32.xlu0 %v2177_v57  ;;  %v7489_v57 = vld [vmem:[%s11516_s4 + $0x270] sm:$0xff] }
 0xf25   :  { %v2174_v18 = vsel %vm556_vm5, %v9344_v56, 0.0 }
 0xf26   :  { %2175 = vadd.xlane.f32.xlu1 %v2174_v18  ;;  %v7487_v18 = vld [vmem:[%s11516_s4 + $0x260] sm:$0xff] }
 0xfad   :  { %v2179_v19 = vpop.xlane.xlu0 %2178 }
 0xfae   :  { %9345 = vrcp.f32 %v2179_v19  ;;  %v7486_v19 = vld [vmem:[%s11516_s4 + $0x258] sm:$0xff] }
 0xfaf   :  { %v2176_v20 = vpop.xlane.xlu1 %2175 }
 0xfb0   :  { %9347 = vrcp.f32 %v2176_v20  ;;  %v7485_v20 = vld [vmem:[%s11516_s4 + $0x250] sm:$0xff] }
 0xfbb   :  { %v9346_v23 = vpop.eup %9345 }
 0xfbc   :  { %v2183_v25 = vmul.f32 %v9346_v23, %v9342_v2  ;;  %v7484_v23 = vld [vmem:[%s11516_s4 + $0x248] sm:$0xff] }
 0xfbd   :  { %v9348_v22 = vpop.eup %9347 }
 0xfbe   :  { %v2182_v24 = vmul.f32 %v9348_v22, %v9344_v56  ;;  %v7488_v56 = vld [vmem:[%s11516_s4 + $0x268] sm:$0xff]  ;;  %v7483_v22 = vld [vmem:[%s11516_s4 + $0x240] sm:$0xff] }
 0xfc0   :  { %8723 = vmatprep.mubr.msk.f32.mxu1 %vm556_vm5, %v2182_v24  ;;  %v7506_v24 = vld [vmem:[%s11516_s4 + $0x2f8] sm:$0xff] }
 0xfc1   :  { %8724 = vmatmul.mubr.msk.f32.vlgmr.msra.gmra.mxu1 %vm556_vm5, %v2183_v25  ;;  %v7505_v25 = vld [vmem:[%s11516_s4 + $0x2f0] sm:$0xff] }
 0xfc2   :  { %8727 = vmatpush3.xpose.msk.msra.mxu1 %vm556_vm5, %v8689_v61  ;;  %8730 = vmatprep.mubr.msk.f32.mxu1 %vm556_vm5, %v1896_v55 }
 0xfc3   :  { %8728 = vmatprep.subr.msk.mxu1 %vm556_vm5, %v1981_v0 }
 0xfc6   :  { %8729 = vmatpush3.xpose.msk.msra.mxu1 %vm556_vm5, %v1981_v0 }
 0xfc7   :  { %8740 = vmatprep.subr.mxu1 %v190_v27 }
 0xfc9   :  { %8731 = vmatmul.mubr.msk.f32.vlgmr.msra.gmra.mxu1 %vm556_vm5, %v8667_v54 }
 0xfca   :  { %8741 = vmatpush3.msra.mxu1 %v190_v27  ;;  %v7504_v27 = vld [vmem:[%s11516_s4 + $0x2e8] sm:$0xff] }
 0xfcb   :  { %8742 = vmatprep.subr.mxu1 %v189_v29 }
 0xfcc   :  { %8743 = vmatpush3.msra.mxu1 %v189_v29  ;;  %v7503_v29 = vld [vmem:[%s11516_s4 + $0x2e0] sm:$0xff] }
 0xfcd   :  { %8772 = vmatprep.subr.mxu1 %v7498_v8 }
0x1081   :  { %v8725_v15 = vpop.f32.mrf.mxu1 }
0x1083   :  { %v2256_v32 = vpop.f32.mrf.mxu1 }
0x1084   :  { %8744 = vmatprep.mubr.msk.f32.mxu1 %vm556_vm5, %v2256_v32  ;;  %v7501_v32 = vld [vmem:[%s11516_s4 + $0x2d0] sm:$0xff] }
0x1085   :  { %8745 = vmatmul.mubr.msk.f32.vlgmr.msra.gmra.mxu1 %vm556_vm5, %v8725_v15  ;;  %v7502_v15 = vld [vmem:[%s11516_s4 + $0x2d8] sm:$0xff] }
0x1086   :  { %8773 = vmatpush3.msra.mxu1 %v7498_v8 }
0x1087   :  { %8774 = vmatprep.subr.mxu1 %v7497_v9 }
0x1088   :  { %8775 = vmatpush3.msra.mxu1 %v7497_v9 }
0x1089   :  { %v8732_v14 = vpop.f32.mrf.mxu1  ;;  %8776 = vmatprep.subr.mxu1 %v7496_v26 }
0x108a   :  { %v2349_v36 = vadd.f32 %v8732_v14, %v9831_v12  ;;  %8777 = vmatpush3.msra.mxu1 %v7496_v26  ;;  %v7500_v14 = vld [vmem:[%s11516_s4 + $0x2c8] sm:$0xff] }
0x108b   :  { %v2343_v39 = vpop.f32.mrf.mxu1  ;;  %8778 = vmatprep.subr.mxu1 %v7495_v45 }
0x108c   :  { %v2344_v42 = vadd.f32 %v2343_v39, %v9833_v13  ;;  %v2355_v44 = vsel %vm556_vm5, %v2349_v36, -inf  ;;  %8779 = vmatpush3.msra.mxu1 %v7495_v45  ;;  %v7494_v39 = vld [vmem:[%s11516_s4 + $0x298] sm:$0xff] }
0x108d   :  { %2356 = vmax.xlane.f32.xlu0 %v2355_v44  ;;  %8780 = vmatprep.subr.mxu1 %v7494_v39  ;;  %v7492_v44 = vld [vmem:[%s11516_s4 + $0x288] sm:$0xff] }
0x108e   :  { %v2352_v49 = vsel %vm556_vm5, %v2344_v42, -inf  ;;  %8781 = vmatpush3.msra.mxu1 %v7494_v39 }
0x108f   :  { %2353 = vmax.xlane.f32.xlu1 %v2352_v49  ;;  %v7491_v49 = vld [vmem:[%s11516_s4 + $0x280] sm:$0xff] }
0x1116   :  { %v2357_v52 = vpop.xlane.xlu0 %2356 }
0x1117   :  { %v2359_v54 = vsub.f32 %v2349_v36, %v2357_v52  ;;  %v7499_v36 = vld [vmem:[%s11516_s4 + $0x2c0] sm:$0xff] }
0x1118   :  { %v2354_v55 = vpop.xlane.xlu1 %2353 }
0x1119   :  { %v2362_v59 = vmul.f32 1.442695, %v2359_v54  ;;  %v2358_v60 = vsub.f32 %v2344_v42, %v2354_v55  ;;  %v7493_v42 = vld [vmem:[%s11516_s4 + $0x290] sm:$0xff] }
0x111a   :  { %8782 = vmatprep.subr.mxu1 %v7493_v42 }
0x111b   :  { %9349 = vpow2.f32 %v2362_v59  ;;  %v2360_v61 = vmul.f32 1.442695, %v2358_v60  ;;  %8783 = vmatpush3.msra.mxu1 %v7493_v42 }
0x111c   :  { %8784 = vmatprep.subr.mxu1 %v7492_v44 }
0x111d   :  { %9351 = vpow2.f32 %v2360_v61  ;;  %8785 = vmatpush3.msra.mxu1 %v7492_v44 }
0x111e   :  { %8786 = vmatprep.subr.mxu1 %v7491_v49 }
0x111f   :  { %8787 = vmatpush3.msra.mxu1 %v7491_v49 }
0x1128   :  { %v9350_v62 = vpop.eup %9349 }
0x1129   :  { %v2367_v63 = vsel %vm556_vm5, %v9350_v62, 0.0 }
0x112a   :  { %v9352_v0 = vpop.eup %9351  ;;  %2368 = vadd.xlane.f32.xlu0 %v2367_v63 }
0x112b   :  { %v2364_v1 = vsel %vm556_vm5, %v9352_v0, 0.0 }
0x112c   :  { %2365 = vadd.xlane.f32.xlu1 %v2364_v1  ;;  %v1785_v1 = vadd.f32 %v10126_v21, %v10147_v47 }
0x1145   :  { %v8746_v5 = vpop.f32.mrf.mxu1 }
0x1146   :  { %v10184_v7 = vadd.f32 %v8746_v5, %v1780_v4 }
0x11b3   :  { %v2369_v10 = vpop.xlane.xlu0 %2368 }
0x11b4   :  { %9353 = vrcp.f32 %v2369_v10 }
0x11b5   :  { %v2366_v11 = vpop.xlane.xlu1 %2365 }
0x11b6   :  { %9355 = vrcp.f32 %v2366_v11 }
0x11c1   :  { %v9354_v16 = vpop.eup %9353 }
0x11c2   :  { %v2373_v2 = vmul.f32 %v9354_v16, %v9350_v62 }
0x11c3   :  { %v9356_v3 = vpop.eup %9355 }
0x11c4   :  { %v2372_v17 = vmul.f32 %v9356_v3, %v9352_v0 }
0x11c6   :  { %8737 = vmatprep.mubr.msk.f32.mxu0 %vm556_vm5, %v2372_v17 }
0x11c7   :  { %8738 = vmatmul.mubr.msk.f32.vlgmr.msra.gmra.mxu0 %vm556_vm5, %v2373_v2 }
0x11c8   :  { %8751 = vmatpush3.msra.mxu0 %v7490_v6  ;;  %8766 = vmatprep.mubr.msk.f32.mxu0 %vm193_vm4, %v9758_v48 }
0x11c9   :  { %8752 = vmatprep.subr.mxu0 %v7489_v57 }
0x11ca   :  { %8753 = vmatpush3.msra.mxu0 %v7489_v57 }
0x11cb   :  { %8754 = vmatprep.subr.mxu0 %v7488_v56 }
0x11cc   :  { %8755 = vmatpush3.msra.mxu0 %v7488_v56 }
0x11cd   :  { %8756 = vmatprep.subr.mxu0 %v7487_v18 }
0x11ce   :  { %8757 = vmatpush3.msra.mxu0 %v7487_v18 }
0x11cf   :  { %8758 = vmatprep.subr.mxu0 %v7486_v19 }
0x11d0   :  { %8759 = vmatpush3.msra.mxu0 %v7486_v19 }
0x11d1   :  { %8760 = vmatprep.subr.mxu0 %v7485_v20 }
0x11d2   :  { %8761 = vmatpush3.msra.mxu0 %v7485_v20 }
0x11d3   :  { %8762 = vmatprep.subr.mxu0 %v7484_v23 }
0x11d4   :  { %8763 = vmatpush3.msra.mxu0 %v7484_v23 }
0x11d5   :  { %8764 = vmatprep.subr.mxu0 %v7483_v22 }
0x11d6   :  { %8765 = vmatpush3.msra.mxu0 %v7483_v22 }
0x11d7   :  { %8767 = vmatmul.mubr.msk.f32.vlgmr.msra.gmra.mxu0 %vm193_vm4, %v9762_v51  ;;  %8794 = vmatprep.subr.mxu0 %v7506_v24 }
0x11d8   :  { %8769 = vmatprep.mubr.msk.f32.mxu0 %vm193_vm4, %v9777_v53  ;;  %8795 = vmatpush3.msra.mxu0 %v7506_v24 }
0x11d9   :  { %8796 = vmatprep.subr.mxu0 %v7505_v25 }
0x11da   :  { %8797 = vmatpush3.msra.mxu0 %v7505_v25 }
0x11db   :  { %8770 = vmatmul.mubr.msk.f32.gmra.mxu0 %vm193_vm4, %v9792_v58  ;;  %8798 = vmatprep.subr.mxu0 %v7504_v27 }
0x11dc   :  { %8799 = vmatpush3.msra.mxu0 %v7504_v27  ;;  %8810 = vmatprep.mubr.msk.f32.mxu0 %vm193_vm4, %v9758_v48 }
0x11dd   :  { %8800 = vmatprep.subr.mxu0 %v7503_v29 }
0x11de   :  { %8801 = vmatpush3.msra.mxu0 %v7503_v29 }
0x11df   :  { %8802 = vmatprep.subr.mxu0 %v7502_v15 }
0x11e0   :  { %8803 = vmatpush3.msra.mxu0 %v7502_v15 }
0x11e1   :  { %8804 = vmatprep.subr.mxu0 %v7501_v32 }
0x11e2   :  { %8805 = vmatpush3.msra.mxu0 %v7501_v32  ;;  %v192_v32 = vld [vmem:[%s11517_s5 + $0x38] sm:$0xff] }
0x11e3   :  { %8806 = vmatprep.subr.mxu0 %v7500_v14 }
0x11e4   :  { %8807 = vmatpush3.msra.mxu0 %v7500_v14  ;;  %v191_v14 = vld [vmem:[%s11517_s5 + $0x30] sm:$0xff] }
0x11e5   :  { %8808 = vmatprep.subr.mxu0 %v7499_v36 }
0x11e6   :  { %8809 = vmatpush3.msra.mxu0 %v7499_v36 }
0x11e7   :  { %8811 = vmatmul.mubr.msk.f32.vlgmr.msra.gmra.mxu0 %vm193_vm4, %v9762_v51 }
0x11e8   :  { %8813 = vmatprep.mubr.msk.f32.mxu0 %vm193_vm4, %v9777_v53 }
0x11eb   :  { %8814 = vmatmul.mubr.msk.f32.gmra.mxu0 %vm193_vm4, %v9792_v58 }
0x1287   :  { %v8739_v52 = vpop.f32.mrf.mxu0 }
0x1289   :  { %v2446_v54 = vpop.f32.mrf.mxu0 }
0x128a   :  { %8747 = vmatprep.mubr.msk.f32.mxu1 %vm556_vm5, %v2446_v54 }
0x128b   :  { %8748 = vmatmul.mubr.msk.f32.gmra.mxu1 %vm556_vm5, %v8739_v52 }
0x128c   :  { %8788 = vmatprep.mubr.msk.f32.mxu1 %vm193_vm4, %v9758_v48 }
0x128f   :  { %8789 = vmatmul.mubr.msk.f32.vlgmr.msra.gmra.mxu1 %vm193_vm4, %v9762_v51  ;;  %v10288_v51 = vpop.f32.mrf.mxu1 }
0x1290   :  { %8791 = vmatprep.mubr.msk.f32.mxu1 %vm193_vm4, %v9777_v53  ;;  %v1790_v53 = vadd.f32 %v10118_v35, %v10145_v50 }
0x1293   :  { %8792 = vmatmul.mubr.msk.f32.gmra.mxu1 %vm193_vm4, %v9792_v58 }
0x1297   :  { %v8768_v55 = vpop.f32.mrf.mxu0 }
0x1299   :  { %v2649_v59 = vpop.f32.mrf.mxu0 }
0x129a   :  { %8820 = vmatprep.mubr.msk.f32.mxu1 %vm556_vm5, %v2649_v59 }
0x129b   :  { %v10284_v60 = vpop.f32.mrf.mxu0 }
0x129d   :  { %v10286_v61 = vpop.f32.mrf.mxu0 }
0x12a7   :  { %v8812_v62 = vpop.f32.mrf.mxu0 }
0x12a9   :  { %v2819_v63 = vpop.f32.mrf.mxu0 }
0x12ab   :  { %v8815_v48 = vpop.f32.mrf.mxu0 }
0x12ac   :  { %8837 = vmatprep.subr.mxu0 %v8815_v48 }
0x12ad   :  { %v2829_v0 = vpop.f32.mrf.mxu0  ;;  %8838 = vmatpush3.msra.mxu0 %v8815_v48 }
0x12ae   :  { %8839 = vmatprep.subr.mxu0 %v2829_v0 }
0x12af   :  { %8840 = vmatpush3.msra.mxu0 %v2829_v0 }
0x134b   :  { %v8749_v58 = vpop.f32.mrf.mxu1 }
0x134c   :  { %v10294_v4 = vadd.f32 %v8749_v58, %v1790_v53 }
0x134d   :  { %v2543_v5 = vpop.f32.mrf.mxu1 }
0x134e   :  { %v10296_v6 = vadd.f32 %v2543_v5, %v1785_v1  ;;  %v3325_v5 = vsub.s32 2, %v9736_v28 }
0x134f   :  { %v8790_v8 = vpop.f32.mrf.mxu1 }
0x1350   :  { %8816 = vmatprep.subr.msk.mxu1 %vm556_vm5, %v8790_v8 }
0x1351   :  { %v2734_v9 = vpop.f32.mrf.mxu1  ;;  %8817 = vmatpush3.xpose.msk.msra.mxu1 %vm556_vm5, %v8790_v8  ;;  %v1775_v8 = vadd.f32 %v10106_v30, %v10143_v46 }
0x1352   :  { %8818 = vmatprep.subr.msk.mxu1 %vm556_vm5, %v2734_v9 }
0x1353   :  { %v8793_v35 = vpop.f32.mrf.mxu1 }
0x1355   :  { %8819 = vmatpush3.xpose.msk.msra.mxu1 %vm556_vm5, %v2734_v9  ;;  %v2744_v21 = vpop.f32.mrf.mxu1 }
0x1356   :  { %8823 = vmatprep.subr.mxu1 %v8812_v62 }
0x1358   :  { %8821 = vmatmul.mubr.msk.f32.vlgmr.msra.gmra.mxu1 %vm556_vm5, %v8768_v55 }
0x1359   :  { %8824 = vmatpush3.msra.mxu1 %v8812_v62 }
0x135a   :  { %8825 = vmatprep.subr.mxu1 %v2819_v63 }
0x135b   :  { %8826 = vmatpush3.msra.mxu1 %v2819_v63 }
0x135c   :  { %8830 = vmatprep.subr.msk.mxu1 %vm556_vm5, %v8793_v35 }
0x1418   :  { %v8822_v50 = vpop.f32.mrf.mxu1 }
0x1419   :  { %v2922_v47 = vadd.f32 %v8822_v50, %v9831_v12  ;;  %v10341_v50 = vld [vmem:[%s11515_s3] sm:$0xf] }
0x141a   :  { %v2916_v26 = vpop.f32.mrf.mxu1 }
0x141b   :  { %v2917_v45 = vadd.f32 %v2916_v26, %v9833_v13  ;;  %v2928_v10 = vsel %vm556_vm5, %v2922_v47, -inf }
0x141c   :  { %2929 = vmax.xlane.f32.xlu0 %v2928_v10 }
0x141d   :  { %v2925_v11 = vsel %vm556_vm5, %v2917_v45, -inf }
0x141e   :  { %2926 = vmax.xlane.f32.xlu1 %v2925_v11 }
0x14a5   :  { %v2930_v16 = vpop.xlane.xlu0 %2929 }
0x14a6   :  { %v2932_v3 = vsub.f32 %v2922_v47, %v2930_v16  ;;  %v3326_v47 = vrot.slane %v10341_v50, %v3325_v5 }
0x14a7   :  { %v2927_v17 = vpop.xlane.xlu1 %2926 }
0x14a8   :  { %v2935_v2 = vmul.f32 1.442695, %v2932_v3  ;;  %v2931_v57 = vsub.f32 %v2917_v45, %v2927_v17 }
0x14aa   :  { %9357 = vpow2.f32 %v2935_v2  ;;  %v2933_v56 = vmul.f32 1.442695, %v2931_v57 }
0x14ac   :  { %9359 = vpow2.f32 %v2933_v56 }
0x14b7   :  { %v9358_v18 = vpop.eup %9357 }
0x14b8   :  { %v2940_v19 = vsel %vm556_vm5, %v9358_v18, 0.0 }
0x14b9   :  { %v9360_v20 = vpop.eup %9359  ;;  %2941 = vadd.xlane.f32.xlu0 %v2940_v19 }
0x14ba   :  { %v2937_v23 = vsel %vm556_vm5, %v9360_v20, 0.0 }
0x14bb   :  { %2938 = vadd.xlane.f32.xlu1 %v2937_v23 }
0x1542   :  { %v2942_v22 = vpop.xlane.xlu0 %2941 }
0x1543   :  { %9361 = vrcp.f32 %v2942_v22 }
0x1544   :  { %v2939_v24 = vpop.xlane.xlu1 %2938 }
0x1545   :  { %9363 = vrcp.f32 %v2939_v24 }
0x1550   :  { %v9362_v25 = vpop.eup %9361 }
0x1551   :  { %v2946_v15 = vmul.f32 %v9362_v25, %v9358_v18 }
0x1552   :  { %v9364_v27 = vpop.eup %9363 }
0x1553   :  { %v2945_v29 = vmul.f32 %v9364_v27, %v9360_v20 }
0x1555   :  { %8827 = vmatprep.mubr.msk.f32.mxu1 %vm556_vm5, %v2945_v29 }
0x1556   :  { %8828 = vmatmul.mubr.msk.f32.vlgmr.msra.gmra.mxu1 %vm556_vm5, %v2946_v15 }
0x1557   :  { %8831 = vmatpush3.xpose.msk.msra.mxu1 %vm556_vm5, %v8793_v35  ;;  %8834 = vmatprep.mubr.msk.f32.mxu1 %vm556_vm5, %v10286_v61  ;;  %v2552_v35 = vadd.f32 %v10288_v51, %v1775_v8  ;;  %v3392_v8 = vld [vmem:[%s11518_s6 + $0x8] sm:$0xff] }
0x1558   :  { %8832 = vmatprep.subr.msk.mxu1 %vm556_vm5, %v2744_v21 }
0x155b   :  { %8833 = vmatpush3.xpose.msk.msra.mxu1 %vm556_vm5, %v2744_v21 }
0x155c   :  { %8844 = vmatprep.subr.mxu1 %v192_v32 }
0x155e   :  { %8835 = vmatmul.mubr.msk.f32.vlgmr.msra.gmra.mxu1 %vm556_vm5, %v10284_v60 }
0x155f   :  { %8845 = vmatpush3.msra.mxu1 %v192_v32 }
0x1560   :  { %8846 = vmatprep.subr.mxu1 %v191_v14 }
0x1561   :  { %8847 = vmatpush3.msra.mxu1 %v191_v14 }
0x1616   :  { %v8829_v36 = vpop.f32.mrf.mxu1 }
0x1618   :  { %v3019_v39 = vpop.f32.mrf.mxu1 }
0x1619   :  { %8848 = vmatprep.mubr.msk.f32.mxu1 %vm556_vm5, %v3019_v39 }
0x161a   :  { %8849 = vmatmul.mubr.msk.f32.vlgmr.msra.gmra.mxu1 %vm556_vm5, %v8829_v36 }
0x161e   :  { %v8836_v42 = vpop.f32.mrf.mxu1 }
0x161f   :  { %v3112_v44 = vadd.f32 %v8836_v42, %v9831_v12 }
0x1620   :  { %v3106_v49 = vpop.f32.mrf.mxu1 }
0x1621   :  { %v3107_v52 = vadd.f32 %v3106_v49, %v9833_v13  ;;  %v3118_v54 = vsel %vm556_vm5, %v3112_v44, -inf  ;;  %v3406_v49 = vld [vmem:[%s11518_s6 + $0x78] sm:$0xff] }
0x1622   :  { %3119 = vmax.xlane.f32.xlu0 %v3118_v54  ;;  %3447 = vmatprep.subr.mxu0 %v3406_v49  ;;  %v3404_v54 = vld [vmem:[%s11518_s6 + $0x68] sm:$0xff]  ;;  %v3554_v49 = vld [vmem:[%s11520_s8 + $0xd0] sm:$0xff] }
0x1623   :  { %v3115_v55 = vsel %vm556_vm5, %v3107_v52, -inf }
0x1624   :  { %3116 = vmax.xlane.f32.xlu1 %v3115_v55  ;;  %v3403_v55 = vld [vmem:[%s11518_s6 + $0x60] sm:$0xff] }
0x16ab   :  { %v3120_v59 = vpop.xlane.xlu0 %3119 }
0x16ac   :  { %v3122_v60 = vsub.f32 %v3112_v44, %v3120_v59  ;;  %v3402_v59 = vld [vmem:[%s11518_s6 + $0x58] sm:$0xff] }
0x16ad   :  { %v3117_v61 = vpop.xlane.xlu1 %3116 }
0x16ae   :  { %v3125_v62 = vmul.f32 1.442695, %v3122_v60  ;;  %v3121_v63 = vsub.f32 %v3107_v52, %v3117_v61  ;;  %v3405_v52 = vld [vmem:[%s11518_s6 + $0x70] sm:$0xff]  ;;  %v3400_v61 = vld [vmem:[%s11518_s6 + $0x48] sm:$0xff] }
0x16af   :  { %v3401_v60 = vld [vmem:[%s11518_s6 + $0x50] sm:$0xff] }
0x16b0   :  { %9365 = vpow2.f32 %v3125_v62  ;;  %v3123_v48 = vmul.f32 1.442695, %v3121_v63  ;;  %v3399_v62 = vld [vmem:[%s11518_s6 + $0x40] sm:$0xff]  ;;  %v3398_v63 = vld [vmem:[%s11518_s6 + $0x38] sm:$0xff] }
0x16b2   :  { %9367 = vpow2.f32 %v3123_v48  ;;  %v3397_v48 = vld [vmem:[%s11518_s6 + $0x30] sm:$0xff] }
0x16bd   :  { %v9366_v0 = vpop.eup %9365 }
0x16be   :  { %v3130_v53 = vsel %vm556_vm5, %v9366_v0, 0.0 }
0x16bf   :  { %v9368_v58 = vpop.eup %9367  ;;  %3131 = vadd.xlane.f32.xlu0 %v3130_v53  ;;  %v3395_v53 = vld [vmem:[%s11518_s6 + $0x20] sm:$0xff] }
0x16c0   :  { %v3127_v1 = vsel %vm556_vm5, %v9368_v58, 0.0 }
0x16c1   :  { %3128 = vadd.xlane.f32.xlu1 %v3127_v1  ;;  %v3393_v1 = vld [vmem:[%s11518_s6 + $0x10] sm:$0xff] }
0x16da   :  { %v8850_v9 = vpop.f32.mrf.mxu1 }
0x16db   :  { %v3316_v21 = vadd.f32 %v8850_v9, %v10184_v7  ;;  %v9496_v9 = vmov 0.0  }
0x16dc   :  { %v3296_v26 = vpop.f32.mrf.mxu1 }
0x16dd   :  { %v3320_v45 = vadd.f32 %v3316_v21, %v9638_v31  ;;  %v3315_v10 = vadd.f32 %v3296_v26, %v2552_v35  ;;  %v3391_v35 = vld [vmem:[%s11518_s6] sm:$0xff] }
0x16df   :  { %v10347_v11 = vadd.f32 %v3326_v47, %v3320_v45  ;;  %v3319_v30 = vadd.f32 %v3315_v10, %v9640_v33 }
0x16e1   :  { %v10350_v46 = vadd.f32 %v3326_v47, %v3319_v30  ;;  %v3334_v7 = vsel %vm193_vm4, %v10347_v11, 0.0 }
0x16e2   :  { %3335 = vadd.xlane.f32.xlu0 %v3334_v7 }
0x16e3   :  { %v3331_v51 = vsel %vm193_vm4, %v10350_v46, 0.0 }
0x16e4   :  { %3332 = vadd.xlane.f32.xlu1 %v3331_v51 }
0x1748   :  { %v3132_v16 = vpop.xlane.xlu0 %3131 }
0x1749   :  { %9369 = vrcp.f32 %v3132_v16 }
0x174a   :  { %v3129_v3 = vpop.xlane.xlu1 %3128 }
0x174b   :  { %9371 = vrcp.f32 %v3129_v3 }
0x1756   :  { %v9370_v31 = vpop.eup %9369 }
0x1757   :  { %v3136_v57 = vmul.f32 %v9370_v31, %v9366_v0  ;;  %v3396_v0 = vld [vmem:[%s11518_s6 + $0x28] sm:$0xff] }
0x1758   :  { %v9372_v17 = vpop.eup %9371 }
0x1759   :  { %v3135_v2 = vmul.f32 %v9372_v17, %v9368_v58  ;;  %v3394_v58 = vld [vmem:[%s11518_s6 + $0x18] sm:$0xff] }
0x175b   :  { %8841 = vmatprep.mubr.msk.f32.mxu0 %vm556_vm5, %v3135_v2 }
0x175c   :  { %8842 = vmatmul.mubr.msk.f32.vlgmr.msra.gmra.mxu0 %vm556_vm5, %v3136_v57 }
0x175d   :  { %3448 = vmatpush1.msra.mxu0 %v3405_v52  ;;  %3495 = vmatprep.mubr.f32.mxu0 %v9496_v9  ;;  %v3538_v52 = vld [vmem:[%s11520_s8 + $0x50] sm:$0xff] }
0x175e   :  { %3449 = vmatprep.subr.mxu0 %v3404_v54  ;;  %v3553_v54 = vld [vmem:[%s11520_s8 + $0xc8] sm:$0xff] }
0x175f   :  { %3450 = vmatpush1.msra.mxu0 %v3403_v55  ;;  %v3537_v55 = vld [vmem:[%s11520_s8 + $0x48] sm:$0xff] }
0x1760   :  { %3451 = vmatprep.subr.mxu0 %v3402_v59  ;;  %v3552_v59 = vld [vmem:[%s11520_s8 + $0xc0] sm:$0xff] }
0x1761   :  { %3452 = vmatpush1.msra.mxu0 %v3401_v60  ;;  %v3536_v60 = vld [vmem:[%s11520_s8 + $0x40] sm:$0xff] }
0x1762   :  { %3453 = vmatprep.subr.mxu0 %v3400_v61  ;;  %v3551_v61 = vld [vmem:[%s11520_s8 + $0xb8] sm:$0xff] }
0x1763   :  { %3454 = vmatpush1.msra.mxu0 %v3399_v62  ;;  %v3535_v62 = vld [vmem:[%s11520_s8 + $0x38] sm:$0xff] }
0x1764   :  { %3455 = vmatprep.subr.mxu0 %v3398_v63  ;;  %v3550_v63 = vld [vmem:[%s11520_s8 + $0xb0] sm:$0xff] }
0x1765   :  { %3456 = vmatpush1.msra.mxu0 %v3397_v48  ;;  %v3534_v48 = vld [vmem:[%s11520_s8 + $0x30] sm:$0xff] }
0x1766   :  { %3457 = vmatprep.subr.mxu0 %v3396_v0  ;;  %v3549_v0 = vld [vmem:[%s11520_s8 + $0xa8] sm:$0xff] }
0x1767   :  { %3458 = vmatpush1.msra.mxu0 %v3395_v53  ;;  %v3533_v53 = vld [vmem:[%s11520_s8 + $0x28] sm:$0xff] }
0x1768   :  { %3459 = vmatprep.subr.mxu0 %v3394_v58  ;;  %v3548_v58 = vld [vmem:[%s11520_s8 + $0xa0] sm:$0xff] }
0x1769   :  { %3460 = vmatpush1.msra.mxu0 %v3393_v1  ;;  %v3532_v1 = vld [vmem:[%s11520_s8 + $0x20] sm:$0xff] }
0x176a   :  { %3461 = vmatprep.subr.mxu0 %v3392_v8  ;;  %v3547_v8 = vld [vmem:[%s11520_s8 + $0x98] sm:$0xff] }
0x176b   :  { %v3336_v18 = vpop.xlane.xlu0 %3335  ;;  %3462 = vmatpush1.msra.mxu0 %v3391_v35  ;;  %v3531_v35 = vld [vmem:[%s11520_s8 + $0x18] sm:$0xff] }
0x176c   :  { %v3344_v20 = vmul.f32 0.015625, %v3336_v18 }
0x176d   :  { %v3333_v19 = vpop.xlane.xlu1 %3332 }
0x176e   :  { %v3343_v22 = vmul.f32 0.015625, %v3333_v19  ;;  %v10362_v27 = vsub.f32 %v10347_v11, %v3344_v20 }
0x1770   :  { %v10367_v32 = vsub.f32 %v10350_v46, %v3343_v22  ;;  %v3352_v42 = vmul.f32 %v10362_v27, %v10362_v27 }
0x1772   :  { %v3358_v44 = vsel %vm193_vm4, %v3352_v42, 0.0  ;;  %v3541_v42 = vld [vmem:[%s11520_s8 + $0x68] sm:$0xff] }
0x181c   :  { %v8843_v33 = vpop.f32.mrf.mxu0 }
0x181e   :  { %v3209_v56 = vpop.f32.mrf.mxu0 }
0x181f   :  { %8851 = vmatprep.mubr.msk.f32.mxu1 %vm556_vm5, %v3209_v56 }
0x1820   :  { %8852 = vmatmul.mubr.msk.f32.gmra.mxu1 %vm556_vm5, %v8843_v33 }
0x18e0   :  { %v8853_v23 = vpop.f32.mrf.mxu1 }
0x18e1   :  { %v3318_v24 = vadd.f32 %v8853_v23, %v10294_v4 }
0x18e2   :  { %v3306_v25 = vpop.f32.mrf.mxu1 }
0x18e3   :  { %v3322_v29 = vadd.f32 %v3318_v24, %v9654_v41  ;;  %v3317_v15 = vadd.f32 %v3306_v25, %v10296_v6  ;;  %v3351_v6 = vmul.f32 %v10367_v32, %v10367_v32 }
0x18e5   :  { %v10369_v14 = vadd.f32 %v3326_v47, %v3322_v29  ;;  %v3321_v36 = vadd.f32 %v3317_v15, %v9652_v40  ;;  %v3355_v40 = vsel %vm193_vm4, %v3351_v6, 0.0  ;;  %v3543_v15 = vld [vmem:[%s11520_s8 + $0x78] sm:$0xff]  ;;  %v3540_v6 = vld [vmem:[%s11520_s8 + $0x60] sm:$0xff] }
0x18e7   :  { %v10372_v39 = vadd.f32 %v3326_v47, %v3321_v36  ;;  %v3340_v4 = vsel %vm193_vm4, %v10369_v14, 0.0  ;;  %v3542_v36 = vld [vmem:[%s11520_s8 + $0x70] sm:$0xff] }
0x18e8   :  { %3341 = vadd.xlane.f32.xlu0 %v3340_v4  ;;  %v3557_v4 = vld [vmem:[%s11520_s8 + $0xe8] sm:$0xff] }
0x18e9   :  { %v3337_v41 = vsel %vm193_vm4, %v10372_v39, 0.0 }
0x18ea   :  { %3338 = vadd.xlane.f32.xlu1 %v3337_v41  ;;  %v3556_v41 = vld [vmem:[%s11520_s8 + $0xe0] sm:$0xff] }
0x18ec   :  { %3359 = vadd.xlane.f32.xlu0 %v3358_v44  ;;  %v3555_v44 = vld [vmem:[%s11520_s8 + $0xd8] sm:$0xff] }
0x18ee   :  { %3356 = vadd.xlane.f32.xlu1 %v3355_v40  ;;  %v3539_v40 = vld [vmem:[%s11520_s8 + $0x58] sm:$0xff] }
0x1971   :  { %v3342_v21 = vpop.xlane.xlu0 %3341 }
0x1972   :  { %v3346_v47 = vmul.f32 0.015625, %v3342_v21  ;;  %v3546_v21 = vld [vmem:[%s11520_s8 + $0x90] sm:$0xff] }
0x1973   :  { %v3339_v26 = vpop.xlane.xlu1 %3338 }
0x1974   :  { %v10434_v45 = vsub.f32 %v10369_v14, %v3346_v47  ;;  %v3345_v10 = vmul.f32 0.015625, %v3339_v26  ;;  %v3530_v47 = vld [vmem:[%s11520_s8 + $0x10] sm:$0xff]  ;;  %v3545_v26 = vld [vmem:[%s11520_s8 + $0x88] sm:$0xff] }
0x1975   :  { %v3360_v30 = vpop.xlane.xlu0 %3359 }
0x1976   :  { %v10437_v7 = vsub.f32 %v10372_v39, %v3345_v10  ;;  %v3368_v51 = vmul.f32 0.015625, %v3360_v30  ;;  %v3354_v16 = vmul.f32 %v10434_v45, %v10434_v45  ;;  %v3529_v10 = vld [vmem:[%s11520_s8 + $0x8] sm:$0xff]  ;;  %v3544_v30 = vld [vmem:[%s11520_s8 + $0x80] sm:$0xff] }
0x1977   :  { %v3357_v3 = vpop.xlane.xlu1 %3356 }
0x1978   :  { %v3372_v31 = vadd.f32 1e-05, %v3368_v51  ;;  %v3367_v17 = vmul.f32 0.015625, %v3357_v3  ;;  %v3364_v2 = vsel %vm193_vm4, %v3354_v16, 0.0  ;;  %v3353_v57 = vmul.f32 %v10437_v7, %v10437_v7  ;;  %v3528_v51 = vld [vmem:[%s11520_s8] sm:$0xff] }
0x1979   :  { %3365 = vadd.xlane.f32.xlu0 %v3364_v2 }
0x197a   :  { %9373 = vrsqrt.f32 %v3372_v31  ;;  %v3371_v33 = vadd.f32 1e-05, %v3367_v17  ;;  %v3361_v56 = vsel %vm193_vm4, %v3353_v57, 0.0 }
0x197b   :  { %3362 = vadd.xlane.f32.xlu1 %v3361_v56 }
0x197c   :  { %9375 = vrsqrt.f32 %v3371_v33 }
0x1987   :  { %v9374_v18 = vpop.eup %9373 }
0x1988   :  { %v3380_v23 = vmul.f32 %v9374_v18, %v10362_v27  ;;  %v3559_v27 = vld [vmem:[%s11520_s8 + $0xf8] sm:$0xff] }
0x1989   :  { %v9376_v19 = vpop.eup %9375  ;;  %8068 = vmatprep.subr.mxu1 %v3559_v27 }
0x198a   :  { %v3379_v20 = vmul.f32 %v9376_v19, %v10367_v32  ;;  %v3384_v25 = vmul.f32 %v3380_v23, %v9745_v37  ;;  %v3558_v32 = vld [vmem:[%s11520_s8 + $0xf0] sm:$0xff]  ;;  %8069 = vmatpush3.msra.mxu1 %v3543_v15 }
0x198b   :  { %8070 = vmatprep.subr.mxu1 %v3558_v32 }
0x198c   :  { %v3383_v22 = vmul.f32 %v3379_v20, %v9745_v37  ;;  %v3388_v29 = vadd.f32 %v3384_v25, %v9753_v43  ;;  %8071 = vmatpush3.msra.mxu1 %v3542_v36 }
0x198d   :  { %8072 = vmatprep.subr.mxu1 %v3557_v4 }
0x198e   :  { %v3387_v24 = vadd.f32 %v3383_v22, %v9753_v43  ;;  %8073 = vmatpush3.msra.mxu1 %v3541_v42 }
0x198f   :  { %8074 = vmatprep.subr.mxu1 %v3556_v41 }
0x1990   :  { %7535 = vmatmul.mubr.msk.f32.vlgmr.msra.gmra.mxu0 %vm193_vm4, %v3387_v24  ;;  %8075 = vmatpush3.msra.mxu1 %v3540_v6 }
0x1991   :  { %3501 = vmatprep.mubr.f32.mxu0 %v9496_v9  ;;  %8076 = vmatprep.subr.mxu1 %v3555_v44 }
0x1992   :  { %8077 = vmatpush3.msra.mxu1 %v3539_v40 }
0x1993   :  { %8078 = vmatprep.subr.mxu1 %v3554_v49 }
0x1994   :  { %7536 = vmatmul.mubr.msk.f32.gmra.mxu0 %vm193_vm4, %v3388_v29  ;;  %8079 = vmatpush3.msra.mxu1 %v3538_v52 }
0x1995   :  { %3507 = vmatprep.mubr.f32.mxu0 %v9496_v9  ;;  %8080 = vmatprep.subr.mxu1 %v3553_v54 }
0x1996   :  { %8081 = vmatpush3.msra.mxu1 %v3537_v55 }
0x1997   :  { %8082 = vmatprep.subr.mxu1 %v3552_v59 }
0x1998   :  { %8083 = vmatpush3.msra.mxu1 %v3536_v60 }
0x1999   :  { %8084 = vmatprep.subr.mxu1 %v3551_v61 }
0x199a   :  { %8085 = vmatpush3.msra.mxu1 %v3535_v62 }
0x199b   :  { %8086 = vmatprep.subr.mxu1 %v3550_v63 }
0x199c   :  { %8087 = vmatpush3.msra.mxu1 %v3534_v48 }
0x199d   :  { %8088 = vmatprep.subr.mxu1 %v3549_v0 }
0x199e   :  { %8089 = vmatpush3.msra.mxu1 %v3533_v53  ;;  %v3562_v53 = vsub.s32 3, %v9736_v28 }
0x199f   :  { %8090 = vmatprep.subr.mxu1 %v3548_v58 }
0x19a0   :  { %8091 = vmatpush3.msra.mxu1 %v3532_v1  ;;  %v3563_v1 = vrot.slane %v10341_v50, %v3562_v53 }
0x19a1   :  { %8092 = vmatprep.subr.mxu1 %v3547_v8 }
0x19a2   :  { %8093 = vmatpush3.msra.mxu1 %v3531_v35 }
0x19a3   :  { %8094 = vmatprep.subr.mxu1 %v3546_v21 }
0x19a4   :  { %8095 = vmatpush3.msra.mxu1 %v3530_v47 }
0x19a5   :  { %8096 = vmatprep.subr.mxu1 %v3545_v26 }
0x19a6   :  { %8097 = vmatpush3.msra.mxu1 %v3529_v10 }
0x19a7   :  { %8098 = vmatprep.subr.mxu1 %v3544_v30 }
0x19a8   :  { %8099 = vmatpush3.msra.mxu1 %v3528_v51 }
0x1a02   :  { %v3366_v16 = vpop.xlane.xlu0 %3365 }
0x1a03   :  { %v3370_v3 = vmul.f32 0.015625, %v3366_v16 }
0x1a04   :  { %v3363_v31 = vpop.xlane.xlu1 %3362 }
0x1a05   :  { %v3374_v17 = vadd.f32 1e-05, %v3370_v3  ;;  %v3369_v2 = vmul.f32 0.015625, %v3363_v31 }
0x1a07   :  { %9377 = vrsqrt.f32 %v3374_v17  ;;  %v3373_v57 = vadd.f32 1e-05, %v3369_v2 }
0x1a09   :  { %9379 = vrsqrt.f32 %v3373_v57 }
0x1a14   :  { %v9378_v33 = vpop.eup %9377 }
0x1a15   :  { %v3382_v19 = vmul.f32 %v9378_v33, %v10434_v45 }
0x1a16   :  { %v9380_v56 = vpop.eup %9379 }
0x1a17   :  { %v3381_v18 = vmul.f32 %v9380_v56, %v10437_v7  ;;  %v3386_v22 = vmul.f32 %v3382_v19, %v9745_v37  ;;  %v3407_v7 = vld [vmem:[%s11519_s7] sm:$0x3] }
0x1a18   :  { %v3412_v45 = vrot.slane %v3407_v7, %v9739_v34  ;;  %v3416_v25 = vrot.slane %v3407_v7, %v9748_v38 }
0x1a19   :  { %v3385_v20 = vmul.f32 %v3381_v18, %v9745_v37  ;;  %v3390_v24 = vadd.f32 %v3386_v22, %v9753_v43 }
0x1a1b   :  { %v3389_v23 = vadd.f32 %v3385_v20, %v9753_v43 }
0x1a1d   :  { %7537 = vmatmul.mubr.msk.f32.gmra.mxu0 %vm193_vm4, %v3389_v23 }
0x1a1e   :  { %3513 = vmatprep.mubr.f32.mxu0 %v9496_v9 }
0x1a21   :  { %7538 = vmatmul.mubr.msk.f32.gmra.mxu0 %vm193_vm4, %v3390_v24 }
0x1a50   :  { %v3497_v29 = vpop.f32.mrf.mxu0 }
0x1a51   :  { %v3498_v27 = vadd.f32 %v3497_v29, %v3412_v45 }
0x1a52   :  { %v3499_v15 = vpop.f32.mrf.mxu0 }
0x1a53   :  { %v3500_v37 = vadd.f32 %v3499_v15, %v3416_v25  ;;  %v3520_v4 = vmax.f32 %v3498_v27, 0.0 }
0x1a54   :  { %v3503_v32 = vpop.f32.mrf.mxu0 }
0x1a55   :  { %v3521_v36 = vmax.f32 %v3500_v37, 0.0  ;;  %v3504_v42 = vadd.f32 %v3503_v32, %v3412_v45  ;;  %v7555_v37 = vld [vmem:[%s11516_s4 + $0x338] sm:$0xff] }
0x1a56   :  { %v3505_v41 = vpop.f32.mrf.mxu0  ;;  %v7571_v32 = vld [vmem:[%s11516_s4 + $0x3b8] sm:$0xff]  ;;  %8854 = vmatprep.subr.mxu0 %v7555_v37 }
0x1a57   :  { %v3506_v43 = vadd.f32 %v3505_v41, %v3416_v25  ;;  %3628 = vmatprep.mubr.f32.mxu1 %v3521_v36  ;;  %v3522_v44 = vmax.f32 %v3504_v42, 0.0  ;;  %8898 = vmatprep.subr.mxu1 %v7571_v32  ;;  %v7554_v36 = vld [vmem:[%s11516_s4 + $0x330] sm:$0xff]  ;;  %v7553_v42 = vld [vmem:[%s11516_s4 + $0x328] sm:$0xff] }
0x1a58   :  { %3629 = vmatmul.mubr.f32.vlgmr.msra.gmra.mxu1 %v3520_v4  ;;  %8855 = vmatpush3.msra.mxu0 %v7555_v37  ;;  %v7570_v4 = vld [vmem:[%s11516_s4 + $0x3b0] sm:$0xff]  ;;  %v7569_v41 = vld [vmem:[%s11516_s4 + $0x3a8] sm:$0xff] }
0x1a59   :  { %v3523_v6 = vmax.f32 %v3506_v43, 0.0  ;;  %8899 = vmatpush3.msra.mxu1 %v7571_v32  ;;  %8856 = vmatprep.subr.mxu0 %v7554_v36  ;;  %v7552_v43 = vld [vmem:[%s11516_s4 + $0x320] sm:$0xff] }
0x1a5a   :  { %8900 = vmatprep.subr.mxu1 %v7570_v4  ;;  %8857 = vmatpush3.msra.mxu0 %v7554_v36 }
0x1a5b   :  { %3633 = vmatprep.mubr.f32.mxu1 %v3523_v6  ;;  %8901 = vmatpush3.msra.mxu1 %v7570_v4  ;;  %v7568_v6 = vld [vmem:[%s11516_s4 + $0x3a0] sm:$0xff] }
0x1a5c   :  { %3634 = vmatmul.mubr.f32.gmra.mxu1 %v3522_v44  ;;  %8858 = vmatprep.subr.mxu0 %v7553_v42  ;;  %v7551_v44 = vld [vmem:[%s11516_s4 + $0x318] sm:$0xff] }
0x1a5d   :  { %8902 = vmatprep.subr.mxu1 %v7569_v41  ;;  %8859 = vmatpush3.msra.mxu0 %v7553_v42 }
0x1a5e   :  { %8903 = vmatpush3.msra.mxu1 %v7569_v41  ;;  %8860 = vmatprep.subr.mxu0 %v7552_v43 }
0x1a5f   :  { %8904 = vmatprep.subr.mxu1 %v7568_v6  ;;  %8861 = vmatpush3.msra.mxu0 %v7552_v43 }
0x1a60   :  { %8905 = vmatpush3.msra.mxu1 %v7568_v6  ;;  %8862 = vmatprep.subr.mxu0 %v7551_v44 }
0x1a61   :  { %8863 = vmatpush3.msra.mxu0 %v7551_v44 }
0x1add   :  { %v3509_v40 = vpop.f32.mrf.mxu0 }
0x1ade   :  { %v3510_v49 = vadd.f32 %v3509_v40, %v3412_v45  ;;  %v7567_v40 = vld [vmem:[%s11516_s4 + $0x398] sm:$0xff] }
0x1adf   :  { %v3511_v52 = vpop.f32.mrf.mxu0  ;;  %8906 = vmatprep.subr.mxu1 %v7567_v40 }
0x1ae0   :  { %v3512_v54 = vadd.f32 %v3511_v52, %v3416_v25  ;;  %v3524_v60 = vmax.f32 %v3510_v49, 0.0  ;;  %8907 = vmatpush3.msra.mxu1 %v7567_v40  ;;  %v7550_v49 = vld [vmem:[%s11516_s4 + $0x310] sm:$0xff] }
0x1ae1   :  { %v3515_v55 = vpop.f32.mrf.mxu0  ;;  %v7566_v52 = vld [vmem:[%s11516_s4 + $0x390] sm:$0xff]  ;;  %8864 = vmatprep.subr.mxu0 %v7550_v49 }
0x1ae2   :  { %v3525_v59 = vmax.f32 %v3512_v54, 0.0  ;;  %v3516_v61 = vadd.f32 %v3515_v55, %v3412_v45  ;;  %8908 = vmatprep.subr.mxu1 %v7566_v52  ;;  %8865 = vmatpush3.msra.mxu0 %v7550_v49  ;;  %v7549_v54 = vld [vmem:[%s11516_s4 + $0x308] sm:$0xff] }
0x1ae3   :  { %v3517_v62 = vpop.f32.mrf.mxu0  ;;  %8909 = vmatpush3.msra.mxu1 %v7566_v52  ;;  %v7565_v55 = vld [vmem:[%s11516_s4 + $0x388] sm:$0xff]  ;;  %8866 = vmatprep.subr.mxu0 %v7549_v54 }
0x1ae4   :  { %v3518_v63 = vadd.f32 %v3517_v62, %v3416_v25  ;;  %3638 = vmatprep.mubr.f32.mxu1 %v3525_v59  ;;  %v3526_v0 = vmax.f32 %v3516_v61, 0.0  ;;  %8910 = vmatprep.subr.mxu1 %v7565_v55  ;;  %v7548_v59 = vld [vmem:[%s11516_s4 + $0x300] sm:$0xff] }
0x1ae5   :  { %3639 = vmatmul.mubr.f32.gmra.mxu1 %v3524_v60  ;;  %8867 = vmatpush3.msra.mxu0 %v7549_v54  ;;  %v7564_v60 = vld [vmem:[%s11516_s4 + $0x380] sm:$0xff] }
0x1ae6   :  { %v3527_v48 = vmax.f32 %v3518_v63, 0.0  ;;  %8911 = vmatpush3.msra.mxu1 %v7565_v55  ;;  %8868 = vmatprep.subr.mxu0 %v7548_v59 }
0x1ae7   :  { %8912 = vmatprep.subr.mxu1 %v7564_v60  ;;  %8869 = vmatpush3.msra.mxu0 %v7548_v59 }
0x1ae8   :  { %3643 = vmatprep.mubr.f32.mxu1 %v3527_v48  ;;  %8913 = vmatpush3.msra.mxu1 %v7564_v60 }
0x1ae9   :  { %3644 = vmatmul.mubr.f32.gmra.mxu1 %v3526_v0 }
0x1b18   :  { %v8100_v58 = vpop.f32.mrf.mxu1 }
0x1b1a   :  { %v8101_v8 = vpop.f32.mrf.mxu1 }
0x1b1b   :  { %v8102_v35 = vadd.f32 %v8101_v8, %v8100_v58 }
0x1b1c   :  { %v8103_v21 = vpop.f32.mrf.mxu1 }
0x1b1d   :  { %v3631_v47 = vadd.f32 %v8102_v35, %v3563_v1 }
0x1b1e   :  { %v8104_v26 = vpop.f32.mrf.mxu1 }
0x1b1f   :  { %v10570_v10 = vadd.f32 %v3631_v47, %v10350_v46  ;;  %v8105_v30 = vadd.f32 %v8104_v26, %v8103_v21 }
0x1b21   :  { %v3636_v51 = vadd.f32 %v8105_v30, %v3563_v1  ;;  %v3664_v16 = vsel %vm193_vm4, %v10570_v10, 0.0 }
0x1b22   :  { %3665 = vadd.xlane.f32.xlu1 %v3664_v16 }
0x1b23   :  { %v10575_v3 = vadd.f32 %v3636_v51, %v10347_v11 }
0x1b25   :  { %v3667_v50 = vsel %vm193_vm4, %v10575_v3, 0.0 }
0x1b26   :  { %3668 = vadd.xlane.f32.xlu0 %v3667_v50 }
0x1ba5   :  { %v8106_v31 = vpop.f32.mrf.mxu1 }
0x1ba7   :  { %v8107_v17 = vpop.f32.mrf.mxu1 }
0x1ba8   :  { %v8108_v2 = vadd.f32 %v8107_v17, %v8106_v31  ;;  %v7539_v31 = vld [vmem:[%s11515_s3 + $0x4] sm:$0xf] }
0x1ba9   :  { %v8109_v57 = vpop.f32.mrf.mxu1  ;;  %v10665_v17 = vrot.slane %v7539_v31, %v9739_v34 }
0x1baa   :  { %v3641_v33 = vadd.f32 %v8108_v2, %v3563_v1 }
0x1bab   :  { %v8110_v46 = vpop.f32.mrf.mxu1  ;;  %v3666_v56 = vpop.xlane.xlu1 %3665 }
0x1bac   :  { %v10580_v18 = vadd.f32 %v3641_v33, %v10372_v39  ;;  %v8111_v19 = vadd.f32 %v8110_v46, %v8109_v57  ;;  %v3676_v20 = vmul.f32 0.015625, %v3666_v56  ;;  %v10668_v57 = vrot.slane %v7539_v31, %v9748_v38 }
0x1bae   :  { %v3646_v23 = vadd.f32 %v8111_v19, %v3563_v1  ;;  %v10583_v11 = vsub.f32 %v10570_v10, %v3676_v20  ;;  %v3670_v22 = vsel %vm193_vm4, %v10580_v18, 0.0 }
0x1baf   :  { %v3669_v24 = vpop.xlane.xlu0 %3668  ;;  %3671 = vadd.xlane.f32.xlu1 %v3670_v22 }
0x1bb0   :  { %v10588_v7 = vadd.f32 %v3646_v23, %v10369_v14  ;;  %v3677_v45 = vmul.f32 0.015625, %v3669_v24  ;;  %v3684_v25 = vmul.f32 %v10583_v11, %v10583_v11  ;;  %v7562_v24 = vld [vmem:[%s11516_s4 + $0x370] sm:$0xff] }
0x1bb2   :  { %v10593_v39 = vsub.f32 %v10575_v3, %v3677_v45  ;;  %v3673_v29 = vsel %vm193_vm4, %v10588_v7, 0.0  ;;  %v3688_v27 = vsel %vm193_vm4, %v3684_v25, 0.0  ;;  %v7561_v45 = vld [vmem:[%s11516_s4 + $0x368] sm:$0xff]  ;;  %v7560_v25 = vld [vmem:[%s11516_s4 + $0x360] sm:$0xff] }
0x1bb3   :  { %3674 = vadd.xlane.f32.xlu0 %v3673_v29  ;;  %3689 = vadd.xlane.f32.xlu1 %v3688_v27  ;;  %v7558_v29 = vld [vmem:[%s11516_s4 + $0x350] sm:$0xff]  ;;  %v7557_v27 = vld [vmem:[%s11516_s4 + $0x348] sm:$0xff] }
0x1bb4   :  { %v3685_v15 = vmul.f32 %v10593_v39, %v10593_v39 }
0x1bb6   :  { %v3691_v14 = vsel %vm193_vm4, %v3685_v15, 0.0  ;;  %v7556_v15 = vld [vmem:[%s11516_s4 + $0x340] sm:$0xff] }
0x1bb7   :  { %3692 = vadd.xlane.f32.xlu0 %v3691_v14 }
0x1c38   :  { %v3672_v61 = vpop.xlane.xlu1 %3671 }
0x1c39   :  { %v3678_v62 = vmul.f32 0.015625, %v3672_v61 }
0x1c3b   :  { %v10650_v63 = vsub.f32 %v10580_v18, %v3678_v62 }
0x1c3c   :  { %v3675_v48 = vpop.xlane.xlu0 %3674  ;;  %v3690_v0 = vpop.xlane.xlu1 %3689 }
0x1c3d   :  { %v3679_v58 = vmul.f32 0.015625, %v3675_v48  ;;  %v3700_v1 = vmul.f32 0.015625, %v3690_v0  ;;  %v3686_v8 = vmul.f32 %v10650_v63, %v10650_v63 }
0x1c3f   :  { %v10655_v35 = vsub.f32 %v10588_v7, %v3679_v58  ;;  %v3704_v21 = vadd.f32 1e-05, %v3700_v1  ;;  %v3694_v47 = vsel %vm193_vm4, %v3686_v8, 0.0 }
0x1c40   :  { %v3693_v26 = vpop.xlane.xlu0 %3692  ;;  %3695 = vadd.xlane.f32.xlu1 %v3694_v47  ;;  %v7609_v47 = vld [vmem:[%s11516_s4 + $0x428] sm:$0xff] }
0x1c41   :  { %9381 = vrsqrt.f32 %v3704_v21  ;;  %v3701_v30 = vmul.f32 0.015625, %v3693_v26  ;;  %v3687_v51 = vmul.f32 %v10655_v35, %v10655_v35  ;;  %v7610_v21 = vld [vmem:[%s11516_s4 + $0x430] sm:$0xff]  ;;  %v7608_v26 = vld [vmem:[%s11516_s4 + $0x420] sm:$0xff] }
0x1c43   :  { %v3705_v16 = vadd.f32 1e-05, %v3701_v30  ;;  %v3697_v50 = vsel %vm193_vm4, %v3687_v51, 0.0  ;;  %v7607_v30 = vld [vmem:[%s11516_s4 + $0x418] sm:$0xff]  ;;  %v7606_v51 = vld [vmem:[%s11516_s4 + $0x410] sm:$0xff] }
0x1c44   :  { %3698 = vadd.xlane.f32.xlu0 %v3697_v50  ;;  %v7604_v50 = vld [vmem:[%s11516_s4 + $0x400] sm:$0xff] }
0x1c45   :  { %9383 = vrsqrt.f32 %v3705_v16  ;;  %v7605_v16 = vld [vmem:[%s11516_s4 + $0x408] sm:$0xff] }
0x1c4e   :  { %v9382_v2 = vpop.eup %9381 }
0x1c4f   :  { %v3712_v33 = vmul.f32 %v9382_v2, %v10583_v11  ;;  %v7563_v11 = vld [vmem:[%s11516_s4 + $0x378] sm:$0xff] }
0x1c50   :  { %8876 = vmatprep.subr.mxu0 %v7563_v11 }
0x1c51   :  { %v3720_v46 = vmul.f32 %v10665_v17, %v3712_v33 }
0x1c52   :  { %v9384_v56 = vpop.eup %9383 }
0x1c53   :  { %v10673_v19 = vadd.f32 %v10668_v57, %v3720_v46  ;;  %v3713_v20 = vmul.f32 %v9384_v56, %v10593_v39  ;;  %v7559_v39 = vld [vmem:[%s11516_s4 + $0x358] sm:$0xff] }
0x1c55   :  { %v3721_v23 = vmul.f32 %v10665_v17, %v3713_v20  ;;  %8870 = vmatprep.mubr.msk.f32.mxu0 %vm193_vm4, %v10673_v19  ;;  %8914 = vmatprep.mubr.msk.f32.mxu1 %vm193_vm4, %v10673_v19 }
0x1c57   :  { %v10682_v22 = vadd.f32 %v10668_v57, %v3721_v23 }
0x1c59   :  { %8871 = vmatmul.mubr.msk.f32.vlgmr.msra.gmra.mxu0 %vm193_vm4, %v10682_v22  ;;  %8915 = vmatmul.mubr.msk.f32.vlgmr.msra.gmra.mxu1 %vm193_vm4, %v10682_v22 }
0x1c5a   :  { %8877 = vmatpush3.msra.mxu0 %v7563_v11 }
0x1c5b   :  { %8878 = vmatprep.subr.mxu0 %v7562_v24 }
0x1c5c   :  { %8879 = vmatpush3.msra.mxu0 %v7562_v24 }
0x1c5d   :  { %8880 = vmatprep.subr.mxu0 %v7561_v45 }
0x1c5e   :  { %8881 = vmatpush3.msra.mxu0 %v7561_v45 }
0x1c5f   :  { %8882 = vmatprep.subr.mxu0 %v7560_v25 }
0x1c60   :  { %8883 = vmatpush3.msra.mxu0 %v7560_v25 }
0x1c61   :  { %8884 = vmatprep.subr.mxu0 %v7559_v39 }
0x1c62   :  { %8885 = vmatpush3.msra.mxu0 %v7559_v39 }
0x1c63   :  { %8886 = vmatprep.subr.mxu0 %v7558_v29 }
0x1c64   :  { %8887 = vmatpush3.msra.mxu0 %v7558_v29 }
0x1c65   :  { %8888 = vmatprep.subr.mxu0 %v7557_v27 }
0x1c66   :  { %8889 = vmatpush3.msra.mxu0 %v7557_v27 }
0x1c67   :  { %8890 = vmatprep.subr.mxu0 %v7556_v15 }
0x1c68   :  { %8891 = vmatpush3.msra.mxu0 %v7556_v15 }
0x1cc9   :  { %v3696_v14 = vpop.xlane.xlu1 %3695 }
0x1cca   :  { %v3702_v37 = vmul.f32 0.015625, %v3696_v14 }
0x1ccc   :  { %v3706_v32 = vadd.f32 1e-05, %v3702_v37 }
0x1ccd   :  { %v3699_v36 = vpop.xlane.xlu0 %3698 }
0x1cce   :  { %9385 = vrsqrt.f32 %v3706_v32  ;;  %v3703_v4 = vmul.f32 0.015625, %v3699_v36 }
0x1cd0   :  { %v3707_v42 = vadd.f32 1e-05, %v3703_v4 }
0x1cd2   :  { %9387 = vrsqrt.f32 %v3707_v42 }
0x1cdb   :  { %v9386_v41 = vpop.eup %9385 }
0x1cdc   :  { %v3714_v43 = vmul.f32 %v9386_v41, %v10650_v63 }
0x1cde   :  { %v3722_v6 = vmul.f32 %v10665_v17, %v3714_v43 }
0x1cdf   :  { %v9388_v44 = vpop.eup %9387 }
0x1ce0   :  { %v10715_v40 = vadd.f32 %v10668_v57, %v3722_v6  ;;  %v3715_v49 = vmul.f32 %v9388_v44, %v10655_v35  ;;  %v7611_v35 = vld [vmem:[%s11516_s4 + $0x438] sm:$0xff] }
0x1ce2   :  { %v3723_v52 = vmul.f32 %v10665_v17, %v3715_v49  ;;  %8873 = vmatprep.mubr.msk.f32.mxu0 %vm193_vm4, %v10715_v40  ;;  %8917 = vmatprep.mubr.msk.f32.mxu1 %vm193_vm4, %v10715_v40 }
0x1ce4   :  { %v10724_v54 = vadd.f32 %v10668_v57, %v3723_v52 }
0x1ce6   :  { %8874 = vmatmul.mubr.msk.f32.gmra.mxu0 %vm193_vm4, %v10724_v54  ;;  %8918 = vmatmul.mubr.msk.f32.gmra.mxu1 %vm193_vm4, %v10724_v54 }
0x1ce7   :  { %8892 = vmatprep.mubr.msk.f32.mxu0 %vm193_vm4, %v10673_v19 }
0x1cea   :  { %8893 = vmatmul.mubr.msk.f32.vlgmr.msra.gmra.mxu0 %vm193_vm4, %v10682_v22 }
0x1ceb   :  { %8895 = vmatprep.mubr.msk.f32.mxu0 %vm193_vm4, %v10715_v40 }
0x1cee   :  { %8896 = vmatmul.mubr.msk.f32.gmra.mxu0 %vm193_vm4, %v10724_v54 }
0x1d19   :  { %v8872_v55 = vpop.f32.mrf.mxu0  ;;  %v8916_v59 = vpop.f32.mrf.mxu1 }
0x1d1a   :  { %8927 = vmatprep.subr.mxu1 %v8916_v59 }
0x1d1b   :  { %v3837_v60 = vpop.f32.mrf.mxu0  ;;  %v4007_v61 = vpop.f32.mrf.mxu1  ;;  %8928 = vmatpush3.msra.mxu1 %v8916_v59 }
0x1d1c   :  { %8924 = vmatprep.mubr.msk.f32.mxu0 %vm556_vm5, %v3837_v60  ;;  %8929 = vmatprep.subr.mxu1 %v4007_v61 }
0x1d1d   :  { %8930 = vmatpush3.msra.mxu1 %v4007_v61 }
0x1da6   :  { %v8875_v62 = vpop.f32.mrf.mxu0  ;;  %v10739_v63 = vpop.f32.mrf.mxu1 }
0x1da7   :  { %8941 = vmatprep.subr.mxu1 %v10739_v63 }
0x1da8   :  { %v3847_v48 = vpop.f32.mrf.mxu0 }
0x1daa   :  { %v8894_v0 = vpop.f32.mrf.mxu0 }
0x1dab   :  { %8920 = vmatprep.subr.msk.mxu0 %vm556_vm5, %v8894_v0 }
0x1dac   :  { %v3922_v58 = vpop.f32.mrf.mxu0  ;;  %8921 = vmatpush3.xpose.msk.msra.mxu0 %vm556_vm5, %v8894_v0 }
0x1dad   :  { %8922 = vmatprep.subr.msk.mxu0 %vm556_vm5, %v3922_v58 }
0x1dae   :  { %v8897_v1 = vpop.f32.mrf.mxu0 }
0x1db0   :  { %8923 = vmatpush3.xpose.msk.msra.mxu0 %vm556_vm5, %v3922_v58  ;;  %v3932_v8 = vpop.f32.mrf.mxu0 }
0x1db1   :  { %8934 = vmatprep.subr.msk.mxu0 %vm556_vm5, %v8897_v1 }
0x1db3   :  { %8925 = vmatmul.mubr.msk.f32.vlgmr.msra.gmra.mxu0 %vm556_vm5, %v8872_v55 }
0x1db4   :  { %8935 = vmatpush3.xpose.msk.msra.mxu0 %vm556_vm5, %v8897_v1  ;;  %8938 = vmatprep.mubr.msk.f32.mxu0 %vm556_vm5, %v3847_v48 }
0x1db5   :  { %8936 = vmatprep.subr.msk.mxu0 %vm556_vm5, %v3932_v8 }
0x1db8   :  { %8937 = vmatpush3.xpose.msk.msra.mxu0 %vm556_vm5, %v3932_v8 }
0x1db9   :  { %8970 = vmatprep.subr.mxu0 %v7611_v35 }
0x1dbb   :  { %8939 = vmatmul.mubr.msk.f32.vlgmr.msra.gmra.mxu0 %vm556_vm5, %v8875_v62 }
0x1dbc   :  { %8971 = vmatpush3.msra.mxu0 %v7611_v35  ;;  %8986 = vmatprep.mubr.msk.f32.mxu0 %vm193_vm4, %v10673_v19 }
0x1dbd   :  { %8972 = vmatprep.subr.mxu0 %v7610_v21 }
0x1dbe   :  { %8973 = vmatpush3.msra.mxu0 %v7610_v21 }
0x1dbf   :  { %8974 = vmatprep.subr.mxu0 %v7609_v47 }
0x1dc0   :  { %8975 = vmatpush3.msra.mxu0 %v7609_v47 }
0x1dc1   :  { %8976 = vmatprep.subr.mxu0 %v7608_v26 }
0x1dc2   :  { %8977 = vmatpush3.msra.mxu0 %v7608_v26 }
0x1dc3   :  { %8978 = vmatprep.subr.mxu0 %v7607_v30 }
0x1dc4   :  { %8979 = vmatpush3.msra.mxu0 %v7607_v30 }
0x1dc5   :  { %8980 = vmatprep.subr.mxu0 %v7606_v51 }
0x1dc6   :  { %8981 = vmatpush3.msra.mxu0 %v7606_v51  ;;  %v4017_v51 = vpop.f32.mrf.mxu1 }
0x1dc7   :  { %8982 = vmatprep.subr.mxu0 %v7605_v16 }
0x1dc8   :  { %8983 = vmatpush3.msra.mxu0 %v7605_v16  ;;  %v7603_v16 = vld [vmem:[%s11516_s4 + $0x3f8] sm:$0xff] }
0x1dc9   :  { %8984 = vmatprep.subr.mxu0 %v7604_v50 }
0x1dca   :  { %8985 = vmatpush3.msra.mxu0 %v7604_v50 }
0x1dcb   :  { %8987 = vmatmul.mubr.msk.f32.vlgmr.msra.gmra.mxu0 %vm193_vm4, %v10682_v22 }
0x1dcc   :  { %8989 = vmatprep.mubr.msk.f32.mxu0 %vm193_vm4, %v10715_v40 }
0x1dcf   :  { %8990 = vmatmul.mubr.msk.f32.gmra.mxu0 %vm193_vm4, %v10724_v54 }
0x1e73   :  { %v8926_v31 = vpop.f32.mrf.mxu0 }
0x1e74   :  { %v4110_v2 = vadd.f32 %v8926_v31, %v9831_v12 }
0x1e75   :  { %v4104_v33 = vpop.f32.mrf.mxu0 }
0x1e76   :  { %v4105_v46 = vadd.f32 %v4104_v33, %v9833_v13  ;;  %v4116_v56 = vsel %vm556_vm5, %v4110_v2, -inf }
0x1e77   :  { %4117 = vmax.xlane.f32.xlu0 %v4116_v56  ;;  %v7600_v56 = vld [vmem:[%s11516_s4 + $0x3e0] sm:$0xff] }
0x1e78   :  { %v4113_v20 = vsel %vm556_vm5, %v4105_v46, -inf }
0x1e79   :  { %4114 = vmax.xlane.f32.xlu1 %v4113_v20  ;;  %v7599_v20 = vld [vmem:[%s11516_s4 + $0x3d8] sm:$0xff] }
0x1e7b   :  { %v8940_v23 = vpop.f32.mrf.mxu0 }
0x1e7c   :  { %v4300_v11 = vadd.f32 %v8940_v23, %v9831_v12  ;;  %v7598_v23 = vld [vmem:[%s11516_s4 + $0x3d0] sm:$0xff] }
0x1e7d   :  { %v4294_v24 = vpop.f32.mrf.mxu0 }
0x1e7e   :  { %v4295_v45 = vadd.f32 %v4294_v24, %v9833_v13  ;;  %v4306_v25 = vsel %vm556_vm5, %v4300_v11, -inf  ;;  %v7596_v24 = vld [vmem:[%s11516_s4 + $0x3c0] sm:$0xff] }
0x1e7f   :  { %4307 = vmax.xlane.f32.xlu0 %v4306_v25  ;;  %v7618_v25 = vld [vmem:[%s11516_s4 + $0x470] sm:$0xff] }
0x1e80   :  { %v4303_v39 = vsel %vm556_vm5, %v4295_v45, -inf }
0x1e81   :  { %4304 = vmax.xlane.f32.xlu1 %v4303_v39  ;;  %v7617_v39 = vld [vmem:[%s11516_s4 + $0x468] sm:$0xff] }
0x1e8b   :  { %v8988_v29 = vpop.f32.mrf.mxu0 }
0x1e8c   :  { %9014 = vmatprep.subr.msk.mxu0 %vm556_vm5, %v8988_v29 }
0x1e8d   :  { %v4584_v27 = vpop.f32.mrf.mxu0  ;;  %9015 = vmatpush3.xpose.msk.msra.mxu0 %vm556_vm5, %v8988_v29  ;;  %v7616_v29 = vld [vmem:[%s11516_s4 + $0x460] sm:$0xff] }
0x1e8e   :  { %9016 = vmatprep.subr.msk.mxu0 %vm556_vm5, %v4584_v27 }
0x1e91   :  { %9017 = vmatpush3.xpose.msk.msra.mxu0 %vm556_vm5, %v4584_v27  ;;  %v7615_v27 = vld [vmem:[%s11516_s4 + $0x458] sm:$0xff] }
0x1f00   :  { %v4118_v15 = vpop.xlane.xlu0 %4117 }
0x1f01   :  { %v4120_v14 = vsub.f32 %v4110_v2, %v4118_v15  ;;  %v7614_v15 = vld [vmem:[%s11516_s4 + $0x450] sm:$0xff] }
0x1f02   :  { %v4115_v37 = vpop.xlane.xlu1 %4114 }
0x1f03   :  { %v4123_v32 = vmul.f32 1.442695, %v4120_v14  ;;  %v4119_v36 = vsub.f32 %v4105_v46, %v4115_v37  ;;  %v7602_v46 = vld [vmem:[%s11516_s4 + $0x3f0] sm:$0xff]  ;;  %v7613_v14 = vld [vmem:[%s11516_s4 + $0x448] sm:$0xff]  ;;  %v7612_v37 = vld [vmem:[%s11516_s4 + $0x440] sm:$0xff] }
0x1f05   :  { %9389 = vpow2.f32 %v4123_v32  ;;  %v4121_v4 = vmul.f32 1.442695, %v4119_v36 }
0x1f07   :  { %9391 = vpow2.f32 %v4121_v4 }
0x1f08   :  { %v4308_v42 = vpop.xlane.xlu0 %4307 }
0x1f09   :  { %v4310_v41 = vsub.f32 %v4300_v11, %v4308_v42  ;;  %v7597_v11 = vld [vmem:[%s11516_s4 + $0x3c8] sm:$0xff] }
0x1f0a   :  { %v4305_v43 = vpop.xlane.xlu1 %4304 }
0x1f0b   :  { %v4313_v6 = vmul.f32 1.442695, %v4310_v41  ;;  %v4309_v44 = vsub.f32 %v4295_v45, %v4305_v43  ;;  %v7619_v45 = vld [vmem:[%s11516_s4 + $0x478] sm:$0xff] }
0x1f0d   :  { %9393 = vpow2.f32 %v4313_v6  ;;  %v4311_v49 = vmul.f32 1.442695, %v4309_v44 }
0x1f0f   :  { %9395 = vpow2.f32 %v4311_v49 }
0x1f12   :  { %v9390_v52 = vpop.eup %9389 }
0x1f13   :  { %v4128_v55 = vsel %vm556_vm5, %v9390_v52, 0.0 }
0x1f14   :  { %v9392_v59 = vpop.eup %9391  ;;  %4129 = vadd.xlane.f32.xlu0 %v4128_v55  ;;  %v8991_v55 = vpop.f32.mrf.mxu0 }
0x1f15   :  { %v4125_v60 = vsel %vm556_vm5, %v9392_v59, 0.0 }
0x1f16   :  { %4126 = vadd.xlane.f32.xlu1 %v4125_v60 }
0x1f1a   :  { %v9394_v61 = vpop.eup %9393 }
0x1f1b   :  { %v4318_v62 = vsel %vm556_vm5, %v9394_v61, 0.0 }
0x1f1c   :  { %v9396_v48 = vpop.eup %9395  ;;  %4319 = vadd.xlane.f32.xlu0 %v4318_v62 }
0x1f1d   :  { %v4315_v0 = vsel %vm556_vm5, %v9396_v48, 0.0 }
0x1f1e   :  { %4316 = vadd.xlane.f32.xlu1 %v4315_v0 }
0x1f9d   :  { %v4130_v58 = vpop.xlane.xlu0 %4129 }
0x1f9e   :  { %9397 = vrcp.f32 %v4130_v58 }
0x1f9f   :  { %v4127_v1 = vpop.xlane.xlu1 %4126 }
0x1fa0   :  { %9399 = vrcp.f32 %v4127_v1 }
0x1fa5   :  { %v4320_v8 = vpop.xlane.xlu0 %4319 }
0x1fa6   :  { %9401 = vrcp.f32 %v4320_v8 }
0x1fa7   :  { %v4317_v35 = vpop.xlane.xlu1 %4316 }
0x1fa8   :  { %9403 = vrcp.f32 %v4317_v35 }
0x1fab   :  { %v9398_v21 = vpop.eup %9397 }
0x1fac   :  { %v4134_v30 = vmul.f32 %v9398_v21, %v9390_v52 }
0x1fad   :  { %v9400_v47 = vpop.eup %9399 }
0x1fae   :  { %v4133_v26 = vmul.f32 %v9400_v47, %v9392_v59 }
0x1fb0   :  { %8931 = vmatprep.mubr.msk.f32.mxu1 %vm556_vm5, %v4133_v26 }
0x1fb1   :  { %8932 = vmatmul.mubr.msk.f32.vlgmr.msra.gmra.mxu1 %vm556_vm5, %v4134_v30 }
0x1fb2   :  { %8942 = vmatpush3.msra.mxu1 %v10739_v63  ;;  %v7601_v63 = vld [vmem:[%s11516_s4 + $0x3e8] sm:$0xff] }
0x1fb3   :  { %8943 = vmatprep.subr.mxu1 %v4017_v51  ;;  %v9402_v50 = vpop.eup %9401 }
0x1fb4   :  { %8944 = vmatpush3.msra.mxu1 %v4017_v51  ;;  %v4324_v33 = vmul.f32 %v9402_v50, %v9394_v61  ;;  %v4594_v61 = vpop.f32.mrf.mxu0 }
0x1fb5   :  { %v9404_v31 = vpop.eup %9403  ;;  %8948 = vmatprep.subr.mxu1 %v7603_v16 }
0x1fb6   :  { %v4323_v2 = vmul.f32 %v9404_v31, %v9396_v48 }
0x1fb8   :  { %8945 = vmatprep.mubr.msk.f32.mxu1 %vm556_vm5, %v4323_v2 }
0x1fb9   :  { %8946 = vmatmul.mubr.msk.f32.vlgmr.msra.gmra.mxu1 %vm556_vm5, %v4324_v33 }
0x1fba   :  { %8949 = vmatpush3.msra.mxu1 %v7603_v16  ;;  %8964 = vmatprep.mubr.msk.f32.mxu1 %vm193_vm4, %v10673_v19 }
0x1fbb   :  { %8950 = vmatprep.subr.mxu1 %v7602_v46 }
0x1fbc   :  { %8951 = vmatpush3.msra.mxu1 %v7602_v46 }
0x1fbd   :  { %8952 = vmatprep.subr.mxu1 %v7601_v63 }
0x1fbe   :  { %8953 = vmatpush3.msra.mxu1 %v7601_v63 }
0x1fbf   :  { %8954 = vmatprep.subr.mxu1 %v7600_v56 }
0x1fc0   :  { %8955 = vmatpush3.msra.mxu1 %v7600_v56 }
0x1fc1   :  { %8956 = vmatprep.subr.mxu1 %v7599_v20 }
0x1fc2   :  { %8957 = vmatpush3.msra.mxu1 %v7599_v20 }
0x1fc3   :  { %8958 = vmatprep.subr.mxu1 %v7598_v23 }
0x1fc4   :  { %8959 = vmatpush3.msra.mxu1 %v7598_v23 }
0x1fc5   :  { %8960 = vmatprep.subr.mxu1 %v7597_v11 }
0x1fc6   :  { %8961 = vmatpush3.msra.mxu1 %v7597_v11  ;;  %v7543_v11 = vld [vmem:[%s11517_s5 + $0x58] sm:$0xff] }
0x1fc7   :  { %8962 = vmatprep.subr.mxu1 %v7596_v24 }
0x1fc8   :  { %8963 = vmatpush3.msra.mxu1 %v7596_v24  ;;  %v7542_v24 = vld [vmem:[%s11517_s5 + $0x50] sm:$0xff] }
0x1fc9   :  { %8965 = vmatmul.mubr.msk.f32.vlgmr.msra.gmra.mxu1 %vm193_vm4, %v10682_v22  ;;  %8992 = vmatprep.subr.mxu1 %v7619_v45 }
0x1fca   :  { %8967 = vmatprep.mubr.msk.f32.mxu1 %vm193_vm4, %v10715_v40  ;;  %8993 = vmatpush3.msra.mxu1 %v7619_v45 }
0x1fcb   :  { %8994 = vmatprep.subr.mxu1 %v7618_v25 }
0x1fcc   :  { %8995 = vmatpush3.msra.mxu1 %v7618_v25 }
0x1fcd   :  { %8968 = vmatmul.mubr.msk.f32.gmra.mxu1 %vm193_vm4, %v10724_v54  ;;  %8996 = vmatprep.subr.mxu1 %v7617_v39 }
0x1fce   :  { %8997 = vmatpush3.msra.mxu1 %v7617_v39  ;;  %9008 = vmatprep.mubr.msk.f32.mxu1 %vm193_vm4, %v10673_v19 }
0x1fcf   :  { %8998 = vmatprep.subr.mxu1 %v7616_v29 }
0x1fd0   :  { %8999 = vmatpush3.msra.mxu1 %v7616_v29 }
0x1fd1   :  { %9000 = vmatprep.subr.mxu1 %v7615_v27 }
0x1fd2   :  { %9001 = vmatpush3.msra.mxu1 %v7615_v27 }
0x1fd3   :  { %9002 = vmatprep.subr.mxu1 %v7614_v15 }
0x1fd4   :  { %9003 = vmatpush3.msra.mxu1 %v7614_v15 }
0x1fd5   :  { %9004 = vmatprep.subr.mxu1 %v7613_v14 }
0x1fd6   :  { %9005 = vmatpush3.msra.mxu1 %v7613_v14 }
0x1fd7   :  { %9006 = vmatprep.subr.mxu1 %v7612_v37 }
0x1fd8   :  { %9007 = vmatpush3.msra.mxu1 %v7612_v37 }
0x1fd9   :  { %9009 = vmatmul.mubr.msk.f32.vlgmr.msra.gmra.mxu1 %vm193_vm4, %v10682_v22 }
0x1fda   :  { %9011 = vmatprep.mubr.msk.f32.mxu1 %vm193_vm4, %v10715_v40 }
0x1fdd   :  { %9012 = vmatmul.mubr.msk.f32.gmra.mxu1 %vm193_vm4, %v10724_v54 }
0x2071   :  { %v10870_v32 = vpop.f32.mrf.mxu1 }
0x2073   :  { %v10872_v36 = vpop.f32.mrf.mxu1 }
0x2079   :  { %v10874_v4 = vpop.f32.mrf.mxu1 }
0x207b   :  { %v10876_v42 = vpop.f32.mrf.mxu1 }
0x2089   :  { %v8966_v41 = vpop.f32.mrf.mxu1 }
0x208b   :  { %v4499_v43 = vpop.f32.mrf.mxu1 }
0x208c   :  { %9018 = vmatprep.mubr.msk.f32.mxu0 %vm556_vm5, %v4499_v43 }
0x208d   :  { %9019 = vmatmul.mubr.msk.f32.vlgmr.msra.gmra.mxu0 %vm556_vm5, %v8966_v41  ;;  %v8969_v6 = vpop.f32.mrf.mxu1 }
0x208f   :  { %v4509_v44 = vpop.f32.mrf.mxu1 }
0x2099   :  { %v9010_v49 = vpop.f32.mrf.mxu1 }
0x209a   :  { %9021 = vmatprep.subr.mxu0 %v9010_v49 }
0x209b   :  { %v4669_v52 = vpop.f32.mrf.mxu1  ;;  %9022 = vmatpush3.msra.mxu0 %v9010_v49 }
0x209c   :  { %9023 = vmatprep.subr.mxu0 %v4669_v52 }
0x209d   :  { %v9013_v59 = vpop.f32.mrf.mxu1  ;;  %9024 = vmatpush3.msra.mxu0 %v4669_v52 }
0x209e   :  { %9028 = vmatprep.subr.msk.mxu0 %vm556_vm5, %v8991_v55  ;;  %9035 = vmatprep.subr.mxu1 %v9013_v59 }
0x209f   :  { %v4679_v60 = vpop.f32.mrf.mxu1  ;;  %9036 = vmatpush3.msra.mxu1 %v9013_v59 }
0x20a0   :  { %9037 = vmatprep.subr.mxu1 %v4679_v60 }
0x20a1   :  { %9038 = vmatpush3.msra.mxu1 %v4679_v60 }
0x214d   :  { %v9020_v62 = vpop.f32.mrf.mxu0 }
0x214e   :  { %v4772_v48 = vadd.f32 %v9020_v62, %v9831_v12  ;;  %v7541_v62 = vld [vmem:[%s11517_s5 + $0x48] sm:$0xff] }
0x214f   :  { %v4766_v0 = vpop.f32.mrf.mxu0  ;;  %9052 = vmatprep.subr.mxu1 %v7541_v62 }
0x2150   :  { %v4767_v58 = vadd.f32 %v4766_v0, %v9833_v13  ;;  %v4778_v1 = vsel %vm556_vm5, %v4772_v48, -inf  ;;  %v7658_v0 = vld [vmem:[%s11516_s4 + $0x4b0] sm:$0xff] }
0x2151   :  { %4779 = vmax.xlane.f32.xlu0 %v4778_v1  ;;  %v7656_v1 = vld [vmem:[%s11516_s4 + $0x4a0] sm:$0xff] }
0x2152   :  { %v4775_v8 = vsel %vm556_vm5, %v4767_v58, -inf }
0x2153   :  { %4776 = vmax.xlane.f32.xlu1 %v4775_v8  ;;  %v7655_v8 = vld [vmem:[%s11516_s4 + $0x498] sm:$0xff] }
0x21da   :  { %v4780_v35 = vpop.xlane.xlu0 %4779 }
0x21db   :  { %v4782_v21 = vsub.f32 %v4772_v48, %v4780_v35  ;;  %v7659_v48 = vld [vmem:[%s11516_s4 + $0x4b8] sm:$0xff] }
0x21dc   :  { %v4777_v47 = vpop.xlane.xlu1 %4776 }
0x21dd   :  { %v4785_v26 = vmul.f32 1.442695, %v4782_v21  ;;  %v4781_v30 = vsub.f32 %v4767_v58, %v4777_v47  ;;  %v7657_v58 = vld [vmem:[%s11516_s4 + $0x4a8] sm:$0xff] }
0x21df   :  { %9405 = vpow2.f32 %v4785_v26  ;;  %v4783_v51 = vmul.f32 1.442695, %v4781_v30 }
0x21e1   :  { %9407 = vpow2.f32 %v4783_v51 }
0x21ec   :  { %v9406_v16 = vpop.eup %9405 }
0x21ed   :  { %v4790_v50 = vsel %vm556_vm5, %v9406_v16, 0.0 }
0x21ee   :  { %v9408_v31 = vpop.eup %9407  ;;  %4791 = vadd.xlane.f32.xlu0 %v4790_v50  ;;  %v7667_v50 = vld [vmem:[%s11516_s4 + $0x4f8] sm:$0xff] }
0x21ef   :  { %v4787_v2 = vsel %vm556_vm5, %v9408_v31, 0.0 }
0x21f0   :  { %4788 = vadd.xlane.f32.xlu1 %v4787_v2  ;;  %v7664_v2 = vld [vmem:[%s11516_s4 + $0x4e0] sm:$0xff] }
0x2277   :  { %v4792_v33 = vpop.xlane.xlu0 %4791 }
0x2278   :  { %9409 = vrcp.f32 %v4792_v33  ;;  %v7660_v33 = vld [vmem:[%s11516_s4 + $0x4c0] sm:$0xff] }
0x2279   :  { %v4789_v46 = vpop.xlane.xlu1 %4788 }
0x227a   :  { %9411 = vrcp.f32 %v4789_v46  ;;  %v7654_v46 = vld [vmem:[%s11516_s4 + $0x490] sm:$0xff] }
0x2285   :  { %v9410_v63 = vpop.eup %9409 }
0x2286   :  { %v4796_v23 = vmul.f32 %v9410_v63, %v9406_v16  ;;  %v7540_v16 = vld [vmem:[%s11517_s5 + $0x40] sm:$0xff]  ;;  %v7653_v63 = vld [vmem:[%s11516_s4 + $0x488] sm:$0xff] }
0x2287   :  { %v9412_v56 = vpop.eup %9411 }
0x2288   :  { %v4795_v20 = vmul.f32 %v9412_v56, %v9408_v31  ;;  %v7666_v31 = vld [vmem:[%s11516_s4 + $0x4f0] sm:$0xff]  ;;  %v7652_v56 = vld [vmem:[%s11516_s4 + $0x480] sm:$0xff] }
0x228a   :  { %9025 = vmatprep.mubr.msk.f32.mxu0 %vm556_vm5, %v4795_v20  ;;  %v7675_v20 = vld [vmem:[%s11516_s4 + $0x538] sm:$0xff] }
0x228b   :  { %9026 = vmatmul.mubr.msk.f32.vlgmr.msra.gmra.mxu0 %vm556_vm5, %v4796_v23 }
0x228c   :  { %9029 = vmatpush3.xpose.msk.msra.mxu0 %vm556_vm5, %v8991_v55  ;;  %9032 = vmatprep.mubr.msk.f32.mxu0 %vm556_vm5, %v4509_v44 }
0x228d   :  { %9030 = vmatprep.subr.msk.mxu0 %vm556_vm5, %v4594_v61 }
0x2290   :  { %9031 = vmatpush3.xpose.msk.msra.mxu0 %vm556_vm5, %v4594_v61 }
0x2291   :  { %9042 = vmatprep.subr.mxu0 %v7543_v11 }
0x2293   :  { %9033 = vmatmul.mubr.msk.f32.vlgmr.msra.gmra.mxu0 %vm556_vm5, %v8969_v6 }
0x2294   :  { %9043 = vmatpush3.msra.mxu0 %v7543_v11 }
0x2295   :  { %9044 = vmatprep.subr.mxu0 %v7542_v24 }
0x2296   :  { %9045 = vmatpush3.msra.mxu0 %v7542_v24 }
0x2297   :  { %9062 = vmatprep.subr.mxu0 %v7659_v48 }
0x234b   :  { %v9027_v45 = vpop.f32.mrf.mxu0 }
0x234d   :  { %v4869_v25 = vpop.f32.mrf.mxu0 }
0x234e   :  { %9046 = vmatprep.mubr.msk.f32.mxu0 %vm556_vm5, %v4869_v25  ;;  %v7673_v25 = vld [vmem:[%s11516_s4 + $0x528] sm:$0xff] }
0x234f   :  { %9047 = vmatmul.mubr.msk.f32.vlgmr.msra.gmra.mxu0 %vm556_vm5, %v9027_v45  ;;  %v7674_v45 = vld [vmem:[%s11516_s4 + $0x530] sm:$0xff] }
0x2350   :  { %9063 = vmatpush3.msra.mxu0 %v7659_v48 }
0x2351   :  { %9064 = vmatprep.subr.mxu0 %v7658_v0 }
0x2352   :  { %9065 = vmatpush3.msra.mxu0 %v7658_v0 }
0x2353   :  { %v9034_v39 = vpop.f32.mrf.mxu0  ;;  %9066 = vmatprep.subr.mxu0 %v7657_v58 }
0x2354   :  { %v4962_v29 = vadd.f32 %v9034_v39, %v9831_v12  ;;  %9067 = vmatpush3.msra.mxu0 %v7657_v58 }
0x2355   :  { %v4956_v27 = vpop.f32.mrf.mxu0  ;;  %9068 = vmatprep.subr.mxu0 %v7656_v1 }
0x2356   :  { %v4957_v15 = vadd.f32 %v4956_v27, %v9833_v13  ;;  %v4968_v14 = vsel %vm556_vm5, %v4962_v29, -inf  ;;  %9069 = vmatpush3.msra.mxu0 %v7656_v1  ;;  %v7671_v27 = vld [vmem:[%s11516_s4 + $0x518] sm:$0xff] }
0x2357   :  { %4969 = vmax.xlane.f32.xlu0 %v4968_v14  ;;  %9070 = vmatprep.subr.mxu0 %v7655_v8  ;;  %v7670_v14 = vld [vmem:[%s11516_s4 + $0x510] sm:$0xff] }
0x2358   :  { %v4965_v37 = vsel %vm556_vm5, %v4957_v15, -inf  ;;  %9071 = vmatpush3.msra.mxu0 %v7655_v8 }
0x2359   :  { %4966 = vmax.xlane.f32.xlu1 %v4965_v37  ;;  %9072 = vmatprep.subr.mxu0 %v7654_v46  ;;  %v7669_v37 = vld [vmem:[%s11516_s4 + $0x508] sm:$0xff] }
0x235a   :  { %9073 = vmatpush3.msra.mxu0 %v7654_v46 }
0x235b   :  { %9074 = vmatprep.subr.mxu0 %v7653_v63 }
0x235c   :  { %9075 = vmatpush3.msra.mxu0 %v7653_v63 }
0x235d   :  { %9076 = vmatprep.subr.mxu0 %v7652_v56 }
0x235e   :  { %9077 = vmatpush3.msra.mxu0 %v7652_v56 }
0x235f   :  { %9106 = vmatprep.subr.mxu0 %v7675_v20 }
0x23e0   :  { %v4970_v41 = vpop.xlane.xlu0 %4969 }
0x23e1   :  { %v4972_v43 = vsub.f32 %v4962_v29, %v4970_v41  ;;  %v7672_v29 = vld [vmem:[%s11516_s4 + $0x520] sm:$0xff] }
0x23e2   :  { %v4967_v6 = vpop.xlane.xlu1 %4966 }
0x23e3   :  { %v4975_v44 = vmul.f32 1.442695, %v4972_v43  ;;  %v4971_v49 = vsub.f32 %v4957_v15, %v4967_v6  ;;  %v7668_v43 = vld [vmem:[%s11516_s4 + $0x500] sm:$0xff] }
0x23e5   :  { %9413 = vpow2.f32 %v4975_v44  ;;  %v4973_v52 = vmul.f32 1.442695, %v4971_v49 }
0x23e7   :  { %9415 = vpow2.f32 %v4973_v52 }
0x23f2   :  { %v9414_v55 = vpop.eup %9413 }
0x23f3   :  { %v4980_v59 = vsel %vm556_vm5, %v9414_v55, 0.0 }
0x23f4   :  { %v9416_v60 = vpop.eup %9415  ;;  %4981 = vadd.xlane.f32.xlu0 %v4980_v59 }
0x23f5   :  { %v4977_v61 = vsel %vm556_vm5, %v9416_v60, 0.0 }
0x23f6   :  { %4978 = vadd.xlane.f32.xlu1 %v4977_v61 }
0x240f   :  { %v11034_v49 = vpop.f32.mrf.mxu0 }
0x2411   :  { %v11036_v52 = vpop.f32.mrf.mxu0 }
0x247d   :  { %v4982_v35 = vpop.xlane.xlu0 %4981 }
0x247e   :  { %9417 = vrcp.f32 %v4982_v35 }
0x247f   :  { %v4979_v21 = vpop.xlane.xlu1 %4978 }
0x2480   :  { %9419 = vrcp.f32 %v4979_v21 }
0x248b   :  { %v9418_v47 = vpop.eup %9417 }
0x248c   :  { %v4986_v51 = vmul.f32 %v9418_v47, %v9414_v55 }
0x248d   :  { %v9420_v26 = vpop.eup %9419 }
0x248e   :  { %v4985_v30 = vmul.f32 %v9420_v26, %v9416_v60 }
0x2490   :  { %9039 = vmatprep.mubr.msk.f32.mxu1 %vm556_vm5, %v4985_v30 }
0x2491   :  { %9040 = vmatmul.mubr.msk.f32.vlgmr.msra.gmra.mxu1 %vm556_vm5, %v4986_v51 }
0x2492   :  { %9053 = vmatpush3.msra.mxu1 %v7541_v62  ;;  %9056 = vmatprep.mubr.msk.f32.mxu1 %vm556_vm5, %v10872_v36  ;;  %v7665_v36 = vld [vmem:[%s11516_s4 + $0x4e8] sm:$0xff] }
0x2493   :  { %9054 = vmatprep.subr.mxu1 %v7540_v16 }
0x2494   :  { %9055 = vmatpush3.msra.mxu1 %v7540_v16 }
0x2495   :  { %9084 = vmatprep.subr.mxu1 %v7667_v50  ;;  %9057 = vmatmul.mubr.msk.f32.vlgmr.msra.gmra.mxu1 %vm556_vm5, %v10870_v32  ;;  %v7663_v32 = vld [vmem:[%s11516_s4 + $0x4d8] sm:$0xff] }
0x2496   :  { %9085 = vmatpush3.msra.mxu1 %v7667_v50  ;;  %9059 = vmatprep.mubr.msk.f32.mxu1 %vm556_vm5, %v10876_v42  ;;  %v7662_v42 = vld [vmem:[%s11516_s4 + $0x4d0] sm:$0xff] }
0x2497   :  { %9086 = vmatprep.subr.mxu1 %v7666_v31 }
0x2498   :  { %9087 = vmatpush3.msra.mxu1 %v7666_v31 }
0x2499   :  { %9088 = vmatprep.subr.mxu1 %v7665_v36  ;;  %9060 = vmatmul.mubr.msk.f32.gmra.mxu1 %vm556_vm5, %v10874_v4  ;;  %v7661_v4 = vld [vmem:[%s11516_s4 + $0x4c8] sm:$0xff] }
0x249a   :  { %9089 = vmatpush3.msra.mxu1 %v7665_v36  ;;  %9100 = vmatprep.mubr.msk.f32.mxu1 %vm193_vm4, %v10673_v19 }
0x249b   :  { %9090 = vmatprep.subr.mxu1 %v7664_v2 }
0x249c   :  { %9091 = vmatpush3.msra.mxu1 %v7664_v2 }
0x249d   :  { %9092 = vmatprep.subr.mxu1 %v7663_v32 }
0x249e   :  { %9093 = vmatpush3.msra.mxu1 %v7663_v32 }
0x249f   :  { %9094 = vmatprep.subr.mxu1 %v7662_v42 }
0x24a0   :  { %9095 = vmatpush3.msra.mxu1 %v7662_v42 }
0x24a1   :  { %9096 = vmatprep.subr.mxu1 %v7661_v4 }
0x24a2   :  { %9097 = vmatpush3.msra.mxu1 %v7661_v4 }
0x24a3   :  { %9098 = vmatprep.subr.mxu1 %v7660_v33 }
0x24a4   :  { %9099 = vmatpush3.msra.mxu1 %v7660_v33 }
0x24a5   :  { %9101 = vmatmul.mubr.msk.f32.vlgmr.msra.gmra.mxu1 %vm193_vm4, %v10682_v22 }
0x24a6   :  { %9103 = vmatprep.mubr.msk.f32.mxu1 %vm193_vm4, %v10715_v40 }
0x24a9   :  { %9104 = vmatmul.mubr.msk.f32.gmra.mxu1 %vm193_vm4, %v10724_v54 }
0x2551   :  { %v9041_v23 = vpop.f32.mrf.mxu1 }
0x2553   :  { %v5059_v11 = vpop.f32.mrf.mxu1 }
0x2554   :  { %9049 = vmatprep.mubr.msk.f32.mxu0 %vm556_vm5, %v5059_v11 }
0x2555   :  { %9050 = vmatmul.mubr.msk.f32.gmra.mxu0 %vm556_vm5, %v9041_v23  ;;  %v10987_v24 = vpop.f32.mrf.mxu1 }
0x2556   :  { %9078 = vmatprep.mubr.msk.f32.mxu0 %vm193_vm4, %v10673_v19 }
0x2557   :  { %v10999_v39 = vpop.f32.mrf.mxu1 }
0x2559   :  { %9079 = vmatmul.mubr.msk.f32.vlgmr.msra.gmra.mxu0 %vm193_vm4, %v10682_v22  ;;  %v11011_v15 = vpop.f32.mrf.mxu1 }
0x255a   :  { %9107 = vmatpush3.msra.mxu0 %v7675_v20  ;;  %9081 = vmatprep.mubr.msk.f32.mxu0 %vm193_vm4, %v10715_v40 }
0x255b   :  { %9108 = vmatprep.subr.mxu0 %v7674_v45  ;;  %v11019_v41 = vpop.f32.mrf.mxu1 }
0x255c   :  { %9109 = vmatpush3.msra.mxu0 %v7674_v45 }
0x255d   :  { %9110 = vmatprep.subr.mxu0 %v7673_v25  ;;  %9082 = vmatmul.mubr.msk.f32.gmra.mxu0 %vm193_vm4, %v10724_v54 }
0x255e   :  { %9111 = vmatpush3.msra.mxu0 %v7673_v25  ;;  %9122 = vmatprep.mubr.msk.f32.mxu0 %vm193_vm4, %v10673_v19 }
0x255f   :  { %9112 = vmatprep.subr.mxu0 %v7672_v29 }
0x2560   :  { %9113 = vmatpush3.msra.mxu0 %v7672_v29 }
0x2561   :  { %9114 = vmatprep.subr.mxu0 %v7671_v27 }
0x2562   :  { %9115 = vmatpush3.msra.mxu0 %v7671_v27  ;;  %v7545_v27 = vld [vmem:[%s11517_s5 + $0x68] sm:$0xff] }
0x2563   :  { %9116 = vmatprep.subr.mxu0 %v7670_v14 }
0x2564   :  { %9117 = vmatpush3.msra.mxu0 %v7670_v14  ;;  %v7544_v14 = vld [vmem:[%s11517_s5 + $0x60] sm:$0xff] }
0x2565   :  { %v9102_v6 = vpop.f32.mrf.mxu1  ;;  %9118 = vmatprep.subr.mxu0 %v7669_v37 }
0x2566   :  { %9119 = vmatpush3.msra.mxu0 %v7669_v37  ;;  %9128 = vmatprep.subr.msk.mxu1 %vm556_vm5, %v9102_v6 }
0x2567   :  { %v5440_v44 = vpop.f32.mrf.mxu1  ;;  %9120 = vmatprep.subr.mxu0 %v7668_v43  ;;  %9129 = vmatpush3.xpose.msk.msra.mxu1 %vm556_vm5, %v9102_v6 }
0x2568   :  { %9121 = vmatpush3.msra.mxu0 %v7668_v43  ;;  %9130 = vmatprep.subr.msk.mxu1 %vm556_vm5, %v5440_v44 }
0x2569   :  { %9123 = vmatmul.mubr.msk.f32.vlgmr.msra.gmra.mxu0 %vm193_vm4, %v10682_v22  ;;  %v9105_v1 = vpop.f32.mrf.mxu1 }
0x256a   :  { %9125 = vmatprep.mubr.msk.f32.mxu0 %vm193_vm4, %v10715_v40 }
0x256b   :  { %9131 = vmatpush3.xpose.msk.msra.mxu1 %vm556_vm5, %v5440_v44  ;;  %v5450_v21 = vpop.f32.mrf.mxu1 }
0x256d   :  { %9126 = vmatmul.mubr.msk.f32.gmra.mxu0 %vm193_vm4, %v10724_v54 }
0x2615   :  { %v11038_v55 = vpop.f32.mrf.mxu0 }
0x2617   :  { %v11040_v59 = vpop.f32.mrf.mxu0 }
0x2619   :  { %v9080_v60 = vpop.f32.mrf.mxu0 }
0x261b   :  { %v5355_v61 = vpop.f32.mrf.mxu0 }
0x261c   :  { %9132 = vmatprep.mubr.msk.f32.mxu1 %vm556_vm5, %v5355_v61 }
0x261d   :  { %9133 = vmatmul.mubr.msk.f32.vlgmr.msra.gmra.mxu1 %vm556_vm5, %v9080_v60  ;;  %v9083_v62 = vpop.f32.mrf.mxu0 }
0x261f   :  { %v5365_v48 = vpop.f32.mrf.mxu0 }
0x2629   :  { %v9124_v0 = vpop.f32.mrf.mxu0 }
0x262a   :  { %9135 = vmatprep.subr.mxu1 %v9124_v0 }
0x262b   :  { %v5525_v58 = vpop.f32.mrf.mxu0  ;;  %9136 = vmatpush3.msra.mxu1 %v9124_v0 }
0x262c   :  { %9137 = vmatprep.subr.mxu1 %v5525_v58 }
0x262d   :  { %v9127_v8 = vpop.f32.mrf.mxu0  ;;  %9138 = vmatpush3.msra.mxu1 %v5525_v58 }
0x262e   :  { %9142 = vmatprep.subr.msk.mxu1 %vm556_vm5, %v9105_v1  ;;  %9149 = vmatprep.subr.mxu0 %v9127_v8 }
0x262f   :  { %v5535_v35 = vpop.f32.mrf.mxu0  ;;  %9150 = vmatpush3.msra.mxu0 %v9127_v8 }
0x2630   :  { %9151 = vmatprep.subr.mxu0 %v5535_v35 }
0x2631   :  { %9152 = vmatpush3.msra.mxu0 %v5535_v35 }
0x26dd   :  { %v9134_v47 = vpop.f32.mrf.mxu1 }
0x26de   :  { %v5628_v26 = vadd.f32 %v9134_v47, %v9831_v12 }
0x26df   :  { %v5622_v30 = vpop.f32.mrf.mxu1 }
0x26e0   :  { %v5623_v51 = vadd.f32 %v5622_v30, %v9833_v13  ;;  %v5634_v16 = vsel %vm556_vm5, %v5628_v26, -inf }
0x26e1   :  { %5635 = vmax.xlane.f32.xlu0 %v5634_v16  ;;  %v5249_v16 = vadd.f32 %v10987_v24, %v11034_v49  ;;  %v7717_v24 = vld [vmem:[%s11516_s4 + $0x5a8] sm:$0xff]  ;;  %v7716_v49 = vld [vmem:[%s11516_s4 + $0x5a0] sm:$0xff] }
0x26e2   :  { %v5631_v50 = vsel %vm556_vm5, %v5623_v51, -inf }
0x26e3   :  { %5632 = vmax.xlane.f32.xlu1 %v5631_v50 }
0x276a   :  { %v5636_v31 = vpop.xlane.xlu0 %5635 }
0x276b   :  { %v5638_v36 = vsub.f32 %v5628_v26, %v5636_v31  ;;  %v7711_v31 = vld [vmem:[%s11516_s4 + $0x578] sm:$0xff] }
0x276c   :  { %v5633_v2 = vpop.xlane.xlu1 %5632  ;;  %9166 = vmatprep.subr.mxu0 %v7711_v31 }
0x276d   :  { %v5641_v32 = vmul.f32 1.442695, %v5638_v36  ;;  %v5637_v42 = vsub.f32 %v5623_v51, %v5633_v2  ;;  %v7719_v2 = vld [vmem:[%s11516_s4 + $0x5b8] sm:$0xff] }
0x276f   :  { %9421 = vpow2.f32 %v5641_v32  ;;  %v5639_v4 = vmul.f32 1.442695, %v5637_v42  ;;  %v7718_v32 = vld [vmem:[%s11516_s4 + $0x5b0] sm:$0xff] }
0x2771   :  { %9423 = vpow2.f32 %v5639_v4 }
0x277c   :  { %v9422_v33 = vpop.eup %9421 }
0x277d   :  { %v5646_v46 = vsel %vm556_vm5, %v9422_v33, 0.0 }
0x277e   :  { %v9424_v63 = vpop.eup %9423  ;;  %5647 = vadd.xlane.f32.xlu0 %v5646_v46 }
0x277f   :  { %v5643_v56 = vsel %vm556_vm5, %v9424_v63, 0.0 }
0x2780   :  { %5644 = vadd.xlane.f32.xlu1 %v5643_v56 }
0x2807   :  { %v5648_v20 = vpop.xlane.xlu0 %5647 }
0x2808   :  { %9425 = vrcp.f32 %v5648_v20  ;;  %v7710_v20 = vld [vmem:[%s11516_s4 + $0x570] sm:$0xff] }
0x2809   :  { %v5645_v23 = vpop.xlane.xlu1 %5644 }
0x280a   :  { %9427 = vrcp.f32 %v5645_v23  ;;  %v7709_v23 = vld [vmem:[%s11516_s4 + $0x568] sm:$0xff] }
0x2815   :  { %v9426_v11 = vpop.eup %9425 }
0x2816   :  { %v5652_v29 = vmul.f32 %v9426_v11, %v9422_v33  ;;  %v7708_v11 = vld [vmem:[%s11516_s4 + $0x560] sm:$0xff] }
0x2817   :  { %v9428_v45 = vpop.eup %9427 }
0x2818   :  { %v5651_v25 = vmul.f32 %v9428_v45, %v9424_v63  ;;  %v7707_v45 = vld [vmem:[%s11516_s4 + $0x558] sm:$0xff] }
0x281a   :  { %9139 = vmatprep.mubr.msk.f32.mxu1 %vm556_vm5, %v5651_v25  ;;  %v7706_v25 = vld [vmem:[%s11516_s4 + $0x550] sm:$0xff] }
0x281b   :  { %9140 = vmatmul.mubr.msk.f32.vlgmr.msra.gmra.mxu1 %vm556_vm5, %v5652_v29  ;;  %v7705_v29 = vld [vmem:[%s11516_s4 + $0x548] sm:$0xff] }
0x281c   :  { %9143 = vmatpush3.xpose.msk.msra.mxu1 %vm556_vm5, %v9105_v1  ;;  %9146 = vmatprep.mubr.msk.f32.mxu1 %vm556_vm5, %v5365_v48 }
0x281d   :  { %9144 = vmatprep.subr.msk.mxu1 %vm556_vm5, %v5450_v21 }
0x2820   :  { %9145 = vmatpush3.xpose.msk.msra.mxu1 %vm556_vm5, %v5450_v21 }
0x2821   :  { %9156 = vmatprep.subr.mxu1 %v7545_v27 }
0x2823   :  { %9147 = vmatmul.mubr.msk.f32.vlgmr.msra.gmra.mxu1 %vm556_vm5, %v9083_v62 }
0x2824   :  { %9157 = vmatpush3.msra.mxu1 %v7545_v27  ;;  %v7704_v27 = vld [vmem:[%s11516_s4 + $0x540] sm:$0xff] }
0x2825   :  { %9158 = vmatprep.subr.mxu1 %v7544_v14 }
0x2826   :  { %9159 = vmatpush3.msra.mxu1 %v7544_v14  ;;  %v7727_v14 = vld [vmem:[%s11516_s4 + $0x5f8] sm:$0xff] }
0x2827   :  { %9188 = vmatprep.subr.mxu1 %v7719_v2 }
0x28db   :  { %v9141_v37 = vpop.f32.mrf.mxu1 }
0x28dd   :  { %v5725_v43 = vpop.f32.mrf.mxu1 }
0x28de   :  { %9160 = vmatprep.mubr.msk.f32.mxu1 %vm556_vm5, %v5725_v43  ;;  %v7725_v43 = vld [vmem:[%s11516_s4 + $0x5e8] sm:$0xff] }
0x28df   :  { %9161 = vmatmul.mubr.msk.f32.vlgmr.msra.gmra.mxu1 %vm556_vm5, %v9141_v37  ;;  %v7726_v37 = vld [vmem:[%s11516_s4 + $0x5f0] sm:$0xff] }
0x28e0   :  { %9189 = vmatpush3.msra.mxu1 %v7719_v2 }
0x28e1   :  { %9190 = vmatprep.subr.mxu1 %v7718_v32 }
0x28e2   :  { %9191 = vmatpush3.msra.mxu1 %v7718_v32 }
0x28e3   :  { %v9148_v6 = vpop.f32.mrf.mxu1  ;;  %9192 = vmatprep.subr.mxu1 %v7717_v24 }
0x28e4   :  { %v5818_v44 = vadd.f32 %v9148_v6, %v9831_v12  ;;  %9193 = vmatpush3.msra.mxu1 %v7717_v24  ;;  %v7724_v6 = vld [vmem:[%s11516_s4 + $0x5e0] sm:$0xff] }
0x28e5   :  { %v5812_v60 = vpop.f32.mrf.mxu1  ;;  %9194 = vmatprep.subr.mxu1 %v7716_v49 }
0x28e6   :  { %v5813_v61 = vadd.f32 %v5812_v60, %v9833_v13  ;;  %v5824_v62 = vsel %vm556_vm5, %v5818_v44, -inf  ;;  %9195 = vmatpush3.msra.mxu1 %v7716_v49  ;;  %v7722_v60 = vld [vmem:[%s11516_s4 + $0x5d0] sm:$0xff] }
0x28e7   :  { %5825 = vmax.xlane.f32.xlu0 %v5824_v62  ;;  %v7720_v62 = vld [vmem:[%s11516_s4 + $0x5c0] sm:$0xff] }
0x28e8   :  { %v5821_v48 = vsel %vm556_vm5, %v5813_v61, -inf }
0x28e9   :  { %5822 = vmax.xlane.f32.xlu1 %v5821_v48  ;;  %v7715_v48 = vld [vmem:[%s11516_s4 + $0x598] sm:$0xff] }
0x28ea   :  { %9196 = vmatprep.subr.mxu1 %v7715_v48 }
0x28eb   :  { %9197 = vmatpush3.msra.mxu1 %v7715_v48  ;;  %v7547_v48 = vld [vmem:[%s11517_s5 + $0x78] sm:$0xff] }
0x2970   :  { %v5826_v0 = vpop.xlane.xlu0 %5825 }
0x2971   :  { %v5828_v58 = vsub.f32 %v5818_v44, %v5826_v0  ;;  %v7723_v44 = vld [vmem:[%s11516_s4 + $0x5d8] sm:$0xff]  ;;  %v7714_v0 = vld [vmem:[%s11516_s4 + $0x590] sm:$0xff] }
0x2972   :  { %v5823_v1 = vpop.xlane.xlu1 %5822  ;;  %9198 = vmatprep.subr.mxu1 %v7714_v0 }
0x2973   :  { %v5831_v8 = vmul.f32 1.442695, %v5828_v58  ;;  %v5827_v35 = vsub.f32 %v5813_v61, %v5823_v1  ;;  %v7721_v61 = vld [vmem:[%s11516_s4 + $0x5c8] sm:$0xff]  ;;  %9199 = vmatpush3.msra.mxu1 %v7714_v0  ;;  %v7712_v1 = vld [vmem:[%s11516_s4 + $0x580] sm:$0xff]  ;;  %v7546_v0 = vld [vmem:[%s11517_s5 + $0x70] sm:$0xff] }
0x2974   :  { %v7713_v58 = vld [vmem:[%s11516_s4 + $0x588] sm:$0xff]  ;;  %s9471_s4 = scalar_lea.vmem %s7317_s21, 512 }
0x2975   :  { %9429 = vpow2.f32 %v5831_v8  ;;  %v5829_v21 = vmul.f32 1.442695, %v5827_v35  ;;  %9200 = vmatprep.subr.mxu1 %v7713_v58  ;;  %p9472_p0 = scmp.ne.s32.totalorder %s7317_s21, %s9471_s4  ;;  %p9477_p2 = scmp.lt.s32.totalorder %s9471_s4, %s9471_s4 }
0x2976   :  { %9201 = vmatpush3.msra.mxu1 %v7713_v58 }
0x2977   :  { %9431 = vpow2.f32 %v5829_v21  ;;  %9202 = vmatprep.subr.mxu1 %v7712_v1  ;;  %p9478_p3 = por %p9477_p2, %p9476_p1 }
0x2978   :  { %9203 = vmatpush3.msra.mxu1 %v7712_v1 }
0x2979   :  { %p9479_p4 = pnand %p9478_p3, %p9472_p0 }
0x2982   :  { %v9430_v47 = vpop.eup %9429 }
0x2983   :  { %v5836_v26 = vsel %vm556_vm5, %v9430_v47, 0.0 }
0x2984   :  { %v9432_v30 = vpop.eup %9431  ;;  %5837 = vadd.xlane.f32.xlu0 %v5836_v26 }
0x2985   :  { %v5833_v51 = vsel %vm556_vm5, %v9432_v30, 0.0 }
0x2986   :  { %5834 = vadd.xlane.f32.xlu1 %v5833_v51 }
0x299f   :  { %v9162_v50 = vpop.f32.mrf.mxu1 }
0x29a0   :  { %v11077_v36 = vadd.f32 %v9162_v50, %v5249_v16 }
0x2a0d   :  { %v5838_v42 = vpop.xlane.xlu0 %5837 }
0x2a0e   :  { %9433 = vrcp.f32 %v5838_v42 }
0x2a0f   :  { %v5835_v4 = vpop.xlane.xlu1 %5834 }
0x2a10   :  { %9435 = vrcp.f32 %v5835_v4 }
0x2a1b   :  { %v9434_v33 = vpop.eup %9433 }
0x2a1c   :  { %v5842_v56 = vmul.f32 %v9434_v33, %v9430_v47 }
0x2a1d   :  { %v9436_v46 = vpop.eup %9435 }
0x2a1e   :  { %v5841_v63 = vmul.f32 %v9436_v46, %v9432_v30 }
0x2a20   :  { %9153 = vmatprep.mubr.msk.f32.mxu0 %vm556_vm5, %v5841_v63 }
0x2a21   :  { %9154 = vmatmul.mubr.msk.f32.vlgmr.msra.gmra.mxu0 %vm556_vm5, %v5842_v56 }
0x2a22   :  { %9167 = vmatpush3.msra.mxu0 %v7711_v31  ;;  %9182 = vmatprep.mubr.msk.f32.mxu0 %vm193_vm4, %v10673_v19  ;;  %v5254_v31 = vadd.f32 %v11019_v41, %v11040_v59 }
0x2a23   :  { %9168 = vmatprep.subr.mxu0 %v7710_v20 }
0x2a24   :  { %9169 = vmatpush3.msra.mxu0 %v7710_v20 }
0x2a25   :  { %9170 = vmatprep.subr.mxu0 %v7709_v23 }
0x2a26   :  { %9171 = vmatpush3.msra.mxu0 %v7709_v23 }
0x2a27   :  { %9172 = vmatprep.subr.mxu0 %v7708_v11 }
0x2a28   :  { %9173 = vmatpush3.msra.mxu0 %v7708_v11 }
0x2a29   :  { %9174 = vmatprep.subr.mxu0 %v7707_v45 }
0x2a2a   :  { %9175 = vmatpush3.msra.mxu0 %v7707_v45 }
0x2a2b   :  { %9176 = vmatprep.subr.mxu0 %v7706_v25 }
0x2a2c   :  { %9177 = vmatpush3.msra.mxu0 %v7706_v25 }
0x2a2d   :  { %9178 = vmatprep.subr.mxu0 %v7705_v29 }
0x2a2e   :  { %9179 = vmatpush3.msra.mxu0 %v7705_v29 }
0x2a2f   :  { %9180 = vmatprep.subr.mxu0 %v7704_v27 }
0x2a30   :  { %9181 = vmatpush3.msra.mxu0 %v7704_v27 }
0x2a31   :  { %9183 = vmatmul.mubr.msk.f32.vlgmr.msra.gmra.mxu0 %vm193_vm4, %v10682_v22  ;;  %9210 = vmatprep.subr.mxu0 %v7727_v14 }
0x2a32   :  { %9185 = vmatprep.mubr.msk.f32.mxu0 %vm193_vm4, %v10715_v40  ;;  %9211 = vmatpush3.msra.mxu0 %v7727_v14 }
0x2a33   :  { %9212 = vmatprep.subr.mxu0 %v7726_v37 }
0x2a34   :  { %9213 = vmatpush3.msra.mxu0 %v7726_v37 }
0x2a35   :  { %9186 = vmatmul.mubr.msk.f32.gmra.mxu0 %vm193_vm4, %v10724_v54  ;;  %9214 = vmatprep.subr.mxu0 %v7725_v43 }
0x2a36   :  { %9215 = vmatpush3.msra.mxu0 %v7725_v43  ;;  %9226 = vmatprep.mubr.msk.f32.mxu0 %vm193_vm4, %v10673_v19 }
0x2a37   :  { %9216 = vmatprep.subr.mxu0 %v7724_v6 }
0x2a38   :  { %9217 = vmatpush3.msra.mxu0 %v7724_v6 }
0x2a39   :  { %9218 = vmatprep.subr.mxu0 %v7723_v44 }
0x2a3a   :  { %9219 = vmatpush3.msra.mxu0 %v7723_v44 }
0x2a3b   :  { %9220 = vmatprep.subr.mxu0 %v7722_v60 }
0x2a3c   :  { %9221 = vmatpush3.msra.mxu0 %v7722_v60 }
0x2a3d   :  { %9222 = vmatprep.subr.mxu0 %v7721_v61 }
0x2a3e   :  { %9223 = vmatpush3.msra.mxu0 %v7721_v61 }
0x2a3f   :  { %9224 = vmatprep.subr.mxu0 %v7720_v62 }
0x2a40   :  { %9225 = vmatpush3.msra.mxu0 %v7720_v62 }
0x2a41   :  { %9227 = vmatmul.mubr.msk.f32.vlgmr.msra.gmra.mxu0 %vm193_vm4, %v10682_v22 }
0x2a42   :  { %9229 = vmatprep.mubr.msk.f32.mxu0 %vm193_vm4, %v10715_v40 }
0x2a45   :  { %9230 = vmatmul.mubr.msk.f32.gmra.mxu0 %vm193_vm4, %v10724_v54 }
0x2ae1   :  { %v9155_v8 = vpop.f32.mrf.mxu0 }
0x2ae3   :  { %v5915_v35 = vpop.f32.mrf.mxu0 }
0x2ae4   :  { %9163 = vmatprep.mubr.msk.f32.mxu1 %vm556_vm5, %v5915_v35 }
0x2ae5   :  { %9164 = vmatmul.mubr.msk.f32.gmra.mxu1 %vm556_vm5, %v9155_v8 }
0x2ae6   :  { %9204 = vmatprep.mubr.msk.f32.mxu1 %vm193_vm4, %v10673_v19 }
0x2ae9   :  { %9205 = vmatmul.mubr.msk.f32.vlgmr.msra.gmra.mxu1 %vm193_vm4, %v10682_v22  ;;  %v11181_v22 = vpop.f32.mrf.mxu1 }
0x2aea   :  { %9207 = vmatprep.mubr.msk.f32.mxu1 %vm193_vm4, %v10715_v40  ;;  %v5259_v40 = vadd.f32 %v11011_v15, %v11038_v55 }
0x2aed   :  { %9208 = vmatmul.mubr.msk.f32.gmra.mxu1 %vm193_vm4, %v10724_v54 }
0x2af1   :  { %v9184_v21 = vpop.f32.mrf.mxu0 }
0x2af3   :  { %v6118_v47 = vpop.f32.mrf.mxu0 }
0x2af4   :  { %9236 = vmatprep.mubr.msk.f32.mxu1 %vm556_vm5, %v6118_v47 }
0x2af5   :  { %v11177_v26 = vpop.f32.mrf.mxu0 }
0x2af7   :  { %v11179_v30 = vpop.f32.mrf.mxu0 }
0x2b01   :  { %v9228_v51 = vpop.f32.mrf.mxu0 }
0x2b03   :  { %v6288_v16 = vpop.f32.mrf.mxu0 }
0x2b05   :  { %v9231_v19 = vpop.f32.mrf.mxu0 }
0x2b06   :  { %9253 = vmatprep.subr.mxu0 %v9231_v19 }
0x2b07   :  { %v6298_v50 = vpop.f32.mrf.mxu0  ;;  %9254 = vmatpush3.msra.mxu0 %v9231_v19 }
0x2b08   :  { %9255 = vmatprep.subr.mxu0 %v6298_v50 }
0x2b09   :  { %9256 = vmatpush3.msra.mxu0 %v6298_v50 }
0x2ba5   :  { %v9165_v54 = vpop.f32.mrf.mxu1 }
0x2ba6   :  { %v11187_v2 = vadd.f32 %v9165_v54, %v5259_v40 }
0x2ba7   :  { %v6012_v32 = vpop.f32.mrf.mxu1 }
0x2ba8   :  { %v11189_v24 = vadd.f32 %v6012_v32, %v5254_v31 }
0x2ba9   :  { %v9206_v49 = vpop.f32.mrf.mxu1 }
0x2baa   :  { %9232 = vmatprep.subr.msk.mxu1 %vm556_vm5, %v9206_v49 }
0x2bab   :  { %v6203_v42 = vpop.f32.mrf.mxu1  ;;  %9233 = vmatpush3.xpose.msk.msra.mxu1 %vm556_vm5, %v9206_v49  ;;  %v5244_v49 = vadd.f32 %v10999_v39, %v11036_v52 }
0x2bac   :  { %9234 = vmatprep.subr.msk.mxu1 %vm556_vm5, %v6203_v42 }
0x2bad   :  { %v9209_v15 = vpop.f32.mrf.mxu1 }
0x2baf   :  { %9235 = vmatpush3.xpose.msk.msra.mxu1 %vm556_vm5, %v6203_v42  ;;  %v6213_v41 = vpop.f32.mrf.mxu1 }
0x2bb0   :  { %9239 = vmatprep.subr.mxu1 %v9228_v51 }
0x2bb2   :  { %9237 = vmatmul.mubr.msk.f32.vlgmr.msra.gmra.mxu1 %vm556_vm5, %v9184_v21 }
0x2bb3   :  { %9240 = vmatpush3.msra.mxu1 %v9228_v51 }
0x2bb4   :  { %9241 = vmatprep.subr.mxu1 %v6288_v16 }
0x2bb5   :  { %9242 = vmatpush3.msra.mxu1 %v6288_v16 }
0x2bb6   :  { %9246 = vmatprep.subr.msk.mxu1 %vm556_vm5, %v9209_v15 }
0x2c72   :  { %v9238_v55 = vpop.f32.mrf.mxu1 }
0x2c73   :  { %v6391_v59 = vadd.f32 %v9238_v55, %v9831_v12  ;;  %v11233_v55 = vld [vmem:[%s11515_s3 + $0x4] sm:$0xf] }
0x2c74   :  { %v6385_v4 = vpop.f32.mrf.mxu1 }
0x2c75   :  { %v6386_v33 = vadd.f32 %v6385_v4, %v9833_v13  ;;  %v6397_v46 = vsel %vm556_vm5, %v6391_v59, -inf }
0x2c76   :  { %6398 = vmax.xlane.f32.xlu0 %v6397_v46 }
0x2c77   :  { %v6394_v63 = vsel %vm556_vm5, %v6386_v33, -inf }
0x2c78   :  { %6395 = vmax.xlane.f32.xlu1 %v6394_v63 }
0x2cff   :  { %v6399_v56 = vpop.xlane.xlu0 %6398 }
0x2d00   :  { %v6401_v20 = vsub.f32 %v6391_v59, %v6399_v56  ;;  %v6795_v59 = vrot.slane %v11233_v55, %v3325_v5 }
0x2d01   :  { %v6396_v23 = vpop.xlane.xlu1 %6395 }
0x2d02   :  { %v6404_v11 = vmul.f32 1.442695, %v6401_v20  ;;  %v6400_v45 = vsub.f32 %v6386_v33, %v6396_v23 }
0x2d04   :  { %9437 = vpow2.f32 %v6404_v11  ;;  %v6402_v25 = vmul.f32 1.442695, %v6400_v45 }
0x2d06   :  { %9439 = vpow2.f32 %v6402_v25 }
0x2d11   :  { %v9438_v29 = vpop.eup %9437 }
0x2d12   :  { %v6409_v27 = vsel %vm556_vm5, %v9438_v29, 0.0 }
0x2d13   :  { %v9440_v14 = vpop.eup %9439  ;;  %6410 = vadd.xlane.f32.xlu0 %v6409_v27 }
0x2d14   :  { %v6406_v37 = vsel %vm556_vm5, %v9440_v14, 0.0 }
0x2d15   :  { %6407 = vadd.xlane.f32.xlu1 %v6406_v37 }
0x2d9c   :  { %v6411_v43 = vpop.xlane.xlu0 %6410 }
0x2d9d   :  { %9441 = vrcp.f32 %v6411_v43 }
0x2d9e   :  { %v6408_v6 = vpop.xlane.xlu1 %6407 }
0x2d9f   :  { %9443 = vrcp.f32 %v6408_v6 }
0x2daa   :  { %v9442_v44 = vpop.eup %9441 }
0x2dab   :  { %v6415_v62 = vmul.f32 %v9442_v44, %v9438_v29 }
0x2dac   :  { %v9444_v60 = vpop.eup %9443 }
0x2dad   :  { %v6414_v61 = vmul.f32 %v9444_v60, %v9440_v14 }
0x2daf   :  { %9243 = vmatprep.mubr.msk.f32.mxu1 %vm556_vm5, %v6414_v61 }
0x2db0   :  { %9244 = vmatmul.mubr.msk.f32.vlgmr.msra.gmra.mxu1 %vm556_vm5, %v6415_v62 }
0x2db1   :  { %9247 = vmatpush3.xpose.msk.msra.mxu1 %vm556_vm5, %v9209_v15  ;;  %9250 = vmatprep.mubr.msk.f32.mxu1 %vm556_vm5, %v11179_v30  ;;  %v6021_v15 = vadd.f32 %v11181_v22, %v5244_v49  ;;  %v7756_v49 = vld [vmem:[%s11518_s6 + $0x80] sm:$0xff] }
0x2db2   :  { %9248 = vmatprep.subr.msk.mxu1 %vm556_vm5, %v6213_v41 }
0x2db5   :  { %9249 = vmatpush3.xpose.msk.msra.mxu1 %vm556_vm5, %v6213_v41 }
0x2db6   :  { %9260 = vmatprep.subr.mxu1 %v7547_v48 }
0x2db8   :  { %9251 = vmatmul.mubr.msk.f32.vlgmr.msra.gmra.mxu1 %vm556_vm5, %v11177_v26 }
0x2db9   :  { %9261 = vmatpush3.msra.mxu1 %v7547_v48 }
0x2dba   :  { %9262 = vmatprep.subr.mxu1 %v7546_v0 }
0x2dbb   :  { %9263 = vmatpush3.msra.mxu1 %v7546_v0 }
0x2e70   :  { %v9245_v58 = vpop.f32.mrf.mxu1 }
0x2e72   :  { %v6488_v1 = vpop.f32.mrf.mxu1 }
0x2e73   :  { %9264 = vmatprep.mubr.msk.f32.mxu1 %vm556_vm5, %v6488_v1 }
0x2e74   :  { %9265 = vmatmul.mubr.msk.f32.vlgmr.msra.gmra.mxu1 %vm556_vm5, %v9245_v58 }
0x2e78   :  { %v9252_v8 = vpop.f32.mrf.mxu1 }
0x2e79   :  { %v6581_v35 = vadd.f32 %v9252_v8, %v9831_v12 }
0x2e7a   :  { %v6575_v21 = vpop.f32.mrf.mxu1 }
0x2e7b   :  { %v6576_v47 = vadd.f32 %v6575_v21, %v9833_v13  ;;  %v6587_v26 = vsel %vm556_vm5, %v6581_v35, -inf  ;;  %v7770_v21 = vld [vmem:[%s11518_s6 + $0xf0] sm:$0xff] }
0x2e7c   :  { %6588 = vmax.xlane.f32.xlu0 %v6587_v26  ;;  %v7768_v26 = vld [vmem:[%s11518_s6 + $0xe0] sm:$0xff] }
0x2e7d   :  { %v6584_v30 = vsel %vm556_vm5, %v6576_v47, -inf }
0x2e7e   :  { %6585 = vmax.xlane.f32.xlu1 %v6584_v30  ;;  %v7767_v30 = vld [vmem:[%s11518_s6 + $0xd8] sm:$0xff] }
0x2f05   :  { %v6589_v51 = vpop.xlane.xlu0 %6588 }
0x2f06   :  { %v6591_v16 = vsub.f32 %v6581_v35, %v6589_v51  ;;  %v7771_v35 = vld [vmem:[%s11518_s6 + $0xf8] sm:$0xff]  ;;  %v7766_v51 = vld [vmem:[%s11518_s6 + $0xd0] sm:$0xff] }
0x2f07   :  { %v6586_v19 = vpop.xlane.xlu1 %6585  ;;  %6918 = vmatprep.subr.mxu0 %v7771_v35  ;;  %v7802_v35 = vld [vmem:[%s11520_s8 + $0x1c8] sm:$0xff] }
0x2f08   :  { %v6594_v50 = vmul.f32 1.442695, %v6591_v16  ;;  %v6590_v40 = vsub.f32 %v6576_v47, %v6586_v19  ;;  %v7769_v47 = vld [vmem:[%s11518_s6 + $0xe8] sm:$0xff]  ;;  %v7764_v19 = vld [vmem:[%s11518_s6 + $0xc0] sm:$0xff] }
0x2f09   :  { %v7765_v16 = vld [vmem:[%s11518_s6 + $0xc8] sm:$0xff] }
0x2f0a   :  { %9445 = vpow2.f32 %v6594_v50  ;;  %v6592_v54 = vmul.f32 1.442695, %v6590_v40  ;;  %v7763_v50 = vld [vmem:[%s11518_s6 + $0xb8] sm:$0xff]  ;;  %v7762_v40 = vld [vmem:[%s11518_s6 + $0xb0] sm:$0xff] }
0x2f0c   :  { %9447 = vpow2.f32 %v6592_v54  ;;  %v7761_v54 = vld [vmem:[%s11518_s6 + $0xa8] sm:$0xff] }
0x2f17   :  { %v9446_v31 = vpop.eup %9445 }
0x2f18   :  { %v6599_v12 = vsel %vm556_vm5, %v9446_v31, 0.0 }
0x2f19   :  { %v9448_v32 = vpop.eup %9447  ;;  %6600 = vadd.xlane.f32.xlu0 %v6599_v12  ;;  %v7759_v12 = vld [vmem:[%s11518_s6 + $0x98] sm:$0xff] }
0x2f1a   :  { %v6596_v13 = vsel %vm556_vm5, %v9448_v32, 0.0 }
0x2f1b   :  { %6597 = vadd.xlane.f32.xlu1 %v6596_v13  ;;  %v7757_v13 = vld [vmem:[%s11518_s6 + $0x88] sm:$0xff] }
0x2f34   :  { %v9266_v42 = vpop.f32.mrf.mxu1 }
0x2f35   :  { %v6785_v41 = vadd.f32 %v9266_v42, %v11077_v36 }
0x2f36   :  { %v6765_v4 = vpop.f32.mrf.mxu1 }
0x2f37   :  { %v6789_v33 = vadd.f32 %v6785_v41, %v10575_v3  ;;  %v6784_v46 = vadd.f32 %v6765_v4, %v6021_v15 }
0x2f39   :  { %v11239_v63 = vadd.f32 %v6795_v59, %v6789_v33  ;;  %v6788_v39 = vadd.f32 %v6784_v46, %v10570_v10 }
0x2f3b   :  { %v11242_v52 = vadd.f32 %v6795_v59, %v6788_v39  ;;  %v6803_v36 = vsel %vm193_vm4, %v11239_v63, 0.0 }
0x2f3c   :  { %6804 = vadd.xlane.f32.xlu0 %v6803_v36 }
0x2f3d   :  { %v6800_v22 = vsel %vm193_vm4, %v11242_v52, 0.0 }
0x2f3e   :  { %6801 = vadd.xlane.f32.xlu1 %v6800_v22 }
0x2fa2   :  { %v6601_v56 = vpop.xlane.xlu0 %6600 }
0x2fa3   :  { %9449 = vrcp.f32 %v6601_v56 }
0x2fa4   :  { %v6598_v5 = vpop.xlane.xlu1 %6597 }
0x2fa5   :  { %9451 = vrcp.f32 %v6598_v5 }
0x2fb0   :  { %v9450_v3 = vpop.eup %9449 }
0x2fb1   :  { %v6605_v11 = vmul.f32 %v9450_v3, %v9446_v31  ;;  %v7760_v31 = vld [vmem:[%s11518_s6 + $0xa0] sm:$0xff] }
0x2fb2   :  { %v9452_v20 = vpop.eup %9451 }
0x2fb3   :  { %v6604_v23 = vmul.f32 %v9452_v20, %v9448_v32  ;;  %v7758_v32 = vld [vmem:[%s11518_s6 + $0x90] sm:$0xff] }
0x2fb5   :  { %9257 = vmatprep.mubr.msk.f32.mxu0 %vm556_vm5, %v6604_v23 }
0x2fb6   :  { %9258 = vmatmul.mubr.msk.f32.vlgmr.msra.gmra.mxu0 %vm556_vm5, %v6605_v11 }
0x2fb7   :  { %6966 = vmatprep.mubr.f32.mxu0 %v9496_v9  ;;  %6919 = vmatpush1.msra.mxu0 %v7770_v21  ;;  %v7786_v21 = vld [vmem:[%s11520_s8 + $0x148] sm:$0xff] }
0x2fb8   :  { %6920 = vmatprep.subr.mxu0 %v7769_v47  ;;  %v7801_v47 = vld [vmem:[%s11520_s8 + $0x1c0] sm:$0xff] }
0x2fb9   :  { %6921 = vmatpush1.msra.mxu0 %v7768_v26  ;;  %v7785_v26 = vld [vmem:[%s11520_s8 + $0x140] sm:$0xff] }
0x2fba   :  { %6922 = vmatprep.subr.mxu0 %v7767_v30  ;;  %v7800_v30 = vld [vmem:[%s11520_s8 + $0x1b8] sm:$0xff] }
0x2fbb   :  { %6923 = vmatpush1.msra.mxu0 %v7766_v51  ;;  %v7784_v51 = vld [vmem:[%s11520_s8 + $0x138] sm:$0xff] }
0x2fbc   :  { %6924 = vmatprep.subr.mxu0 %v7765_v16  ;;  %v7799_v16 = vld [vmem:[%s11520_s8 + $0x1b0] sm:$0xff] }
0x2fbd   :  { %6925 = vmatpush1.msra.mxu0 %v7764_v19  ;;  %v7783_v19 = vld [vmem:[%s11520_s8 + $0x130] sm:$0xff] }
0x2fbe   :  { %6926 = vmatprep.subr.mxu0 %v7763_v50  ;;  %v7798_v50 = vld [vmem:[%s11520_s8 + $0x1a8] sm:$0xff] }
0x2fbf   :  { %6927 = vmatpush1.msra.mxu0 %v7762_v40  ;;  %v7782_v40 = vld [vmem:[%s11520_s8 + $0x128] sm:$0xff] }
0x2fc0   :  { %6928 = vmatprep.subr.mxu0 %v7761_v54  ;;  %v7797_v54 = vld [vmem:[%s11520_s8 + $0x1a0] sm:$0xff] }
0x2fc1   :  { %6929 = vmatpush1.msra.mxu0 %v7760_v31  ;;  %v7781_v31 = vld [vmem:[%s11520_s8 + $0x120] sm:$0xff] }
0x2fc2   :  { %6930 = vmatprep.subr.mxu0 %v7759_v12  ;;  %v7796_v12 = vld [vmem:[%s11520_s8 + $0x198] sm:$0xff] }
0x2fc3   :  { %6931 = vmatpush1.msra.mxu0 %v7758_v32  ;;  %v7780_v32 = vld [vmem:[%s11520_s8 + $0x118] sm:$0xff] }
0x2fc4   :  { %6932 = vmatprep.subr.mxu0 %v7757_v13  ;;  %v7795_v13 = vld [vmem:[%s11520_s8 + $0x190] sm:$0xff] }
0x2fc5   :  { %v6805_v25 = vpop.xlane.xlu0 %6804  ;;  %6933 = vmatpush1.msra.mxu0 %v7756_v49  ;;  %v7779_v49 = vld [vmem:[%s11520_s8 + $0x110] sm:$0xff] }
0x2fc6   :  { %v6813_v27 = vmul.f32 0.015625, %v6805_v25 }
0x2fc7   :  { %v6802_v29 = vpop.xlane.xlu1 %6801 }
0x2fc8   :  { %v6812_v37 = vmul.f32 0.015625, %v6802_v29  ;;  %v11255_v44 = vsub.f32 %v11239_v63, %v6813_v27 }
0x2fca   :  { %v11260_v62 = vsub.f32 %v11242_v52, %v6812_v37  ;;  %v6821_v1 = vmul.f32 %v11255_v44, %v11255_v44 }
0x2fcc   :  { %v6827_v8 = vsel %vm193_vm4, %v6821_v1, 0.0  ;;  %v7789_v1 = vld [vmem:[%s11520_s8 + $0x160] sm:$0xff] }
0x3076   :  { %v9259_v10 = vpop.f32.mrf.mxu0 }
0x3078   :  { %v6678_v45 = vpop.f32.mrf.mxu0 }
0x3079   :  { %9267 = vmatprep.mubr.msk.f32.mxu1 %vm556_vm5, %v6678_v45 }
0x307a   :  { %9268 = vmatmul.mubr.msk.f32.gmra.mxu1 %vm556_vm5, %v9259_v10 }
0x313a   :  { %v9269_v14 = vpop.f32.mrf.mxu1 }
0x313b   :  { %v6787_v43 = vadd.f32 %v9269_v14, %v11187_v2 }
0x313c   :  { %v6775_v6 = vpop.f32.mrf.mxu1 }
0x313d   :  { %v6791_v60 = vadd.f32 %v6787_v43, %v10588_v7  ;;  %v6786_v61 = vadd.f32 %v6775_v6, %v11189_v24  ;;  %v6820_v24 = vmul.f32 %v11260_v62, %v11260_v62  ;;  %v7808_v6 = vld [vmem:[%s11520_s8 + $0x1f8] sm:$0xff] }
0x313e   :  { %8344 = vmatprep.subr.mxu1 %v7808_v6 }
0x313f   :  { %v11262_v48 = vadd.f32 %v6795_v59, %v6791_v60  ;;  %v6790_v0 = vadd.f32 %v6786_v61, %v10580_v18  ;;  %v6824_v18 = vsel %vm193_vm4, %v6820_v24, 0.0  ;;  %v7807_v60 = vld [vmem:[%s11520_s8 + $0x1f0] sm:$0xff]  ;;  %v7788_v24 = vld [vmem:[%s11520_s8 + $0x158] sm:$0xff] }
0x3140   :  { %v7791_v61 = vld [vmem:[%s11520_s8 + $0x170] sm:$0xff] }
0x3141   :  { %v11265_v58 = vadd.f32 %v6795_v59, %v6790_v0  ;;  %v6809_v2 = vsel %vm193_vm4, %v11262_v48, 0.0  ;;  %v7790_v0 = vld [vmem:[%s11520_s8 + $0x168] sm:$0xff] }
0x3142   :  { %6810 = vadd.xlane.f32.xlu0 %v6809_v2  ;;  %v7805_v2 = vld [vmem:[%s11520_s8 + $0x1e0] sm:$0xff] }
0x3143   :  { %v6806_v7 = vsel %vm193_vm4, %v11265_v58, 0.0 }
0x3144   :  { %6807 = vadd.xlane.f32.xlu1 %v6806_v7  ;;  %v7804_v7 = vld [vmem:[%s11520_s8 + $0x1d8] sm:$0xff] }
0x3146   :  { %6828 = vadd.xlane.f32.xlu0 %v6827_v8  ;;  %v7803_v8 = vld [vmem:[%s11520_s8 + $0x1d0] sm:$0xff] }
0x3148   :  { %6825 = vadd.xlane.f32.xlu1 %v6824_v18  ;;  %v7787_v18 = vld [vmem:[%s11520_s8 + $0x150] sm:$0xff] }
0x31cb   :  { %v6811_v42 = vpop.xlane.xlu0 %6810 }
0x31cc   :  { %v6815_v15 = vmul.f32 0.015625, %v6811_v42  ;;  %v7794_v42 = vld [vmem:[%s11520_s8 + $0x188] sm:$0xff] }
0x31cd   :  { %v6808_v41 = vpop.xlane.xlu1 %6807 }
0x31ce   :  { %v11326_v59 = vsub.f32 %v11262_v48, %v6815_v15  ;;  %v6814_v4 = vmul.f32 0.015625, %v6808_v41  ;;  %v7778_v15 = vld [vmem:[%s11520_s8 + $0x108] sm:$0xff]  ;;  %v7793_v41 = vld [vmem:[%s11520_s8 + $0x180] sm:$0xff] }
0x31cf   :  { %v6829_v33 = vpop.xlane.xlu0 %6828 }
0x31d0   :  { %v11329_v46 = vsub.f32 %v11265_v58, %v6814_v4  ;;  %v6837_v39 = vmul.f32 0.015625, %v6829_v33  ;;  %v6823_v36 = vmul.f32 %v11326_v59, %v11326_v59  ;;  %v7777_v4 = vld [vmem:[%s11520_s8 + $0x100] sm:$0xff] }
0x31d1   :  { %v6826_v22 = vpop.xlane.xlu1 %6825 }
0x31d2   :  { %v6841_v56 = vadd.f32 1e-05, %v6837_v39  ;;  %v6836_v5 = vmul.f32 0.015625, %v6826_v22  ;;  %v6833_v3 = vsel %vm193_vm4, %v6823_v36, 0.0  ;;  %v6822_v20 = vmul.f32 %v11329_v46, %v11329_v46 }
0x31d3   :  { %6834 = vadd.xlane.f32.xlu0 %v6833_v3 }
0x31d4   :  { %9453 = vrsqrt.f32 %v6841_v56  ;;  %v6840_v23 = vadd.f32 1e-05, %v6836_v5  ;;  %v6830_v11 = vsel %vm193_vm4, %v6822_v20, 0.0 }
0x31d5   :  { %6831 = vadd.xlane.f32.xlu1 %v6830_v11 }
0x31d6   :  { %9455 = vrsqrt.f32 %v6840_v23 }
0x31e1   :  { %v9454_v10 = vpop.eup %9453 }
0x31e2   :  { %v6849_v29 = vmul.f32 %v9454_v10, %v11255_v44  ;;  %v7792_v44 = vld [vmem:[%s11520_s8 + $0x178] sm:$0xff] }
0x31e3   :  { %v9456_v45 = vpop.eup %9455  ;;  %8345 = vmatpush3.msra.mxu1 %v7792_v44 }
0x31e4   :  { %v6848_v25 = vmul.f32 %v9456_v45, %v11260_v62  ;;  %v6853_v37 = vmul.f32 %v6849_v29, %v10665_v17  ;;  %v7806_v62 = vld [vmem:[%s11520_s8 + $0x1e8] sm:$0xff]  ;;  %8346 = vmatprep.subr.mxu1 %v7807_v60 }
0x31e5   :  { %8347 = vmatpush3.msra.mxu1 %v7791_v61 }
0x31e6   :  { %v6852_v27 = vmul.f32 %v6848_v25, %v10665_v17  ;;  %v6857_v43 = vadd.f32 %v6853_v37, %v10668_v57  ;;  %8348 = vmatprep.subr.mxu1 %v7806_v62 }
0x31e7   :  { %8349 = vmatpush3.msra.mxu1 %v7790_v0 }
0x31e8   :  { %v6856_v14 = vadd.f32 %v6852_v27, %v10668_v57  ;;  %8350 = vmatprep.subr.mxu1 %v7805_v2 }
0x31e9   :  { %8351 = vmatpush3.msra.mxu1 %v7789_v1 }
0x31ea   :  { %7773 = vmatmul.mubr.msk.f32.vlgmr.msra.gmra.mxu0 %vm193_vm4, %v6856_v14  ;;  %8352 = vmatprep.subr.mxu1 %v7804_v7 }
0x31eb   :  { %6972 = vmatprep.mubr.f32.mxu0 %v9496_v9  ;;  %8353 = vmatpush3.msra.mxu1 %v7788_v24 }
0x31ec   :  { %8354 = vmatprep.subr.mxu1 %v7803_v8 }
0x31ed   :  { %8355 = vmatpush3.msra.mxu1 %v7787_v18 }
0x31ee   :  { %7774 = vmatmul.mubr.msk.f32.gmra.mxu0 %vm193_vm4, %v6857_v43  ;;  %8356 = vmatprep.subr.mxu1 %v7802_v35 }
0x31ef   :  { %6978 = vmatprep.mubr.f32.mxu0 %v9496_v9  ;;  %8357 = vmatpush3.msra.mxu1 %v7786_v21 }
0x31f0   :  { %8358 = vmatprep.subr.mxu1 %v7801_v47 }
0x31f1   :  { %8359 = vmatpush3.msra.mxu1 %v7785_v26 }
0x31f2   :  { %8360 = vmatprep.subr.mxu1 %v7800_v30 }
0x31f3   :  { %8361 = vmatpush3.msra.mxu1 %v7784_v51  ;;  %v7035_v51 = vrot.slane %v11233_v55, %v3562_v53 }
0x31f4   :  { %8362 = vmatprep.subr.mxu1 %v7799_v16 }
0x31f5   :  { %8363 = vmatpush3.msra.mxu1 %v7783_v19 }
0x31f6   :  { %8364 = vmatprep.subr.mxu1 %v7798_v50 }
0x31f7   :  { %8365 = vmatpush3.msra.mxu1 %v7782_v40 }
0x31f8   :  { %8366 = vmatprep.subr.mxu1 %v7797_v54 }
0x31f9   :  { %8367 = vmatpush3.msra.mxu1 %v7781_v31 }
0x31fa   :  { %8368 = vmatprep.subr.mxu1 %v7796_v12 }
0x31fb   :  { %8369 = vmatpush3.msra.mxu1 %v7780_v32 }
0x31fc   :  { %8370 = vmatprep.subr.mxu1 %v7795_v13 }
0x31fd   :  { %8371 = vmatpush3.msra.mxu1 %v7779_v49 }
0x31fe   :  { %8372 = vmatprep.subr.mxu1 %v7794_v42 }
0x31ff   :  { %8373 = vmatpush3.msra.mxu1 %v7778_v15 }
0x3200   :  { %8374 = vmatprep.subr.mxu1 %v7793_v41 }
0x3201   :  { %8375 = vmatpush3.msra.mxu1 %v7777_v4 }
0x325c   :  { %v6835_v33 = vpop.xlane.xlu0 %6834 }
0x325d   :  { %v6839_v39 = vmul.f32 0.015625, %v6835_v33 }
0x325e   :  { %v6832_v36 = vpop.xlane.xlu1 %6831 }
0x325f   :  { %v6843_v22 = vadd.f32 1e-05, %v6839_v39  ;;  %v6838_v56 = vmul.f32 0.015625, %v6832_v36 }
0x3261   :  { %9457 = vrsqrt.f32 %v6843_v22  ;;  %v6842_v5 = vadd.f32 1e-05, %v6838_v56 }
0x3263   :  { %9459 = vrsqrt.f32 %v6842_v5 }
0x326e   :  { %v9458_v3 = vpop.eup %9457 }
0x326f   :  { %v6851_v11 = vmul.f32 %v9458_v3, %v11326_v59 }
0x3270   :  { %v9460_v20 = vpop.eup %9459 }
0x3271   :  { %v6850_v23 = vmul.f32 %v9460_v20, %v11329_v46  ;;  %v6855_v25 = vmul.f32 %v6851_v11, %v10665_v17  ;;  %v7772_v46 = vld [vmem:[%s11519_s7 + $0x2] sm:$0x3] }
0x3272   :  { %v6883_v59 = vrot.slane %v7772_v46, %v9739_v34  ;;  %v6887_v27 = vrot.slane %v7772_v46, %v9748_v38  ;;  %v7200_v46 = vld [vmem:[%s11522_s10 + $0x28] sm:$0xff] }
0x3273   :  { %v6854_v10 = vmul.f32 %v6850_v23, %v10665_v17  ;;  %v6859_v29 = vadd.f32 %v6855_v25, %v10668_v57 }
0x3275   :  { %v6858_v45 = vadd.f32 %v6854_v10, %v10668_v57 }
0x3277   :  { %7775 = vmatmul.mubr.msk.f32.gmra.mxu0 %vm193_vm4, %v6858_v45 }
0x3278   :  { %6984 = vmatprep.mubr.f32.mxu0 %v9496_v9 }
0x327b   :  { %7776 = vmatmul.mubr.msk.f32.gmra.mxu0 %vm193_vm4, %v6859_v29  ;;  %v7202_v29 = vld [vmem:[%s11522_s10 + $0x38] sm:$0xff] }
0x327c   :  { %9270 = vmatprep.subr.mxu0 %v7202_v29 }
0x327d   :  { %9271 = vmatpush3.msra.mxu0 %v7202_v29 }
0x32aa   :  { %v6968_v14 = vpop.f32.mrf.mxu0 }
0x32ab   :  { %v6969_v37 = vadd.f32 %v6968_v14, %v6883_v59  ;;  %v7197_v14 = vld [vmem:[%s11522_s10 + $0x10] sm:$0xff] }
0x32ac   :  { %v6970_v43 = vpop.f32.mrf.mxu0 }
0x32ad   :  { %v6971_v17 = vadd.f32 %v6970_v43, %v6887_v27  ;;  %v6991_v60 = vmax.f32 %v6969_v37, 0.0  ;;  %v7196_v37 = vld [vmem:[%s11522_s10 + $0x8] sm:$0xff]  ;;  %v7195_v43 = vld [vmem:[%s11522_s10] sm:$0xff] }
0x32ae   :  { %v6974_v6 = vpop.f32.mrf.mxu0 }
0x32af   :  { %v6992_v44 = vmax.f32 %v6971_v17, 0.0  ;;  %v6975_v9 = vadd.f32 %v6974_v6, %v6883_v59 }
0x32b0   :  { %v6976_v61 = vpop.f32.mrf.mxu0 }
0x32b1   :  { %v6977_v57 = vadd.f32 %v6976_v61, %v6887_v27  ;;  %7100 = vmatprep.mubr.f32.mxu1 %v6992_v44  ;;  %v6993_v0 = vmax.f32 %v6975_v9, 0.0 }
0x32b2   :  { %7101 = vmatmul.mubr.f32.vlgmr.msra.gmra.mxu1 %v6991_v60 }
0x32b3   :  { %v6994_v62 = vmax.f32 %v6977_v57, 0.0 }
0x32b5   :  { %7105 = vmatprep.mubr.f32.mxu1 %v6994_v62 }
0x32b6   :  { %7106 = vmatmul.mubr.f32.gmra.mxu1 %v6993_v0 }
0x3337   :  { %v6980_v2 = vpop.f32.mrf.mxu0 }
0x3338   :  { %v6981_v34 = vadd.f32 %v6980_v2, %v6883_v59 }
0x3339   :  { %v6982_v1 = vpop.f32.mrf.mxu0 }
0x333a   :  { %v6983_v38 = vadd.f32 %v6982_v1, %v6887_v27  ;;  %v6995_v8 = vmax.f32 %v6981_v34, 0.0 }
0x333b   :  { %v6986_v7 = vpop.f32.mrf.mxu0 }
0x333c   :  { %v6996_v24 = vmax.f32 %v6983_v38, 0.0  ;;  %v6987_v18 = vadd.f32 %v6986_v7, %v6883_v59  ;;  %v7199_v59 = vld [vmem:[%s11522_s10 + $0x20] sm:$0xff] }
0x333d   :  { %v6988_v35 = vpop.f32.mrf.mxu0 }
0x333e   :  { %v6989_v21 = vadd.f32 %v6988_v35, %v6887_v27  ;;  %7110 = vmatprep.mubr.f32.mxu1 %v6996_v24  ;;  %v6997_v26 = vmax.f32 %v6987_v18, 0.0  ;;  %v7198_v27 = vld [vmem:[%s11522_s10 + $0x18] sm:$0xff]  ;;  %v7809_v35 = vld [vmem:[%s11521_s9] ss:$0 sm:$0xff] }
0x333f   :  { %7111 = vmatmul.mubr.f32.gmra.mxu1 %v6995_v8 }
0x3340   :  { %v6998_v47 = vmax.f32 %v6989_v21, 0.0 }
0x3342   :  { %7115 = vmatprep.mubr.f32.mxu1 %v6998_v47  ;;  %v7810_v47 = vld [vmem:[%s11521_s9 + $0x1] ss:$0 sm:$0xff] }
0x3343   :  { %7116 = vmatmul.mubr.f32.gmra.mxu1 %v6997_v26 }
0x3372   :  { %v8376_v30 = vpop.f32.mrf.mxu1 }
0x3374   :  { %v8377_v16 = vpop.f32.mrf.mxu1 }
0x3375   :  { %v8378_v19 = vadd.f32 %v8377_v16, %v8376_v30 }
0x3376   :  { %v8379_v50 = vpop.f32.mrf.mxu1 }
0x3377   :  { %v7103_v40 = vadd.f32 %v8378_v19, %v7035_v51 }
0x3378   :  { %v8380_v54 = vpop.f32.mrf.mxu1 }
0x3379   :  { %v8381_v31 = vadd.f32 %v8380_v54, %v8379_v50  ;;  %v7121_v12 = vadd.f32 %v7103_v40, %v11242_v52 }
0x337b   :  { %v7108_v32 = vadd.f32 %v8381_v31, %v7035_v51  ;;  %v7127_v13 = vsel %vm193_vm4, %v7121_v12, 0.0 }
0x337c   :  { %7128 = vadd.xlane.f32.xlu1 %v7127_v13 }
0x337d   :  { %v7122_v49 = vadd.f32 %v7108_v32, %v11239_v63 }
0x337f   :  { %v7130_v42 = vsel %vm193_vm4, %v7122_v49, 0.0 }
0x3380   :  { %7131 = vadd.xlane.f32.xlu0 %v7130_v42 }
0x33ff   :  { %v8382_v28 = vpop.f32.mrf.mxu1 }
0x3401   :  { %v8383_v15 = vpop.f32.mrf.mxu1 }
0x3402   :  { %v8384_v53 = vadd.f32 %v8383_v15, %v8382_v28 }
0x3403   :  { %v8385_v55 = vpop.f32.mrf.mxu1 }
0x3404   :  { %v7113_v41 = vadd.f32 %v8384_v53, %v7035_v51 }
0x3405   :  { %v8386_v4 = vpop.f32.mrf.mxu1  ;;  %v7129_v33 = vpop.xlane.xlu1 %7128 }
0x3406   :  { %v8387_v39 = vadd.f32 %v8386_v4, %v8385_v55  ;;  %v7139_v36 = vmul.f32 0.015625, %v7129_v33  ;;  %v7123_v52 = vadd.f32 %v7113_v41, %v11265_v58  ;;  %v7811_v33 = vld [vmem:[%s11523_s11] ss:$0 sm:$0xff] }
0x3408   :  { %v7118_v22 = vadd.f32 %v8387_v39, %v7035_v51  ;;  %v7143_v56 = vsub.f32 %v7121_v12, %v7139_v36  ;;  %v7133_v5 = vsel %vm193_vm4, %v7123_v52, 0.0 }
0x3409   :  { %v7132_v3 = vpop.xlane.xlu0 %7131  ;;  %7134 = vadd.xlane.f32.xlu1 %v7133_v5 }
0x340a   :  { %v7140_v63 = vmul.f32 0.015625, %v7132_v3  ;;  %v7124_v20 = vadd.f32 %v7118_v22, %v11262_v48  ;;  %v7147_v23 = vmul.f32 %v7143_v56, %v7143_v56  ;;  %v7201_v48 = vld [vmem:[%s11522_s10 + $0x30] sm:$0xff] }
0x340b   :  { %9272 = vmatprep.subr.mxu0 %v7201_v48 }
0x340c   :  { %v7144_v11 = vsub.f32 %v7122_v49, %v7140_v63  ;;  %v7136_v10 = vsel %vm193_vm4, %v7124_v20, 0.0  ;;  %v7151_v45 = vsel %vm193_vm4, %v7147_v23, 0.0  ;;  %9273 = vmatpush3.msra.mxu0 %v7201_v48 }
0x340d   :  { %7137 = vadd.xlane.f32.xlu0 %v7136_v10  ;;  %7152 = vadd.xlane.f32.xlu1 %v7151_v45 }
0x340e   :  { %v7148_v25 = vmul.f32 %v7144_v11, %v7144_v11  ;;  %9274 = vmatprep.subr.mxu0 %v7200_v46 }
0x340f   :  { %9275 = vmatpush3.msra.mxu0 %v7200_v46 }
0x3410   :  { %v7154_v58 = vsel %vm193_vm4, %v7148_v25, 0.0  ;;  %9276 = vmatprep.subr.mxu0 %v7199_v59 }
0x3411   :  { %7155 = vadd.xlane.f32.xlu0 %v7154_v58  ;;  %9277 = vmatpush3.msra.mxu0 %v7199_v59 }
0x3412   :  { %9278 = vmatprep.subr.mxu0 %v7198_v27 }
0x3413   :  { %9279 = vmatpush3.msra.mxu0 %v7198_v27 }
0x3414   :  { %9280 = vmatprep.subr.mxu0 %v7197_v14 }
0x3415   :  { %9281 = vmatpush3.msra.mxu0 %v7197_v14 }
0x3416   :  { %9282 = vmatprep.subr.mxu0 %v7196_v37 }
0x3417   :  { %9283 = vmatpush3.msra.mxu0 %v7196_v37 }
0x3418   :  { %9284 = vmatprep.subr.mxu0 %v7195_v43 }
0x3419   :  { %9285 = vmatpush3.msra.mxu0 %v7195_v43 }
0x3492   :  { %v7135_v17 = vpop.xlane.xlu1 %7134 }
0x3493   :  { %v7141_v6 = vmul.f32 0.015625, %v7135_v17 }
0x3495   :  { %v7145_v44 = vsub.f32 %v7123_v52, %v7141_v6 }
0x3496   :  { %v7138_v60 = vpop.xlane.xlu0 %7137  ;;  %v7153_v9 = vpop.xlane.xlu1 %7152 }
0x3497   :  { %v7142_v61 = vmul.f32 0.015625, %v7138_v60  ;;  %v7163_v57 = vmul.f32 0.015625, %v7153_v9  ;;  %v7149_v62 = vmul.f32 %v7145_v44, %v7145_v44 }
0x3499   :  { %v7146_v0 = vsub.f32 %v7124_v20, %v7142_v61  ;;  %v7167_v2 = vadd.f32 1e-05, %v7163_v57  ;;  %v7157_v34 = vsel %vm193_vm4, %v7149_v62, 0.0 }
0x349a   :  { %v7156_v1 = vpop.xlane.xlu0 %7155  ;;  %7158 = vadd.xlane.f32.xlu1 %v7157_v34 }
0x349b   :  { %9461 = vrsqrt.f32 %v7167_v2  ;;  %v7164_v38 = vmul.f32 0.015625, %v7156_v1  ;;  %v7150_v7 = vmul.f32 %v7146_v0, %v7146_v0 }
0x349d   :  { %v7168_v24 = vadd.f32 1e-05, %v7164_v38  ;;  %v7160_v8 = vsel %vm193_vm4, %v7150_v7, 0.0 }
0x349e   :  { %7161 = vadd.xlane.f32.xlu0 %v7160_v8 }
0x349f   :  { %9463 = vrsqrt.f32 %v7168_v24 }
0x34a8   :  { %v9462_v18 = vpop.eup %9461 }
0x34a9   :  { %v7175_v21 = vmul.f32 %v9462_v18, %v7143_v56 }
0x34ab   :  { %v7183_v26 = vmul.f32 %v7809_v35, %v7175_v21 }
0x34ac   :  { %v9464_v30 = vpop.eup %9463 }
0x34ad   :  { %v7176_v51 = vmul.f32 %v9464_v30, %v7144_v11  ;;  %v7191_v16 = vadd.f32 %v7810_v47, %v7183_v26 }
0x34af   :  { %v7184_v19 = vmul.f32 %v7809_v35, %v7176_v51  ;;  %9286 = vmatprep.mubr.msk.f32.mxu0 %vm193_vm4, %v7191_v16 }
0x34b1   :  { %v7192_v50 = vadd.f32 %v7810_v47, %v7184_v19 }
0x34b3   :  { %9287 = vmatmul.mubr.msk.f32.vlgmr.msra.gmra.mxu0 %vm193_vm4, %v7192_v50 }
0x3523   :  { %v7159_v40 = vpop.xlane.xlu1 %7158 }
0x3524   :  { %v7165_v54 = vmul.f32 0.015625, %v7159_v40 }
0x3526   :  { %v7169_v31 = vadd.f32 1e-05, %v7165_v54 }
0x3527   :  { %v7162_v12 = vpop.xlane.xlu0 %7161 }
0x3528   :  { %9465 = vrsqrt.f32 %v7169_v31  ;;  %v7166_v32 = vmul.f32 0.015625, %v7162_v12 }
0x352a   :  { %v7170_v13 = vadd.f32 1e-05, %v7166_v32 }
0x352c   :  { %9467 = vrsqrt.f32 %v7170_v13 }
0x3535   :  { %v9466_v49 = vpop.eup %9465 }
0x3536   :  { %v7177_v42 = vmul.f32 %v9466_v49, %v7145_v44 }
0x3538   :  { %v7185_v28 = vmul.f32 %v7809_v35, %v7177_v42 }
0x3539   :  { %v9468_v15 = vpop.eup %9467 }
0x353a   :  { %v7193_v53 = vadd.f32 %v7810_v47, %v7185_v28  ;;  %v7178_v55 = vmul.f32 %v9468_v15, %v7146_v0 }
0x353c   :  { %9289 = vmatprep.mubr.msk.f32.mxu0 %vm193_vm4, %v7193_v53  ;;  %v7186_v41 = vmul.f32 %v7809_v35, %v7178_v55 }
0x353e   :  { %v7194_v4 = vadd.f32 %v7810_v47, %v7186_v41 }
0x3540   :  { %9290 = vmatmul.mubr.msk.f32.gmra.mxu0 %vm193_vm4, %v7194_v4 }
0x3573   :  { %v9288_v39 = vpop.f32.mrf.mxu0 }
0x3574   :  { %v7294_v36 = vadd.f32 %v9288_v39, %v7811_v33 }
0x3575   :  { %v7288_v52 = vpop.f32.mrf.mxu0 }
0x3576   :  { %7308 = vst [vmem:[#allocation2 + $0x8] sm:$0xff] %v7294_v36  ;;  %v7289_v22 = vadd.f32 %v7811_v33, %v7288_v52 }
0x3578   :  { %7307 = vst [vmem:[#allocation2] sm:$0xff] %v7289_v22 }
0x3600   :  { %v9291_v56 = vpop.f32.mrf.mxu0 }
0x3601   :  { %v7304_v5 = vadd.f32 %v9291_v56, %v7811_v33 }
0x3602   :  { %v7298_v3 = vpop.f32.mrf.mxu0 }
0x3603   :  { %7310 = vst [vmem:[#allocation2 + $0x18] sm:$0xff] %v7304_v5  ;;  %v7299_v63 = vadd.f32 %v7811_v33, %v7298_v3 }
0x3605   :  { %7309 = vst [vmem:[#allocation2 + $0x10] sm:$0xff] %v7299_v63 }
0x3606   :  { %9482 = shalt.err (!%p9479_p4)
}
0x3607   :  { %s9498_s11 = smov 128   ;;  %s9499_s22 = smov 8  }
0x3608   :  { %7322 = dma.vmem_to_hbm [thread:$0]  %s7317_s21, 512, %s11524_s12, [#allocation3], %s9498_s11, %s9498_s11, %s9499_s22  }
0x3609   :  { %9491 = dma.done.wait [#allocation3], 512  }
0x360a   :  { %9492 = vsyncadd [#allocation3], 4294966784 }
0x360b   :  { %7326 = vsyncpa [#allocation3], 1 }

</bundles_post_ra>
